<compile_context>
chip_gen: v7x
topology: tpu7x:2x2x1
jax: 0.10.0
libtpu: 0.0.40
codegen_flags: <defaults>
</compile_context>

<pallas_src>
import functools

import jax
import jax.numpy as jnp
from jax.experimental import pallas as pl
from jax.experimental.pallas import tpu as pltpu

LANE = 128     # output channels padded to a multiple of the TPU lane width
TM_MAX = 128   # max output-row tile (multiple of 8 for the sublane constraint)


def _round_up(x, m):
    return ((x + m - 1) // m) * m


# ----------------------------- Pallas kernels --------------------------------
def _conv_kernel(x_ref, w_ref, b_ref, o_ref, *, do_relu):
    # (tm, K)bf16 @ (K, Cp)bf16 -> f32 on the MXU, + folded-BN bias, opt. ReLU.
    y = jnp.dot(x_ref[...], w_ref[...], preferred_element_type=jnp.float32)
    y = y + b_ref[...]
    if do_relu:
        y = jnp.maximum(y, 0.0)
    o_ref[...] = y


def _conv_res_kernel(x_ref, w_ref, b_ref, r_ref, o_ref, *, do_relu):
    # Same as above plus the fused residual add (ResNet basic-block tail).
    y = jnp.dot(x_ref[...], w_ref[...], preferred_element_type=jnp.float32)
    y = y + b_ref[...]
    if do_relu:
        y = jnp.maximum(y, 0.0)
    o_ref[...] = y + r_ref[...]


def _pallas_conv_matmul(patches, w2d, bias, residual, do_relu):
    """patches:(M,K)bf16  w2d:(K,Cp)bf16  bias:(1,Cp)f32  residual:(M,Cp)f32|None."""
    M, K = patches.shape
    Cp = w2d.shape[1]
    tm = min(TM_MAX, _round_up(M, 8))        # right-size the tile for tiny layers
    grid = (pl.cdiv(M, tm),)

    in_specs = [
        pl.BlockSpec((tm, K), lambda i: (i, 0)),    # im2col patch rows (bf16)
        pl.BlockSpec((K, Cp), lambda i: (0, 0)),    # scale-folded weights (resident)
        pl.BlockSpec((1, Cp), lambda i: (0, 0)),    # folded BN bias (resident)
    ]
    args = [patches, w2d, bias]
    if residual is None:
        kernel = functools.partial(_conv_kernel, do_relu=do_relu)
    else:
        kernel = functools.partial(_conv_res_kernel, do_relu=do_relu)
        in_specs.append(pl.BlockSpec((tm, Cp), lambda i: (i, 0)))
        args.append(residual)

    return pl.pallas_call(
        kernel,
        out_shape=jax.ShapeDtypeStruct((M, Cp), jnp.float32),
        grid=grid,
        in_specs=in_specs,
        out_specs=pl.BlockSpec((tm, Cp), lambda i: (i, 0)),
        compiler_params=pltpu.CompilerParams(
            dimension_semantics=("parallel",)),   # lets v7x shard M over both TCs
    )(*args)


# ------------------------------ JAX glue -------------------------------------
def _im2col(x_nhwc, kh, kw, stride, pad):
    N, H, W, C = x_nhwc.shape
    xp = jnp.pad(x_nhwc, ((0, 0), (pad, pad), (pad, pad), (0, 0)))
    OH = (H + 2 * pad - kh) // stride + 1
    OW = (W + 2 * pad - kw) // stride + 1
    cols = []
    for ky in range(kh):
        for kx in range(kw):
            cols.append(
                xp[:, ky:ky + stride * OH:stride, kx:kx + stride * OW:stride, :])
    patches = jnp.stack(cols, axis=3)          # (N, OH, OW, kh*kw, C)
    return patches.reshape(N * OH * OW, kh * kw * C), OH, OW


def conv_bn_act(x, params, stride, do_relu, residual=None):
    """conv(bias=False) + BatchNorm2d (inference) + optional ReLU + optional add.

    `x` may carry zero lane-padding channels beyond the true Cin (sliced off
    before im2col).  The output is lane-padded to a multiple of 128; the padded
    channels are exactly zero and propagate as zero through the network.
    """
    w = params["w"]                            # (Cout, Cin, kh, kw) torch layout
    Cout, Cin, kh, kw = w.shape
    pad = kh // 2                              # Conv2dAuto "same"-style padding
    N = x.shape[0]

    # bf16 operands for the MXU; accumulation stays f32 inside the kernel.
    x_in = x[..., :Cin].astype(jnp.bfloat16)
    patches, OH, OW = _im2col(x_in, kh, kw, stride, pad)

    # Fold the BN scale into the weight columns; pad Cout to lane width.
    Cp = _round_up(Cout, LANE)
    w2d = jnp.transpose(w, (2, 3, 1, 0)).reshape(kh * kw * Cin, Cout)
    w2d = w2d * params["scale"][None, :]
    w2d = jnp.pad(w2d, ((0, 0), (0, Cp - Cout))).astype(jnp.bfloat16)
    bias = jnp.pad(params["bias"], (0, Cp - Cout)).reshape(1, Cp)

    res2d = None
    if residual is not None:
        res2d = residual.reshape(N * OH * OW, residual.shape[-1])
        assert res2d.shape[-1] == Cp, (res2d.shape, Cp)

    out = _pallas_conv_matmul(patches, w2d, bias, res2d, do_relu)
    return out.reshape(N, OH, OW, Cp)


def basic_block(x, blk):
    """ResNetBasicBlock: conv-bn-relu, conv-bn, += residual (no post-add ReLU —
    the reference puts the activation between the two conv_bn's only)."""
    has_shortcut = "shortcut" in blk           # shortcut exists iff in != out
    stride = 2 if has_shortcut else 1          # downsampling = 2 iff in != out
    if has_shortcut:
        residual = conv_bn_act(x, blk["shortcut"], stride=stride, do_relu=False)
    else:
        residual = x
    h = conv_bn_act(x, blk["conv1"], stride=stride, do_relu=True)
    return conv_bn_act(h, blk["conv2"], stride=1, do_relu=False,
                       residual=residual)


def resnet_encoder(x_nchw, params):
    x = jnp.transpose(x_nchw, (0, 2, 3, 1))    # NCHW -> NHWC
    x = conv_bn_act(x, params["gate"], stride=2, do_relu=True)
    for layer in params["layers"]:
        for blk in layer:
            x = basic_block(x, blk)
    c_final = params["layers"][-1][-1]["conv2"]["w"].shape[0]
    x = x[..., :c_final]                       # drop lane-padding channels
    return jnp.transpose(x, (0, 3, 1, 2))      # NHWC -> NCHW


# --------------------------- parameter init ----------------------------------
def _bn_fold(cout, eps=1e-5):
    # Default-initialized BatchNorm2d in eval mode: gamma=1, beta=0, mean=0, var=1.
    gamma = jnp.ones((cout,), jnp.float32)
    beta = jnp.zeros((cout,), jnp.float32)
    mean = jnp.zeros((cout,), jnp.float32)
    var = jnp.ones((cout,), jnp.float32)
    scale = gamma / jnp.sqrt(var + eps)
    bias = beta - mean * scale
    return scale, bias


def _make_conv_bn(key, cin, cout, k):
    w = 0.1 * jax.random.normal(key, (cout, cin, k, k), jnp.float32)
    scale, bias = _bn_fold(cout)
    return {"w": w, "scale": scale, "bias": bias}


def init_encoder_params(key, in_channels=3,
                        blocks_sizes=(16, 32, 64, 128), deepths=(2, 2, 2, 2)):
    keys = iter(jax.random.split(key, 128))
    params = {"gate": _make_conv_bn(next(keys), in_channels, blocks_sizes[0], 3)}

    layer_specs = [(blocks_sizes[0], blocks_sizes[0], deepths[0])]
    for (cin, cout), n in zip(zip(blocks_sizes, blocks_sizes[1:]), deepths[1:]):
        layer_specs.append((cin, cout, n))

    layers = []
    for cin, cout, n in layer_specs:
        blocks = []
        blk = {
            "conv1": _make_conv_bn(next(keys), cin, cout, 3),
            "conv2": _make_conv_bn(next(keys), cout, cout, 3),
        }
        if cin != cout:
            blk["shortcut"] = _make_conv_bn(next(keys), cin, cout, 1)
        blocks.append(blk)
        for _ in range(n - 1):
            blocks.append({
                "conv1": _make_conv_bn(next(keys), cout, cout, 3),
                "conv2": _make_conv_bn(next(keys), cout, cout, 3),
            })
        layers.append(blocks)
    params["layers"] = layers
    return params


# --------------------------------- main ---------------------------------------
if __name__ == "__main__":
    key = jax.random.PRNGKey(0)
    pkey, xkey = jax.random.split(key)
    params = init_encoder_params(pkey)

    # PyTorch-style NCHW input: batch=2, in_channels=3, 32x32 spatial.
    x = jax.random.normal(xkey, (2, 3, 32, 32), jnp.float32)

    fwd = jax.jit(resnet_encoder)              # fuse wrapper-side reshapes/casts
    out = jax.block_until_ready(fwd(x, params))
    assert out.shape == (2, 128, 2, 2), out.shape
    print("KERNEL_OK")
</pallas_src>

<mosaic_0001>
module attributes {stable_mosaic.version = 11 : i64} {
  func.func @_conv_kernel(%arg0: i32, %arg1: memref<128x27xbf16, #tpu.memory_space<vmem>>, %arg2: memref<27x128xbf16, #tpu.memory_space<vmem>>, %arg3: memref<1x128xf32, #tpu.memory_space<vmem>>, %arg4: memref<128x128xf32, #tpu.memory_space<vmem>>) attributes {dimension_semantics = [#tpu.dimension_semantics<parallel>], iteration_bounds = array<i64: 4>, scalar_prefetch = 0 : i64, scratch_operands = 0 : i64, tpu.core_type = #tpu.core_type<tc>, window_params = [{transform_indices = @transform_0, window_bounds = array<i64: 128, 27>}, {pipeline_mode = #tpu.pipeline_mode<synchronous>, transform_indices = @transform_1, window_bounds = array<i64: 27, 128>}, {pipeline_mode = #tpu.pipeline_mode<synchronous>, transform_indices = @transform_2, window_bounds = array<i64: 1, 128>}, {transform_indices = @transform_3, window_bounds = array<i64: 128, 128>}]} {
    %c0 = arith.constant 0 : index
    %c0_0 = arith.constant 0 : index
    %0 = vector.load %arg1[%c0, %c0_0] : memref<128x27xbf16, #tpu.memory_space<vmem>>, vector<128x27xbf16>
    %c0_1 = arith.constant 0 : index
    %c0_2 = arith.constant 0 : index
    %1 = vector.load %arg2[%c0_1, %c0_2] : memref<27x128xbf16, #tpu.memory_space<vmem>>, vector<27x128xbf16>
    %cst = arith.constant dense<0.000000e+00> : vector<128x128xf32>
    %2 = tpu.matmul %0, %1, %cst {dimension_numbers = #tpu.dot_dimension_numbers<[1], [0], [0], [1], [0, 0, 1, 1], [], []>} : vector<128x27xbf16>, vector<27x128xbf16>, vector<128x128xf32> -> vector<128x128xf32>
    %c0_3 = arith.constant 0 : index
    %c0_4 = arith.constant 0 : index
    %3 = vector.load %arg3[%c0_3, %c0_4] : memref<1x128xf32, #tpu.memory_space<vmem>>, vector<1x128xf32>
    %4 = vector.broadcast %3 : vector<1x128xf32> to vector<128x128xf32>
    %5 = arith.addf %2, %4 : vector<128x128xf32>
    %cst_5 = arith.constant 0.000000e+00 : f32
    %6 = vector.broadcast %cst_5 : f32 to vector<128x128xf32>
    %7 = arith.maximumf %5, %6 : vector<128x128xf32>
    %c0_6 = arith.constant 0 : index
    %c0_7 = arith.constant 0 : index
    %8 = vector.load %arg4[%c0_6, %c0_7] : memref<128x128xf32, #tpu.memory_space<vmem>>, vector<128x128xf32>
    tpu.vector_store %arg4[%c0_6, %c0_7], %7 {strides = array<i32>} : memref<128x128xf32, #tpu.memory_space<vmem>>, vector<128x128xf32>,
    return
  }
  func.func @transform_0(%arg0: i32) -> (i32, i32) {
    %c0_i32 = arith.constant 0 : i32
    %c0_i32_0 = arith.constant 0 : i32
    return %arg0, %c0_i32 : i32, i32
  }
  func.func @transform_1(%arg0: i32) -> (i32, i32) {
    %c0_i32 = arith.constant 0 : i32
    %c0_i32_0 = arith.constant 0 : i32
    %c0_i32_1 = arith.constant 0 : i32
    return %c0_i32, %c0_i32_0 : i32, i32
  }
  func.func @transform_2(%arg0: i32) -> (i32, i32) {
    %c0_i32 = arith.constant 0 : i32
    %c0_i32_0 = arith.constant 0 : i32
    %c0_i32_1 = arith.constant 0 : i32
    return %c0_i32, %c0_i32_0 : i32, i32
  }
  func.func @transform_3(%arg0: i32) -> (i32, i32) {
    %c0_i32 = arith.constant 0 : i32
    %c0_i32_0 = arith.constant 0 : i32
    return %arg0, %c0_i32 : i32, i32
  }
}

module attributes {stable_mosaic.version = 11 : i64} {
  func.func @_conv_kernel(%arg0: i32, %arg1: memref<128x144xbf16, #tpu.memory_space<vmem>>, %arg2: memref<144x128xbf16, #tpu.memory_space<vmem>>, %arg3: memref<1x128xf32, #tpu.memory_space<vmem>>, %arg4: memref<128x128xf32, #tpu.memory_space<vmem>>) attributes {dimension_semantics = [#tpu.dimension_semantics<parallel>], iteration_bounds = array<i64: 4>, scalar_prefetch = 0 : i64, scratch_operands = 0 : i64, tpu.core_type = #tpu.core_type<tc>, window_params = [{transform_indices = @transform_0, window_bounds = array<i64: 128, 144>}, {pipeline_mode = #tpu.pipeline_mode<synchronous>, transform_indices = @transform_1, window_bounds = array<i64: 144, 128>}, {pipeline_mode = #tpu.pipeline_mode<synchronous>, transform_indices = @transform_2, window_bounds = array<i64: 1, 128>}, {transform_indices = @transform_3, window_bounds = array<i64: 128, 128>}]} {
    %c0 = arith.constant 0 : index
    %c0_0 = arith.constant 0 : index
    %0 = vector.load %arg1[%c0, %c0_0] : memref<128x144xbf16, #tpu.memory_space<vmem>>, vector<128x144xbf16>
    %c0_1 = arith.constant 0 : index
    %c0_2 = arith.constant 0 : index
    %1 = vector.load %arg2[%c0_1, %c0_2] : memref<144x128xbf16, #tpu.memory_space<vmem>>, vector<144x128xbf16>
    %cst = arith.constant dense<0.000000e+00> : vector<128x128xf32>
    %2 = tpu.matmul %0, %1, %cst {dimension_numbers = #tpu.dot_dimension_numbers<[1], [0], [0], [1], [0, 0, 1, 1], [], []>} : vector<128x144xbf16>, vector<144x128xbf16>, vector<128x128xf32> -> vector<128x128xf32>
    %c0_3 = arith.constant 0 : index
    %c0_4 = arith.constant 0 : index
    %3 = vector.load %arg3[%c0_3, %c0_4] : memref<1x128xf32, #tpu.memory_space<vmem>>, vector<1x128xf32>
    %4 = vector.broadcast %3 : vector<1x128xf32> to vector<128x128xf32>
    %5 = arith.addf %2, %4 : vector<128x128xf32>
    %cst_5 = arith.constant 0.000000e+00 : f32
    %6 = vector.broadcast %cst_5 : f32 to vector<128x128xf32>
    %7 = arith.maximumf %5, %6 : vector<128x128xf32>
    %c0_6 = arith.constant 0 : index
    %c0_7 = arith.constant 0 : index
    %8 = vector.load %arg4[%c0_6, %c0_7] : memref<128x128xf32, #tpu.memory_space<vmem>>, vector<128x128xf32>
    tpu.vector_store %arg4[%c0_6, %c0_7], %7 {strides = array<i32>} : memref<128x128xf32, #tpu.memory_space<vmem>>, vector<128x128xf32>,
    return
  }
  func.func @transform_0(%arg0: i32) -> (i32, i32) {
    %c0_i32 = arith.constant 0 : i32
    %c0_i32_0 = arith.constant 0 : i32
    return %arg0, %c0_i32 : i32, i32
  }
  func.func @transform_1(%arg0: i32) -> (i32, i32) {
    %c0_i32 = arith.constant 0 : i32
    %c0_i32_0 = arith.constant 0 : i32
    %c0_i32_1 = arith.constant 0 : i32
    return %c0_i32, %c0_i32_0 : i32, i32
  }
  func.func @transform_2(%arg0: i32) -> (i32, i32) {
    %c0_i32 = arith.constant 0 : i32
    %c0_i32_0 = arith.constant 0 : i32
    %c0_i32_1 = arith.constant 0 : i32
    return %c0_i32, %c0_i32_0 : i32, i32
  }
  func.func @transform_3(%arg0: i32) -> (i32, i32) {
    %c0_i32 = arith.constant 0 : i32
    %c0_i32_0 = arith.constant 0 : i32
    return %arg0, %c0_i32 : i32, i32
  }
}

module attributes {stable_mosaic.version = 11 : i64} {
  func.func @_conv_res_kernel(%arg0: i32, %arg1: memref<128x144xbf16, #tpu.memory_space<vmem>>, %arg2: memref<144x128xbf16, #tpu.memory_space<vmem>>, %arg3: memref<1x128xf32, #tpu.memory_space<vmem>>, %arg4: memref<128x128xf32, #tpu.memory_space<vmem>>, %arg5: memref<128x128xf32, #tpu.memory_space<vmem>>) attributes {dimension_semantics = [#tpu.dimension_semantics<parallel>], iteration_bounds = array<i64: 4>, scalar_prefetch = 0 : i64, scratch_operands = 0 : i64, tpu.core_type = #tpu.core_type<tc>, window_params = [{transform_indices = @transform_0, window_bounds = array<i64: 128, 144>}, {pipeline_mode = #tpu.pipeline_mode<synchronous>, transform_indices = @transform_1, window_bounds = array<i64: 144, 128>}, {pipeline_mode = #tpu.pipeline_mode<synchronous>, transform_indices = @transform_2, window_bounds = array<i64: 1, 128>}, {transform_indices = @transform_3, window_bounds = array<i64: 128, 128>}, {transform_indices = @transform_4, window_bounds = array<i64: 128, 128>}]} {
    %c0 = arith.constant 0 : index
    %c0_0 = arith.constant 0 : index
    %0 = vector.load %arg1[%c0, %c0_0] : memref<128x144xbf16, #tpu.memory_space<vmem>>, vector<128x144xbf16>
    %c0_1 = arith.constant 0 : index
    %c0_2 = arith.constant 0 : index
    %1 = vector.load %arg2[%c0_1, %c0_2] : memref<144x128xbf16, #tpu.memory_space<vmem>>, vector<144x128xbf16>
    %cst = arith.constant dense<0.000000e+00> : vector<128x128xf32>
    %2 = tpu.matmul %0, %1, %cst {dimension_numbers = #tpu.dot_dimension_numbers<[1], [0], [0], [1], [0, 0, 1, 1], [], []>} : vector<128x144xbf16>, vector<144x128xbf16>, vector<128x128xf32> -> vector<128x128xf32>
    %c0_3 = arith.constant 0 : index
    %c0_4 = arith.constant 0 : index
    %3 = vector.load %arg3[%c0_3, %c0_4] : memref<1x128xf32, #tpu.memory_space<vmem>>, vector<1x128xf32>
    %4 = vector.broadcast %3 : vector<1x128xf32> to vector<128x128xf32>
    %5 = arith.addf %2, %4 : vector<128x128xf32>
    %c0_5 = arith.constant 0 : index
    %c0_6 = arith.constant 0 : index
    %6 = vector.load %arg4[%c0_5, %c0_6] : memref<128x128xf32, #tpu.memory_space<vmem>>, vector<128x128xf32>
    %7 = arith.addf %5, %6 : vector<128x128xf32>
    %c0_7 = arith.constant 0 : index
    %c0_8 = arith.constant 0 : index
    %8 = vector.load %arg5[%c0_7, %c0_8] : memref<128x128xf32, #tpu.memory_space<vmem>>, vector<128x128xf32>
    tpu.vector_store %arg5[%c0_7, %c0_8], %7 {strides = array<i32>} : memref<128x128xf32, #tpu.memory_space<vmem>>, vector<128x128xf32>,
    return
  }
  func.func @transform_0(%arg0: i32) -> (i32, i32) {
    %c0_i32 = arith.constant 0 : i32
    %c0_i32_0 = arith.constant 0 : i32
    return %arg0, %c0_i32 : i32, i32
  }
  func.func @transform_1(%arg0: i32) -> (i32, i32) {
    %c0_i32 = arith.constant 0 : i32
    %c0_i32_0 = arith.constant 0 : i32
    %c0_i32_1 = arith.constant 0 : i32
    return %c0_i32, %c0_i32_0 : i32, i32
  }
  func.func @transform_2(%arg0: i32) -> (i32, i32) {
    %c0_i32 = arith.constant 0 : i32
    %c0_i32_0 = arith.constant 0 : i32
    %c0_i32_1 = arith.constant 0 : i32
    return %c0_i32, %c0_i32_0 : i32, i32
  }
  func.func @transform_3(%arg0: i32) -> (i32, i32) {
    %c0_i32 = arith.constant 0 : i32
    %c0_i32_0 = arith.constant 0 : i32
    return %arg0, %c0_i32 : i32, i32
  }
  func.func @transform_4(%arg0: i32) -> (i32, i32) {
    %c0_i32 = arith.constant 0 : i32
    %c0_i32_0 = arith.constant 0 : i32
    return %arg0, %c0_i32 : i32, i32
  }
}

module attributes {stable_mosaic.version = 11 : i64} {
  func.func @_conv_kernel(%arg0: i32, %arg1: memref<128x144xbf16, #tpu.memory_space<vmem>>, %arg2: memref<144x128xbf16, #tpu.memory_space<vmem>>, %arg3: memref<1x128xf32, #tpu.memory_space<vmem>>, %arg4: memref<128x128xf32, #tpu.memory_space<vmem>>) attributes {dimension_semantics = [#tpu.dimension_semantics<parallel>], iteration_bounds = array<i64: 1>, scalar_prefetch = 0 : i64, scratch_operands = 0 : i64, tpu.core_type = #tpu.core_type<tc>, window_params = [{transform_indices = @transform_0, window_bounds = array<i64: 128, 144>}, {pipeline_mode = #tpu.pipeline_mode<synchronous>, transform_indices = @transform_1, window_bounds = array<i64: 144, 128>}, {pipeline_mode = #tpu.pipeline_mode<synchronous>, transform_indices = @transform_2, window_bounds = array<i64: 1, 128>}, {transform_indices = @transform_3, window_bounds = array<i64: 128, 128>}]} {
    %c0 = arith.constant 0 : index
    %c0_0 = arith.constant 0 : index
    %0 = vector.load %arg1[%c0, %c0_0] : memref<128x144xbf16, #tpu.memory_space<vmem>>, vector<128x144xbf16>
    %c0_1 = arith.constant 0 : index
    %c0_2 = arith.constant 0 : index
    %1 = vector.load %arg2[%c0_1, %c0_2] : memref<144x128xbf16, #tpu.memory_space<vmem>>, vector<144x128xbf16>
    %cst = arith.constant dense<0.000000e+00> : vector<128x128xf32>
    %2 = tpu.matmul %0, %1, %cst {dimension_numbers = #tpu.dot_dimension_numbers<[1], [0], [0], [1], [0, 0, 1, 1], [], []>} : vector<128x144xbf16>, vector<144x128xbf16>, vector<128x128xf32> -> vector<128x128xf32>
    %c0_3 = arith.constant 0 : index
    %c0_4 = arith.constant 0 : index
    %3 = vector.load %arg3[%c0_3, %c0_4] : memref<1x128xf32, #tpu.memory_space<vmem>>, vector<1x128xf32>
    %4 = vector.broadcast %3 : vector<1x128xf32> to vector<128x128xf32>
    %5 = arith.addf %2, %4 : vector<128x128xf32>
    %cst_5 = arith.constant 0.000000e+00 : f32
    %6 = vector.broadcast %cst_5 : f32 to vector<128x128xf32>
    %7 = arith.maximumf %5, %6 : vector<128x128xf32>
    %c0_6 = arith.constant 0 : index
    %c0_7 = arith.constant 0 : index
    %8 = vector.load %arg4[%c0_6, %c0_7] : memref<128x128xf32, #tpu.memory_space<vmem>>, vector<128x128xf32>
    tpu.vector_store %arg4[%c0_6, %c0_7], %7 {strides = array<i32>} : memref<128x128xf32, #tpu.memory_space<vmem>>, vector<128x128xf32>,
    return
  }
  func.func @transform_0(%arg0: i32) -> (i32, i32) {
    %c0_i32 = arith.constant 0 : i32
    %c0_i32_0 = arith.constant 0 : i32
    return %arg0, %c0_i32 : i32, i32
  }
  func.func @transform_1(%arg0: i32) -> (i32, i32) {
    %c0_i32 = arith.constant 0 : i32
    %c0_i32_0 = arith.constant 0 : i32
    %c0_i32_1 = arith.constant 0 : i32
    return %c0_i32, %c0_i32_0 : i32, i32
  }
  func.func @transform_2(%arg0: i32) -> (i32, i32) {
    %c0_i32 = arith.constant 0 : i32
    %c0_i32_0 = arith.constant 0 : i32
    %c0_i32_1 = arith.constant 0 : i32
    return %c0_i32, %c0_i32_0 : i32, i32
  }
  func.func @transform_3(%arg0: i32) -> (i32, i32) {
    %c0_i32 = arith.constant 0 : i32
    %c0_i32_0 = arith.constant 0 : i32
    return %arg0, %c0_i32 : i32, i32
  }
}

module attributes {stable_mosaic.version = 11 : i64} {
  func.func @_conv_kernel(%arg0: i32, %arg1: memref<128x16xbf16, #tpu.memory_space<vmem>>, %arg2: memref<16x128xbf16, #tpu.memory_space<vmem>>, %arg3: memref<1x128xf32, #tpu.memory_space<vmem>>, %arg4: memref<128x128xf32, #tpu.memory_space<vmem>>) attributes {dimension_semantics = [#tpu.dimension_semantics<parallel>], iteration_bounds = array<i64: 1>, scalar_prefetch = 0 : i64, scratch_operands = 0 : i64, tpu.core_type = #tpu.core_type<tc>, window_params = [{transform_indices = @transform_0, window_bounds = array<i64: 128, 16>}, {pipeline_mode = #tpu.pipeline_mode<synchronous>, transform_indices = @transform_1, window_bounds = array<i64: 16, 128>}, {pipeline_mode = #tpu.pipeline_mode<synchronous>, transform_indices = @transform_2, window_bounds = array<i64: 1, 128>}, {transform_indices = @transform_3, window_bounds = array<i64: 128, 128>}]} {
    %c0 = arith.constant 0 : index
    %c0_0 = arith.constant 0 : index
    %0 = vector.load %arg1[%c0, %c0_0] : memref<128x16xbf16, #tpu.memory_space<vmem>>, vector<128x16xbf16>
    %c0_1 = arith.constant 0 : index
    %c0_2 = arith.constant 0 : index
    %1 = vector.load %arg2[%c0_1, %c0_2] : memref<16x128xbf16, #tpu.memory_space<vmem>>, vector<16x128xbf16>
    %cst = arith.constant dense<0.000000e+00> : vector<128x128xf32>
    %2 = tpu.matmul %0, %1, %cst {dimension_numbers = #tpu.dot_dimension_numbers<[1], [0], [0], [1], [0, 0, 1, 1], [], []>} : vector<128x16xbf16>, vector<16x128xbf16>, vector<128x128xf32> -> vector<128x128xf32>
    %c0_3 = arith.constant 0 : index
    %c0_4 = arith.constant 0 : index
    %3 = vector.load %arg3[%c0_3, %c0_4] : memref<1x128xf32, #tpu.memory_space<vmem>>, vector<1x128xf32>
    %4 = vector.broadcast %3 : vector<1x128xf32> to vector<128x128xf32>
    %5 = arith.addf %2, %4 : vector<128x128xf32>
    %c0_5 = arith.constant 0 : index
    %c0_6 = arith.constant 0 : index
    %6 = vector.load %arg4[%c0_5, %c0_6] : memref<128x128xf32, #tpu.memory_space<vmem>>, vector<128x128xf32>
    tpu.vector_store %arg4[%c0_5, %c0_6], %5 {strides = array<i32>} : memref<128x128xf32, #tpu.memory_space<vmem>>, vector<128x128xf32>,
    return
  }
  func.func @transform_0(%arg0: i32) -> (i32, i32) {
    %c0_i32 = arith.constant 0 : i32
    %c0_i32_0 = arith.constant 0 : i32
    return %arg0, %c0_i32 : i32, i32
  }
  func.func @transform_1(%arg0: i32) -> (i32, i32) {
    %c0_i32 = arith.constant 0 : i32
    %c0_i32_0 = arith.constant 0 : i32
    %c0_i32_1 = arith.constant 0 : i32
    return %c0_i32, %c0_i32_0 : i32, i32
  }
  func.func @transform_2(%arg0: i32) -> (i32, i32) {
    %c0_i32 = arith.constant 0 : i32
    %c0_i32_0 = arith.constant 0 : i32
    %c0_i32_1 = arith.constant 0 : i32
    return %c0_i32, %c0_i32_0 : i32, i32
  }
  func.func @transform_3(%arg0: i32) -> (i32, i32) {
    %c0_i32 = arith.constant 0 : i32
    %c0_i32_0 = arith.constant 0 : i32
    return %arg0, %c0_i32 : i32, i32
  }
}

module attributes {stable_mosaic.version = 11 : i64} {
  func.func @_conv_res_kernel(%arg0: i32, %arg1: memref<128x288xbf16, #tpu.memory_space<vmem>>, %arg2: memref<288x128xbf16, #tpu.memory_space<vmem>>, %arg3: memref<1x128xf32, #tpu.memory_space<vmem>>, %arg4: memref<128x128xf32, #tpu.memory_space<vmem>>, %arg5: memref<128x128xf32, #tpu.memory_space<vmem>>) attributes {dimension_semantics = [#tpu.dimension_semantics<parallel>], iteration_bounds = array<i64: 1>, scalar_prefetch = 0 : i64, scratch_operands = 0 : i64, tpu.core_type = #tpu.core_type<tc>, window_params = [{transform_indices = @transform_0, window_bounds = array<i64: 128, 288>}, {pipeline_mode = #tpu.pipeline_mode<synchronous>, transform_indices = @transform_1, window_bounds = array<i64: 288, 128>}, {pipeline_mode = #tpu.pipeline_mode<synchronous>, transform_indices = @transform_2, window_bounds = array<i64: 1, 128>}, {transform_indices = @transform_3, window_bounds = array<i64: 128, 128>}, {transform_indices = @transform_4, window_bounds = array<i64: 128, 128>}]} {
    %c0 = arith.constant 0 : index
    %c0_0 = arith.constant 0 : index
    %0 = vector.load %arg1[%c0, %c0_0] : memref<128x288xbf16, #tpu.memory_space<vmem>>, vector<128x288xbf16>
    %c0_1 = arith.constant 0 : index
    %c0_2 = arith.constant 0 : index
    %1 = vector.load %arg2[%c0_1, %c0_2] : memref<288x128xbf16, #tpu.memory_space<vmem>>, vector<288x128xbf16>
    %cst = arith.constant dense<0.000000e+00> : vector<128x128xf32>
    %2 = tpu.matmul %0, %1, %cst {dimension_numbers = #tpu.dot_dimension_numbers<[1], [0], [0], [1], [0, 0, 1, 1], [], []>} : vector<128x288xbf16>, vector<288x128xbf16>, vector<128x128xf32> -> vector<128x128xf32>
    %c0_3 = arith.constant 0 : index
    %c0_4 = arith.constant 0 : index
    %3 = vector.load %arg3[%c0_3, %c0_4] : memref<1x128xf32, #tpu.memory_space<vmem>>, vector<1x128xf32>
    %4 = vector.broadcast %3 : vector<1x128xf32> to vector<128x128xf32>
    %5 = arith.addf %2, %4 : vector<128x128xf32>
    %c0_5 = arith.constant 0 : index
    %c0_6 = arith.constant 0 : index
    %6 = vector.load %arg4[%c0_5, %c0_6] : memref<128x128xf32, #tpu.memory_space<vmem>>, vector<128x128xf32>
    %7 = arith.addf %5, %6 : vector<128x128xf32>
    %c0_7 = arith.constant 0 : index
    %c0_8 = arith.constant 0 : index
    %8 = vector.load %arg5[%c0_7, %c0_8] : memref<128x128xf32, #tpu.memory_space<vmem>>, vector<128x128xf32>
    tpu.vector_store %arg5[%c0_7, %c0_8], %7 {strides = array<i32>} : memref<128x128xf32, #tpu.memory_space<vmem>>, vector<128x128xf32>,
    return
  }
  func.func @transform_0(%arg0: i32) -> (i32, i32) {
    %c0_i32 = arith.constant 0 : i32
    %c0_i32_0 = arith.constant 0 : i32
    return %arg0, %c0_i32 : i32, i32
  }
  func.func @transform_1(%arg0: i32) -> (i32, i32) {
    %c0_i32 = arith.constant 0 : i32
    %c0_i32_0 = arith.constant 0 : i32
    %c0_i32_1 = arith.constant 0 : i32
    return %c0_i32, %c0_i32_0 : i32, i32
  }
  func.func @transform_2(%arg0: i32) -> (i32, i32) {
    %c0_i32 = arith.constant 0 : i32
    %c0_i32_0 = arith.constant 0 : i32
    %c0_i32_1 = arith.constant 0 : i32
    return %c0_i32, %c0_i32_0 : i32, i32
  }
  func.func @transform_3(%arg0: i32) -> (i32, i32) {
    %c0_i32 = arith.constant 0 : i32
    %c0_i32_0 = arith.constant 0 : i32
    return %arg0, %c0_i32 : i32, i32
  }
  func.func @transform_4(%arg0: i32) -> (i32, i32) {
    %c0_i32 = arith.constant 0 : i32
    %c0_i32_0 = arith.constant 0 : i32
    return %arg0, %c0_i32 : i32, i32
  }
}

module attributes {stable_mosaic.version = 11 : i64} {
  func.func @_conv_kernel(%arg0: i32, %arg1: memref<128x288xbf16, #tpu.memory_space<vmem>>, %arg2: memref<288x128xbf16, #tpu.memory_space<vmem>>, %arg3: memref<1x128xf32, #tpu.memory_space<vmem>>, %arg4: memref<128x128xf32, #tpu.memory_space<vmem>>) attributes {dimension_semantics = [#tpu.dimension_semantics<parallel>], iteration_bounds = array<i64: 1>, scalar_prefetch = 0 : i64, scratch_operands = 0 : i64, tpu.core_type = #tpu.core_type<tc>, window_params = [{transform_indices = @transform_0, window_bounds = array<i64: 128, 288>}, {pipeline_mode = #tpu.pipeline_mode<synchronous>, transform_indices = @transform_1, window_bounds = array<i64: 288, 128>}, {pipeline_mode = #tpu.pipeline_mode<synchronous>, transform_indices = @transform_2, window_bounds = array<i64: 1, 128>}, {transform_indices = @transform_3, window_bounds = array<i64: 128, 128>}]} {
    %c0 = arith.constant 0 : index
    %c0_0 = arith.constant 0 : index
    %0 = vector.load %arg1[%c0, %c0_0] : memref<128x288xbf16, #tpu.memory_space<vmem>>, vector<128x288xbf16>
    %c0_1 = arith.constant 0 : index
    %c0_2 = arith.constant 0 : index
    %1 = vector.load %arg2[%c0_1, %c0_2] : memref<288x128xbf16, #tpu.memory_space<vmem>>, vector<288x128xbf16>
    %cst = arith.constant dense<0.000000e+00> : vector<128x128xf32>
    %2 = tpu.matmul %0, %1, %cst {dimension_numbers = #tpu.dot_dimension_numbers<[1], [0], [0], [1], [0, 0, 1, 1], [], []>} : vector<128x288xbf16>, vector<288x128xbf16>, vector<128x128xf32> -> vector<128x128xf32>
    %c0_3 = arith.constant 0 : index
    %c0_4 = arith.constant 0 : index
    %3 = vector.load %arg3[%c0_3, %c0_4] : memref<1x128xf32, #tpu.memory_space<vmem>>, vector<1x128xf32>
    %4 = vector.broadcast %3 : vector<1x128xf32> to vector<128x128xf32>
    %5 = arith.addf %2, %4 : vector<128x128xf32>
    %cst_5 = arith.constant 0.000000e+00 : f32
    %6 = vector.broadcast %cst_5 : f32 to vector<128x128xf32>
    %7 = arith.maximumf %5, %6 : vector<128x128xf32>
    %c0_6 = arith.constant 0 : index
    %c0_7 = arith.constant 0 : index
    %8 = vector.load %arg4[%c0_6, %c0_7] : memref<128x128xf32, #tpu.memory_space<vmem>>, vector<128x128xf32>
    tpu.vector_store %arg4[%c0_6, %c0_7], %7 {strides = array<i32>} : memref<128x128xf32, #tpu.memory_space<vmem>>, vector<128x128xf32>,
    return
  }
  func.func @transform_0(%arg0: i32) -> (i32, i32) {
    %c0_i32 = arith.constant 0 : i32
    %c0_i32_0 = arith.constant 0 : i32
    return %arg0, %c0_i32 : i32, i32
  }
  func.func @transform_1(%arg0: i32) -> (i32, i32) {
    %c0_i32 = arith.constant 0 : i32
    %c0_i32_0 = arith.constant 0 : i32
    %c0_i32_1 = arith.constant 0 : i32
    return %c0_i32, %c0_i32_0 : i32, i32
  }
  func.func @transform_2(%arg0: i32) -> (i32, i32) {
    %c0_i32 = arith.constant 0 : i32
    %c0_i32_0 = arith.constant 0 : i32
    %c0_i32_1 = arith.constant 0 : i32
    return %c0_i32, %c0_i32_0 : i32, i32
  }
  func.func @transform_3(%arg0: i32) -> (i32, i32) {
    %c0_i32 = arith.constant 0 : i32
    %c0_i32_0 = arith.constant 0 : i32
    return %arg0, %c0_i32 : i32, i32
  }
}

module attributes {stable_mosaic.version = 11 : i64} {
  func.func @_conv_kernel(%arg0: i32, %arg1: memref<32x288xbf16, #tpu.memory_space<vmem>>, %arg2: memref<288x128xbf16, #tpu.memory_space<vmem>>, %arg3: memref<1x128xf32, #tpu.memory_space<vmem>>, %arg4: memref<32x128xf32, #tpu.memory_space<vmem>>) attributes {dimension_semantics = [#tpu.dimension_semantics<parallel>], iteration_bounds = array<i64: 1>, scalar_prefetch = 0 : i64, scratch_operands = 0 : i64, tpu.core_type = #tpu.core_type<tc>, window_params = [{transform_indices = @transform_0, window_bounds = array<i64: 32, 288>}, {pipeline_mode = #tpu.pipeline_mode<synchronous>, transform_indices = @transform_1, window_bounds = array<i64: 288, 128>}, {pipeline_mode = #tpu.pipeline_mode<synchronous>, transform_indices = @transform_2, window_bounds = array<i64: 1, 128>}, {transform_indices = @transform_3, window_bounds = array<i64: 32, 128>}]} {
    %c0 = arith.constant 0 : index
    %c0_0 = arith.constant 0 : index
    %0 = vector.load %arg1[%c0, %c0_0] : memref<32x288xbf16, #tpu.memory_space<vmem>>, vector<32x288xbf16>
    %c0_1 = arith.constant 0 : index
    %c0_2 = arith.constant 0 : index
    %1 = vector.load %arg2[%c0_1, %c0_2] : memref<288x128xbf16, #tpu.memory_space<vmem>>, vector<288x128xbf16>
    %cst = arith.constant dense<0.000000e+00> : vector<32x128xf32>
    %2 = tpu.matmul %0, %1, %cst {dimension_numbers = #tpu.dot_dimension_numbers<[1], [0], [0], [1], [0, 0, 1, 1], [], []>} : vector<32x288xbf16>, vector<288x128xbf16>, vector<32x128xf32> -> vector<32x128xf32>
    %c0_3 = arith.constant 0 : index
    %c0_4 = arith.constant 0 : index
    %3 = vector.load %arg3[%c0_3, %c0_4] : memref<1x128xf32, #tpu.memory_space<vmem>>, vector<1x128xf32>
    %4 = vector.broadcast %3 : vector<1x128xf32> to vector<32x128xf32>
    %5 = arith.addf %2, %4 : vector<32x128xf32>
    %cst_5 = arith.constant 0.000000e+00 : f32
    %6 = vector.broadcast %cst_5 : f32 to vector<32x128xf32>
    %7 = arith.maximumf %5, %6 : vector<32x128xf32>
    %c0_6 = arith.constant 0 : index
    %c0_7 = arith.constant 0 : index
    %8 = vector.load %arg4[%c0_6, %c0_7] : memref<32x128xf32, #tpu.memory_space<vmem>>, vector<32x128xf32>
    tpu.vector_store %arg4[%c0_6, %c0_7], %7 {strides = array<i32>} : memref<32x128xf32, #tpu.memory_space<vmem>>, vector<32x128xf32>,
    return
  }
  func.func @transform_0(%arg0: i32) -> (i32, i32) {
    %c0_i32 = arith.constant 0 : i32
    %c0_i32_0 = arith.constant 0 : i32
    return %arg0, %c0_i32 : i32, i32
  }
  func.func @transform_1(%arg0: i32) -> (i32, i32) {
    %c0_i32 = arith.constant 0 : i32
    %c0_i32_0 = arith.constant 0 : i32
    %c0_i32_1 = arith.constant 0 : i32
    return %c0_i32, %c0_i32_0 : i32, i32
  }
  func.func @transform_2(%arg0: i32) -> (i32, i32) {
    %c0_i32 = arith.constant 0 : i32
    %c0_i32_0 = arith.constant 0 : i32
    %c0_i32_1 = arith.constant 0 : i32
    return %c0_i32, %c0_i32_0 : i32, i32
  }
  func.func @transform_3(%arg0: i32) -> (i32, i32) {
    %c0_i32 = arith.constant 0 : i32
    %c0_i32_0 = arith.constant 0 : i32
    return %arg0, %c0_i32 : i32, i32
  }
}

module attributes {stable_mosaic.version = 11 : i64} {
  func.func @_conv_kernel(%arg0: i32, %arg1: memref<32x32xbf16, #tpu.memory_space<vmem>>, %arg2: memref<32x128xbf16, #tpu.memory_space<vmem>>, %arg3: memref<1x128xf32, #tpu.memory_space<vmem>>, %arg4: memref<32x128xf32, #tpu.memory_space<vmem>>) attributes {dimension_semantics = [#tpu.dimension_semantics<parallel>], iteration_bounds = array<i64: 1>, scalar_prefetch = 0 : i64, scratch_operands = 0 : i64, tpu.core_type = #tpu.core_type<tc>, window_params = [{transform_indices = @transform_0, window_bounds = array<i64: 32, 32>}, {pipeline_mode = #tpu.pipeline_mode<synchronous>, transform_indices = @transform_1, window_bounds = array<i64: 32, 128>}, {pipeline_mode = #tpu.pipeline_mode<synchronous>, transform_indices = @transform_2, window_bounds = array<i64: 1, 128>}, {transform_indices = @transform_3, window_bounds = array<i64: 32, 128>}]} {
    %c0 = arith.constant 0 : index
    %c0_0 = arith.constant 0 : index
    %0 = vector.load %arg1[%c0, %c0_0] : memref<32x32xbf16, #tpu.memory_space<vmem>>, vector<32x32xbf16>
    %c0_1 = arith.constant 0 : index
    %c0_2 = arith.constant 0 : index
    %1 = vector.load %arg2[%c0_1, %c0_2] : memref<32x128xbf16, #tpu.memory_space<vmem>>, vector<32x128xbf16>
    %cst = arith.constant dense<0.000000e+00> : vector<32x128xf32>
    %2 = tpu.matmul %0, %1, %cst {dimension_numbers = #tpu.dot_dimension_numbers<[1], [0], [0], [1], [0, 0, 1, 1], [], []>} : vector<32x32xbf16>, vector<32x128xbf16>, vector<32x128xf32> -> vector<32x128xf32>
    %c0_3 = arith.constant 0 : index
    %c0_4 = arith.constant 0 : index
    %3 = vector.load %arg3[%c0_3, %c0_4] : memref<1x128xf32, #tpu.memory_space<vmem>>, vector<1x128xf32>
    %4 = vector.broadcast %3 : vector<1x128xf32> to vector<32x128xf32>
    %5 = arith.addf %2, %4 : vector<32x128xf32>
    %c0_5 = arith.constant 0 : index
    %c0_6 = arith.constant 0 : index
    %6 = vector.load %arg4[%c0_5, %c0_6] : memref<32x128xf32, #tpu.memory_space<vmem>>, vector<32x128xf32>
    tpu.vector_store %arg4[%c0_5, %c0_6], %5 {strides = array<i32>} : memref<32x128xf32, #tpu.memory_space<vmem>>, vector<32x128xf32>,
    return
  }
  func.func @transform_0(%arg0: i32) -> (i32, i32) {
    %c0_i32 = arith.constant 0 : i32
    %c0_i32_0 = arith.constant 0 : i32
    return %arg0, %c0_i32 : i32, i32
  }
  func.func @transform_1(%arg0: i32) -> (i32, i32) {
    %c0_i32 = arith.constant 0 : i32
    %c0_i32_0 = arith.constant 0 : i32
    %c0_i32_1 = arith.constant 0 : i32
    return %c0_i32, %c0_i32_0 : i32, i32
  }
  func.func @transform_2(%arg0: i32) -> (i32, i32) {
    %c0_i32 = arith.constant 0 : i32
    %c0_i32_0 = arith.constant 0 : i32
    %c0_i32_1 = arith.constant 0 : i32
    return %c0_i32, %c0_i32_0 : i32, i32
  }
  func.func @transform_3(%arg0: i32) -> (i32, i32) {
    %c0_i32 = arith.constant 0 : i32
    %c0_i32_0 = arith.constant 0 : i32
    return %arg0, %c0_i32 : i32, i32
  }
}

module attributes {stable_mosaic.version = 11 : i64} {
  func.func @_conv_res_kernel(%arg0: i32, %arg1: memref<32x576xbf16, #tpu.memory_space<vmem>>, %arg2: memref<576x128xbf16, #tpu.memory_space<vmem>>, %arg3: memref<1x128xf32, #tpu.memory_space<vmem>>, %arg4: memref<32x128xf32, #tpu.memory_space<vmem>>, %arg5: memref<32x128xf32, #tpu.memory_space<vmem>>) attributes {dimension_semantics = [#tpu.dimension_semantics<parallel>], iteration_bounds = array<i64: 1>, scalar_prefetch = 0 : i64, scratch_operands = 0 : i64, tpu.core_type = #tpu.core_type<tc>, window_params = [{transform_indices = @transform_0, window_bounds = array<i64: 32, 576>}, {pipeline_mode = #tpu.pipeline_mode<synchronous>, transform_indices = @transform_1, window_bounds = array<i64: 576, 128>}, {pipeline_mode = #tpu.pipeline_mode<synchronous>, transform_indices = @transform_2, window_bounds = array<i64: 1, 128>}, {transform_indices = @transform_3, window_bounds = array<i64: 32, 128>}, {transform_indices = @transform_4, window_bounds = array<i64: 32, 128>}]} {
    %c0 = arith.constant 0 : index
    %c0_0 = arith.constant 0 : index
    %0 = vector.load %arg1[%c0, %c0_0] : memref<32x576xbf16, #tpu.memory_space<vmem>>, vector<32x576xbf16>
    %c0_1 = arith.constant 0 : index
    %c0_2 = arith.constant 0 : index
    %1 = vector.load %arg2[%c0_1, %c0_2] : memref<576x128xbf16, #tpu.memory_space<vmem>>, vector<576x128xbf16>
    %cst = arith.constant dense<0.000000e+00> : vector<32x128xf32>
    %2 = tpu.matmul %0, %1, %cst {dimension_numbers = #tpu.dot_dimension_numbers<[1], [0], [0], [1], [0, 0, 1, 1], [], []>} : vector<32x576xbf16>, vector<576x128xbf16>, vector<32x128xf32> -> vector<32x128xf32>
    %c0_3 = arith.constant 0 : index
    %c0_4 = arith.constant 0 : index
    %3 = vector.load %arg3[%c0_3, %c0_4] : memref<1x128xf32, #tpu.memory_space<vmem>>, vector<1x128xf32>
    %4 = vector.broadcast %3 : vector<1x128xf32> to vector<32x128xf32>
    %5 = arith.addf %2, %4 : vector<32x128xf32>
    %c0_5 = arith.constant 0 : index
    %c0_6 = arith.constant 0 : index
    %6 = vector.load %arg4[%c0_5, %c0_6] : memref<32x128xf32, #tpu.memory_space<vmem>>, vector<32x128xf32>
    %7 = arith.addf %5, %6 : vector<32x128xf32>
    %c0_7 = arith.constant 0 : index
    %c0_8 = arith.constant 0 : index
    %8 = vector.load %arg5[%c0_7, %c0_8] : memref<32x128xf32, #tpu.memory_space<vmem>>, vector<32x128xf32>
    tpu.vector_store %arg5[%c0_7, %c0_8], %7 {strides = array<i32>} : memref<32x128xf32, #tpu.memory_space<vmem>>, vector<32x128xf32>,
    return
  }
  func.func @transform_0(%arg0: i32) -> (i32, i32) {
    %c0_i32 = arith.constant 0 : i32
    %c0_i32_0 = arith.constant 0 : i32
    return %arg0, %c0_i32 : i32, i32
  }
  func.func @transform_1(%arg0: i32) -> (i32, i32) {
    %c0_i32 = arith.constant 0 : i32
    %c0_i32_0 = arith.constant 0 : i32
    %c0_i32_1 = arith.constant 0 : i32
    return %c0_i32, %c0_i32_0 : i32, i32
  }
  func.func @transform_2(%arg0: i32) -> (i32, i32) {
    %c0_i32 = arith.constant 0 : i32
    %c0_i32_0 = arith.constant 0 : i32
    %c0_i32_1 = arith.constant 0 : i32
    return %c0_i32, %c0_i32_0 : i32, i32
  }
  func.func @transform_3(%arg0: i32) -> (i32, i32) {
    %c0_i32 = arith.constant 0 : i32
    %c0_i32_0 = arith.constant 0 : i32
    return %arg0, %c0_i32 : i32, i32
  }
  func.func @transform_4(%arg0: i32) -> (i32, i32) {
    %c0_i32 = arith.constant 0 : i32
    %c0_i32_0 = arith.constant 0 : i32
    return %arg0, %c0_i32 : i32, i32
  }
}

module attributes {stable_mosaic.version = 11 : i64} {
  func.func @_conv_kernel(%arg0: i32, %arg1: memref<32x576xbf16, #tpu.memory_space<vmem>>, %arg2: memref<576x128xbf16, #tpu.memory_space<vmem>>, %arg3: memref<1x128xf32, #tpu.memory_space<vmem>>, %arg4: memref<32x128xf32, #tpu.memory_space<vmem>>) attributes {dimension_semantics = [#tpu.dimension_semantics<parallel>], iteration_bounds = array<i64: 1>, scalar_prefetch = 0 : i64, scratch_operands = 0 : i64, tpu.core_type = #tpu.core_type<tc>, window_params = [{transform_indices = @transform_0, window_bounds = array<i64: 32, 576>}, {pipeline_mode = #tpu.pipeline_mode<synchronous>, transform_indices = @transform_1, window_bounds = array<i64: 576, 128>}, {pipeline_mode = #tpu.pipeline_mode<synchronous>, transform_indices = @transform_2, window_bounds = array<i64: 1, 128>}, {transform_indices = @transform_3, window_bounds = array<i64: 32, 128>}]} {
    %c0 = arith.constant 0 : index
    %c0_0 = arith.constant 0 : index
    %0 = vector.load %arg1[%c0, %c0_0] : memref<32x576xbf16, #tpu.memory_space<vmem>>, vector<32x576xbf16>
    %c0_1 = arith.constant 0 : index
    %c0_2 = arith.constant 0 : index
    %1 = vector.load %arg2[%c0_1, %c0_2] : memref<576x128xbf16, #tpu.memory_space<vmem>>, vector<576x128xbf16>
    %cst = arith.constant dense<0.000000e+00> : vector<32x128xf32>
    %2 = tpu.matmul %0, %1, %cst {dimension_numbers = #tpu.dot_dimension_numbers<[1], [0], [0], [1], [0, 0, 1, 1], [], []>} : vector<32x576xbf16>, vector<576x128xbf16>, vector<32x128xf32> -> vector<32x128xf32>
    %c0_3 = arith.constant 0 : index
    %c0_4 = arith.constant 0 : index
    %3 = vector.load %arg3[%c0_3, %c0_4] : memref<1x128xf32, #tpu.memory_space<vmem>>, vector<1x128xf32>
    %4 = vector.broadcast %3 : vector<1x128xf32> to vector<32x128xf32>
    %5 = arith.addf %2, %4 : vector<32x128xf32>
    %cst_5 = arith.constant 0.000000e+00 : f32
    %6 = vector.broadcast %cst_5 : f32 to vector<32x128xf32>
    %7 = arith.maximumf %5, %6 : vector<32x128xf32>
    %c0_6 = arith.constant 0 : index
    %c0_7 = arith.constant 0 : index
    %8 = vector.load %arg4[%c0_6, %c0_7] : memref<32x128xf32, #tpu.memory_space<vmem>>, vector<32x128xf32>
    tpu.vector_store %arg4[%c0_6, %c0_7], %7 {strides = array<i32>} : memref<32x128xf32, #tpu.memory_space<vmem>>, vector<32x128xf32>,
    return
  }
  func.func @transform_0(%arg0: i32) -> (i32, i32) {
    %c0_i32 = arith.constant 0 : i32
    %c0_i32_0 = arith.constant 0 : i32
    return %arg0, %c0_i32 : i32, i32
  }
  func.func @transform_1(%arg0: i32) -> (i32, i32) {
    %c0_i32 = arith.constant 0 : i32
    %c0_i32_0 = arith.constant 0 : i32
    %c0_i32_1 = arith.constant 0 : i32
    return %c0_i32, %c0_i32_0 : i32, i32
  }
  func.func @transform_2(%arg0: i32) -> (i32, i32) {
    %c0_i32 = arith.constant 0 : i32
    %c0_i32_0 = arith.constant 0 : i32
    %c0_i32_1 = arith.constant 0 : i32
    return %c0_i32, %c0_i32_0 : i32, i32
  }
  func.func @transform_3(%arg0: i32) -> (i32, i32) {
    %c0_i32 = arith.constant 0 : i32
    %c0_i32_0 = arith.constant 0 : i32
    return %arg0, %c0_i32 : i32, i32
  }
}

module attributes {stable_mosaic.version = 11 : i64} {
  func.func @_conv_kernel(%arg0: i32, %arg1: memref<8x576xbf16, #tpu.memory_space<vmem>>, %arg2: memref<576x128xbf16, #tpu.memory_space<vmem>>, %arg3: memref<1x128xf32, #tpu.memory_space<vmem>>, %arg4: memref<8x128xf32, #tpu.memory_space<vmem>>) attributes {dimension_semantics = [#tpu.dimension_semantics<parallel>], iteration_bounds = array<i64: 1>, scalar_prefetch = 0 : i64, scratch_operands = 0 : i64, tpu.core_type = #tpu.core_type<tc>, window_params = [{transform_indices = @transform_0, window_bounds = array<i64: 8, 576>}, {pipeline_mode = #tpu.pipeline_mode<synchronous>, transform_indices = @transform_1, window_bounds = array<i64: 576, 128>}, {pipeline_mode = #tpu.pipeline_mode<synchronous>, transform_indices = @transform_2, window_bounds = array<i64: 1, 128>}, {transform_indices = @transform_3, window_bounds = array<i64: 8, 128>}]} {
    %c0 = arith.constant 0 : index
    %c0_0 = arith.constant 0 : index
    %0 = vector.load %arg1[%c0, %c0_0] : memref<8x576xbf16, #tpu.memory_space<vmem>>, vector<8x576xbf16>
    %c0_1 = arith.constant 0 : index
    %c0_2 = arith.constant 0 : index
    %1 = vector.load %arg2[%c0_1, %c0_2] : memref<576x128xbf16, #tpu.memory_space<vmem>>, vector<576x128xbf16>
    %cst = arith.constant dense<0.000000e+00> : vector<8x128xf32>
    %2 = tpu.matmul %0, %1, %cst {dimension_numbers = #tpu.dot_dimension_numbers<[1], [0], [0], [1], [0, 0, 1, 1], [], []>} : vector<8x576xbf16>, vector<576x128xbf16>, vector<8x128xf32> -> vector<8x128xf32>
    %c0_3 = arith.constant 0 : index
    %c0_4 = arith.constant 0 : index
    %3 = vector.load %arg3[%c0_3, %c0_4] : memref<1x128xf32, #tpu.memory_space<vmem>>, vector<1x128xf32>
    %4 = vector.broadcast %3 : vector<1x128xf32> to vector<8x128xf32>
    %5 = arith.addf %2, %4 : vector<8x128xf32>
    %cst_5 = arith.constant 0.000000e+00 : f32
    %6 = vector.broadcast %cst_5 : f32 to vector<8x128xf32>
    %7 = arith.maximumf %5, %6 : vector<8x128xf32>
    %c0_6 = arith.constant 0 : index
    %c0_7 = arith.constant 0 : index
    %8 = vector.load %arg4[%c0_6, %c0_7] : memref<8x128xf32, #tpu.memory_space<vmem>>, vector<8x128xf32>
    tpu.vector_store %arg4[%c0_6, %c0_7], %7 {strides = array<i32>} : memref<8x128xf32, #tpu.memory_space<vmem>>, vector<8x128xf32>,
    return
  }
  func.func @transform_0(%arg0: i32) -> (i32, i32) {
    %c0_i32 = arith.constant 0 : i32
    %c0_i32_0 = arith.constant 0 : i32
    return %arg0, %c0_i32 : i32, i32
  }
  func.func @transform_1(%arg0: i32) -> (i32, i32) {
    %c0_i32 = arith.constant 0 : i32
    %c0_i32_0 = arith.constant 0 : i32
    %c0_i32_1 = arith.constant 0 : i32
    return %c0_i32, %c0_i32_0 : i32, i32
  }
  func.func @transform_2(%arg0: i32) -> (i32, i32) {
    %c0_i32 = arith.constant 0 : i32
    %c0_i32_0 = arith.constant 0 : i32
    %c0_i32_1 = arith.constant 0 : i32
    return %c0_i32, %c0_i32_0 : i32, i32
  }
  func.func @transform_3(%arg0: i32) -> (i32, i32) {
    %c0_i32 = arith.constant 0 : i32
    %c0_i32_0 = arith.constant 0 : i32
    return %arg0, %c0_i32 : i32, i32
  }
}

module attributes {stable_mosaic.version = 11 : i64} {
  func.func @_conv_kernel(%arg0: i32, %arg1: memref<8x64xbf16, #tpu.memory_space<vmem>>, %arg2: memref<64x128xbf16, #tpu.memory_space<vmem>>, %arg3: memref<1x128xf32, #tpu.memory_space<vmem>>, %arg4: memref<8x128xf32, #tpu.memory_space<vmem>>) attributes {dimension_semantics = [#tpu.dimension_semantics<parallel>], iteration_bounds = array<i64: 1>, scalar_prefetch = 0 : i64, scratch_operands = 0 : i64, tpu.core_type = #tpu.core_type<tc>, window_params = [{transform_indices = @transform_0, window_bounds = array<i64: 8, 64>}, {pipeline_mode = #tpu.pipeline_mode<synchronous>, transform_indices = @transform_1, window_bounds = array<i64: 64, 128>}, {pipeline_mode = #tpu.pipeline_mode<synchronous>, transform_indices = @transform_2, window_bounds = array<i64: 1, 128>}, {transform_indices = @transform_3, window_bounds = array<i64: 8, 128>}]} {
    %c0 = arith.constant 0 : index
    %c0_0 = arith.constant 0 : index
    %0 = vector.load %arg1[%c0, %c0_0] : memref<8x64xbf16, #tpu.memory_space<vmem>>, vector<8x64xbf16>
    %c0_1 = arith.constant 0 : index
    %c0_2 = arith.constant 0 : index
    %1 = vector.load %arg2[%c0_1, %c0_2] : memref<64x128xbf16, #tpu.memory_space<vmem>>, vector<64x128xbf16>
    %cst = arith.constant dense<0.000000e+00> : vector<8x128xf32>
    %2 = tpu.matmul %0, %1, %cst {dimension_numbers = #tpu.dot_dimension_numbers<[1], [0], [0], [1], [0, 0, 1, 1], [], []>} : vector<8x64xbf16>, vector<64x128xbf16>, vector<8x128xf32> -> vector<8x128xf32>
    %c0_3 = arith.constant 0 : index
    %c0_4 = arith.constant 0 : index
    %3 = vector.load %arg3[%c0_3, %c0_4] : memref<1x128xf32, #tpu.memory_space<vmem>>, vector<1x128xf32>
    %4 = vector.broadcast %3 : vector<1x128xf32> to vector<8x128xf32>
    %5 = arith.addf %2, %4 : vector<8x128xf32>
    %c0_5 = arith.constant 0 : index
    %c0_6 = arith.constant 0 : index
    %6 = vector.load %arg4[%c0_5, %c0_6] : memref<8x128xf32, #tpu.memory_space<vmem>>, vector<8x128xf32>
    tpu.vector_store %arg4[%c0_5, %c0_6], %5 {strides = array<i32>} : memref<8x128xf32, #tpu.memory_space<vmem>>, vector<8x128xf32>,
    return
  }
  func.func @transform_0(%arg0: i32) -> (i32, i32) {
    %c0_i32 = arith.constant 0 : i32
    %c0_i32_0 = arith.constant 0 : i32
    return %arg0, %c0_i32 : i32, i32
  }
  func.func @transform_1(%arg0: i32) -> (i32, i32) {
    %c0_i32 = arith.constant 0 : i32
    %c0_i32_0 = arith.constant 0 : i32
    %c0_i32_1 = arith.constant 0 : i32
    return %c0_i32, %c0_i32_0 : i32, i32
  }
  func.func @transform_2(%arg0: i32) -> (i32, i32) {
    %c0_i32 = arith.constant 0 : i32
    %c0_i32_0 = arith.constant 0 : i32
    %c0_i32_1 = arith.constant 0 : i32
    return %c0_i32, %c0_i32_0 : i32, i32
  }
  func.func @transform_3(%arg0: i32) -> (i32, i32) {
    %c0_i32 = arith.constant 0 : i32
    %c0_i32_0 = arith.constant 0 : i32
    return %arg0, %c0_i32 : i32, i32
  }
}

module attributes {stable_mosaic.version = 11 : i64} {
  func.func @_conv_res_kernel(%arg0: i32, %arg1: memref<8x1152xbf16, #tpu.memory_space<vmem>>, %arg2: memref<1152x128xbf16, #tpu.memory_space<vmem>>, %arg3: memref<1x128xf32, #tpu.memory_space<vmem>>, %arg4: memref<8x128xf32, #tpu.memory_space<vmem>>, %arg5: memref<8x128xf32, #tpu.memory_space<vmem>>) attributes {dimension_semantics = [#tpu.dimension_semantics<parallel>], iteration_bounds = array<i64: 1>, scalar_prefetch = 0 : i64, scratch_operands = 0 : i64, tpu.core_type = #tpu.core_type<tc>, window_params = [{transform_indices = @transform_0, window_bounds = array<i64: 8, 1152>}, {pipeline_mode = #tpu.pipeline_mode<synchronous>, transform_indices = @transform_1, window_bounds = array<i64: 1152, 128>}, {pipeline_mode = #tpu.pipeline_mode<synchronous>, transform_indices = @transform_2, window_bounds = array<i64: 1, 128>}, {transform_indices = @transform_3, window_bounds = array<i64: 8, 128>}, {transform_indices = @transform_4, window_bounds = array<i64: 8, 128>}]} {
    %c0 = arith.constant 0 : index
    %c0_0 = arith.constant 0 : index
    %0 = vector.load %arg1[%c0, %c0_0] : memref<8x1152xbf16, #tpu.memory_space<vmem>>, vector<8x1152xbf16>
    %c0_1 = arith.constant 0 : index
    %c0_2 = arith.constant 0 : index
    %1 = vector.load %arg2[%c0_1, %c0_2] : memref<1152x128xbf16, #tpu.memory_space<vmem>>, vector<1152x128xbf16>
    %cst = arith.constant dense<0.000000e+00> : vector<8x128xf32>
    %2 = tpu.matmul %0, %1, %cst {dimension_numbers = #tpu.dot_dimension_numbers<[1], [0], [0], [1], [0, 0, 1, 1], [], []>} : vector<8x1152xbf16>, vector<1152x128xbf16>, vector<8x128xf32> -> vector<8x128xf32>
    %c0_3 = arith.constant 0 : index
    %c0_4 = arith.constant 0 : index
    %3 = vector.load %arg3[%c0_3, %c0_4] : memref<1x128xf32, #tpu.memory_space<vmem>>, vector<1x128xf32>
    %4 = vector.broadcast %3 : vector<1x128xf32> to vector<8x128xf32>
    %5 = arith.addf %2, %4 : vector<8x128xf32>
    %c0_5 = arith.constant 0 : index
    %c0_6 = arith.constant 0 : index
    %6 = vector.load %arg4[%c0_5, %c0_6] : memref<8x128xf32, #tpu.memory_space<vmem>>, vector<8x128xf32>
    %7 = arith.addf %5, %6 : vector<8x128xf32>
    %c0_7 = arith.constant 0 : index
    %c0_8 = arith.constant 0 : index
    %8 = vector.load %arg5[%c0_7, %c0_8] : memref<8x128xf32, #tpu.memory_space<vmem>>, vector<8x128xf32>
    tpu.vector_store %arg5[%c0_7, %c0_8], %7 {strides = array<i32>} : memref<8x128xf32, #tpu.memory_space<vmem>>, vector<8x128xf32>,
    return
  }
  func.func @transform_0(%arg0: i32) -> (i32, i32) {
    %c0_i32 = arith.constant 0 : i32
    %c0_i32_0 = arith.constant 0 : i32
    return %arg0, %c0_i32 : i32, i32
  }
  func.func @transform_1(%arg0: i32) -> (i32, i32) {
    %c0_i32 = arith.constant 0 : i32
    %c0_i32_0 = arith.constant 0 : i32
    %c0_i32_1 = arith.constant 0 : i32
    return %c0_i32, %c0_i32_0 : i32, i32
  }
  func.func @transform_2(%arg0: i32) -> (i32, i32) {
    %c0_i32 = arith.constant 0 : i32
    %c0_i32_0 = arith.constant 0 : i32
    %c0_i32_1 = arith.constant 0 : i32
    return %c0_i32, %c0_i32_0 : i32, i32
  }
  func.func @transform_3(%arg0: i32) -> (i32, i32) {
    %c0_i32 = arith.constant 0 : i32
    %c0_i32_0 = arith.constant 0 : i32
    return %arg0, %c0_i32 : i32, i32
  }
  func.func @transform_4(%arg0: i32) -> (i32, i32) {
    %c0_i32 = arith.constant 0 : i32
    %c0_i32_0 = arith.constant 0 : i32
    return %arg0, %c0_i32 : i32, i32
  }
}

module attributes {stable_mosaic.version = 11 : i64} {
  func.func @_conv_kernel(%arg0: i32, %arg1: memref<8x1152xbf16, #tpu.memory_space<vmem>>, %arg2: memref<1152x128xbf16, #tpu.memory_space<vmem>>, %arg3: memref<1x128xf32, #tpu.memory_space<vmem>>, %arg4: memref<8x128xf32, #tpu.memory_space<vmem>>) attributes {dimension_semantics = [#tpu.dimension_semantics<parallel>], iteration_bounds = array<i64: 1>, scalar_prefetch = 0 : i64, scratch_operands = 0 : i64, tpu.core_type = #tpu.core_type<tc>, window_params = [{transform_indices = @transform_0, window_bounds = array<i64: 8, 1152>}, {pipeline_mode = #tpu.pipeline_mode<synchronous>, transform_indices = @transform_1, window_bounds = array<i64: 1152, 128>}, {pipeline_mode = #tpu.pipeline_mode<synchronous>, transform_indices = @transform_2, window_bounds = array<i64: 1, 128>}, {transform_indices = @transform_3, window_bounds = array<i64: 8, 128>}]} {
    %c0 = arith.constant 0 : index
    %c0_0 = arith.constant 0 : index
    %0 = vector.load %arg1[%c0, %c0_0] : memref<8x1152xbf16, #tpu.memory_space<vmem>>, vector<8x1152xbf16>
    %c0_1 = arith.constant 0 : index
    %c0_2 = arith.constant 0 : index
    %1 = vector.load %arg2[%c0_1, %c0_2] : memref<1152x128xbf16, #tpu.memory_space<vmem>>, vector<1152x128xbf16>
    %cst = arith.constant dense<0.000000e+00> : vector<8x128xf32>
    %2 = tpu.matmul %0, %1, %cst {dimension_numbers = #tpu.dot_dimension_numbers<[1], [0], [0], [1], [0, 0, 1, 1], [], []>} : vector<8x1152xbf16>, vector<1152x128xbf16>, vector<8x128xf32> -> vector<8x128xf32>
    %c0_3 = arith.constant 0 : index
    %c0_4 = arith.constant 0 : index
    %3 = vector.load %arg3[%c0_3, %c0_4] : memref<1x128xf32, #tpu.memory_space<vmem>>, vector<1x128xf32>
    %4 = vector.broadcast %3 : vector<1x128xf32> to vector<8x128xf32>
    %5 = arith.addf %2, %4 : vector<8x128xf32>
    %cst_5 = arith.constant 0.000000e+00 : f32
    %6 = vector.broadcast %cst_5 : f32 to vector<8x128xf32>
    %7 = arith.maximumf %5, %6 : vector<8x128xf32>
    %c0_6 = arith.constant 0 : index
    %c0_7 = arith.constant 0 : index
    %8 = vector.load %arg4[%c0_6, %c0_7] : memref<8x128xf32, #tpu.memory_space<vmem>>, vector<8x128xf32>
    tpu.vector_store %arg4[%c0_6, %c0_7], %7 {strides = array<i32>} : memref<8x128xf32, #tpu.memory_space<vmem>>, vector<8x128xf32>,
    return
  }
  func.func @transform_0(%arg0: i32) -> (i32, i32) {
    %c0_i32 = arith.constant 0 : i32
    %c0_i32_0 = arith.constant 0 : i32
    return %arg0, %c0_i32 : i32, i32
  }
  func.func @transform_1(%arg0: i32) -> (i32, i32) {
    %c0_i32 = arith.constant 0 : i32
    %c0_i32_0 = arith.constant 0 : i32
    %c0_i32_1 = arith.constant 0 : i32
    return %c0_i32, %c0_i32_0 : i32, i32
  }
  func.func @transform_2(%arg0: i32) -> (i32, i32) {
    %c0_i32 = arith.constant 0 : i32
    %c0_i32_0 = arith.constant 0 : i32
    %c0_i32_1 = arith.constant 0 : i32
    return %c0_i32, %c0_i32_0 : i32, i32
  }
  func.func @transform_3(%arg0: i32) -> (i32, i32) {
    %c0_i32 = arith.constant 0 : i32
    %c0_i32_0 = arith.constant 0 : i32
    return %arg0, %c0_i32 : i32, i32
  }
}

module attributes {stable_mosaic.version = 11 : i64} {
  func.func @_conv_res_kernel(%arg0: i32, %arg1: memref<8x1152xbf16, #tpu.memory_space<vmem>>, %arg2: memref<1152x128xbf16, #tpu.memory_space<vmem>>, %arg3: memref<1x128xf32, #tpu.memory_space<vmem>>, %arg4: memref<8x128xf32, #tpu.memory_space<vmem>>, %arg5: memref<8x128xf32, #tpu.memory_space<vmem>>) attributes {dimension_semantics = [#tpu.dimension_semantics<parallel>], iteration_bounds = array<i64: 1>, scalar_prefetch = 0 : i64, scratch_operands = 0 : i64, tpu.core_type = #tpu.core_type<tc>, window_params = [{transform_indices = @transform_0, window_bounds = array<i64: 8, 1152>}, {pipeline_mode = #tpu.pipeline_mode<synchronous>, transform_indices = @transform_1, window_bounds = array<i64: 1152, 128>}, {pipeline_mode = #tpu.pipeline_mode<synchronous>, transform_indices = @transform_2, window_bounds = array<i64: 1, 128>}, {transform_indices = @transform_3, window_bounds = array<i64: 8, 128>}, {transform_indices = @transform_4, window_bounds = array<i64: 8, 128>}]} {
    %c0 = arith.constant 0 : index
    %c0_0 = arith.constant 0 : index
    %0 = vector.load %arg1[%c0, %c0_0] : memref<8x1152xbf16, #tpu.memory_space<vmem>>, vector<8x1152xbf16>
    %c0_1 = arith.constant 0 : index
    %c0_2 = arith.constant 0 : index
    %1 = vector.load %arg2[%c0_1, %c0_2] : memref<1152x128xbf16, #tpu.memory_space<vmem>>, vector<1152x128xbf16>
    %cst = arith.constant dense<0.000000e+00> : vector<8x128xf32>
    %2 = tpu.matmul %0, %1, %cst {dimension_numbers = #tpu.dot_dimension_numbers<[1], [0], [0], [1], [0, 0, 1, 1], [], []>} : vector<8x1152xbf16>, vector<1152x128xbf16>, vector<8x128xf32> -> vector<8x128xf32>
    %c0_3 = arith.constant 0 : index
    %c0_4 = arith.constant 0 : index
    %3 = vector.load %arg3[%c0_3, %c0_4] : memref<1x128xf32, #tpu.memory_space<vmem>>, vector<1x128xf32>
    %4 = vector.broadcast %3 : vector<1x128xf32> to vector<8x128xf32>
    %5 = arith.addf %2, %4 : vector<8x128xf32>
    %c0_5 = arith.constant 0 : index
    %c0_6 = arith.constant 0 : index
    %6 = vector.load %arg4[%c0_5, %c0_6] : memref<8x128xf32, #tpu.memory_space<vmem>>, vector<8x128xf32>
    %7 = arith.addf %5, %6 : vector<8x128xf32>
    %c0_7 = arith.constant 0 : index
    %c0_8 = arith.constant 0 : index
    %8 = vector.load %arg5[%c0_7, %c0_8] : memref<8x128xf32, #tpu.memory_space<vmem>>, vector<8x128xf32>
    tpu.vector_store %arg5[%c0_7, %c0_8], %7 {strides = array<i32>} : memref<8x128xf32, #tpu.memory_space<vmem>>, vector<8x128xf32>,
    return
  }
  func.func @transform_0(%arg0: i32) -> (i32, i32) {
    %c0_i32 = arith.constant 0 : i32
    %c0_i32_0 = arith.constant 0 : i32
    return %arg0, %c0_i32 : i32, i32
  }
  func.func @transform_1(%arg0: i32) -> (i32, i32) {
    %c0_i32 = arith.constant 0 : i32
    %c0_i32_0 = arith.constant 0 : i32
    %c0_i32_1 = arith.constant 0 : i32
    return %c0_i32, %c0_i32_0 : i32, i32
  }
  func.func @transform_2(%arg0: i32) -> (i32, i32) {
    %c0_i32 = arith.constant 0 : i32
    %c0_i32_0 = arith.constant 0 : i32
    %c0_i32_1 = arith.constant 0 : i32
    return %c0_i32, %c0_i32_0 : i32, i32
  }
  func.func @transform_3(%arg0: i32) -> (i32, i32) {
    %c0_i32 = arith.constant 0 : i32
    %c0_i32_0 = arith.constant 0 : i32
    return %arg0, %c0_i32 : i32, i32
  }
  func.func @transform_4(%arg0: i32) -> (i32, i32) {
    %c0_i32 = arith.constant 0 : i32
    %c0_i32_0 = arith.constant 0 : i32
    return %arg0, %c0_i32 : i32, i32
  }
}

</mosaic_0001>

<bundles_post_ra>
// kernel: resnet_encoder.20
= control target key start
LH: loop header
LB: loop body
LE: loop exit
PB: predicated region body
PF: predicated region fallthrough
CT: control target
= control target key end

     0   :  { %s582_s12 = smov 0   ;;  %s638_s0 = inlined_call_operand.vmem [shape: bf16[512,27], index: 0, kind: input, shape index: {}]   ;;  %s639_s1 = inlined_call_operand.vmem [shape: bf16[27,128], index: 1, kind: input, shape index: {}]   ;;  %s640_s2 = inlined_call_operand.vmem [shape: f32[1,128], index: 2, kind: input, shape index: {}]   ;;  %s641_s3 = inlined_call_operand.vmem [shape: f32[512,128], index: 3, kind: output, shape index: {}]  }
   0x1 LB: > { %s470_s13 = sadd.s32 4294967295, %s559_s12   ;;  %p474_p0 = scmp.ge.s32.totalorder %s559_s12, 1  ;;  %s559_s12 = sphi %s582_s12, %s13_s12  }
   0x2   : > { %p138_p1 = scmp.lt.s32.totalorder %s559_s12, 5 }
   0x4   : > { %p139_p2 = pnand %p474_p0, %p138_p1 }
   0x5   : > { %v543_v0 = vld [vmem:[%s639_s1] sm:$0xff] (!%p139_p2)   ;;  %vm278_vm0 = vcmask (!%p139_p2), 1044480   ;;  %v544_v1 = vld [vmem:[%s639_s1 + $0x8] sm:$0x3f] (!%p139_p2)   ;;  %vm279_vm1 = vcmask (!%p139_p2), 1045504   ;;  %s475_s18 = sshll.u32 (!%p139_p2), %s470_s13, 4 }
   0x6   : > { %142 = sbr.rel (%p139_p2) target bundleno = 247 (0xf7), region = 32  ;;  %510 = vmatprep.subr.bf16.mxu0 (!%p139_p2), %v543_v0  ;;  %530 = vmatprep.subr.bf16.mxu1 (!%p139_p2), %v543_v0  ;;  %v561_v2 = vmov (!%p139_p2), 65535   ;;  %p163_p3 = scmp.lt.s32.totalorder (!%p139_p2), %s475_s18, 63  ;;  %vm253_vm2 = vcmask (!%p139_p2), 220160   ;;  %v479_v14 = vld [vmem:[%s640_s2] ss:$0 sm:$0xff] (!%p139_p2) }
   0x7   : > { %511 = vmatpush3.bf16.msra.mxu0 (!%p139_p2), %v543_v0  ;;  %532 = vmatpush3.bf16.msra.mxu1 (!%p139_p2), %v543_v0  ;;  %v280_v3 = vsel (!%p139_p2), %vm278_vm0, 4294967295, %v561_v2 }
   0x8   : > { %v281_v4 = vsel (!%p139_p2), %vm279_vm1, %v280_v3, 0 }
   0x9   : > { %v283_v5 = vand.u32 (!%p139_p2), %v544_v1, %v281_v4 }
   0xb   : > { %512 = vmatprep.subr.bf16.mxu0 (!%p139_p2), %v283_v5  ;;  %531 = vmatprep.subr.bf16.mxu1 (!%p139_p2), %v283_v5 }
   0xc   : > { %513 = vmatpush3.bf16.msra.mxu0 (!%p139_p2), %v283_v5  ;;  %533 = vmatpush3.bf16.msra.mxu1 (!%p139_p2), %v283_v5 }
   0xd   : > { %s643_s18 = smov (!%p163_p3, %s475_s18), 63 }
   0xe   : > { %s476_s19 = sshll.u32 %s643_s18, 2  ;;  %s478_s25 = sshll.u32 %s643_s18, 3 }
   0xf   : > { %s166_s22 = scalar_lea.vmem %s638_s0, %s476_s19  ;;  %s617_s28 = scalar_lea.vmem %s641_s3, %s478_s25 }
  0x10   : > { %v545_v6 = vld [vmem:[%s166_s22] sm:$0xff]   ;;  %v547_v8 = vld [vmem:[%s166_s22 + $0x8] sm:$0xff]   ;;  %v549_v10 = vld [vmem:[%s166_s22 + $0x10] sm:$0xff]  }
  0x11   : > { %v546_v7 = vld [vmem:[%s166_s22 + $0x20] sm:$0xff]   ;;  %514 = vmatprep.mubr.msk.bf16.mxu0 %vm253_vm2, %v545_v6  ;;  %v548_v9 = vld [vmem:[%s166_s22 + $0x28] sm:$0xff]   ;;  %v550_v11 = vld [vmem:[%s166_s22 + $0x30] sm:$0xff]  }
  0x12   : > { %522 = vmatprep.mubr.msk.bf16.mxu1 %vm253_vm2, %v546_v7  ;;  %515 = vmatmul.mubr.msk.bf16.vlgmr.msra.gmra.mrb[0].mxu0 %vm253_vm2, %v547_v8  ;;  %v551_v12 = vld [vmem:[%s166_s22 + $0x18] sm:$0xff]  }
  0x13   : > { %523 = vmatmul.mubr.msk.bf16.vlgmr.msra.gmra.mrb[0].mxu1 %vm253_vm2, %v548_v9  ;;  %518 = vmatprep.mubr.msk.bf16.mxu0 %vm253_vm2, %v549_v10  ;;  %v552_v13 = vld [vmem:[%s166_s22 + $0x38] sm:$0xff]  }
  0x14   : > { %526 = vmatprep.mubr.msk.bf16.mxu1 %vm253_vm2, %v550_v11 }
  0x1a   : > { %519 = vmatmul.mubr.msk.bf16.gmra.mrb[4].mxu0 %vm253_vm2, %v551_v12 }
  0x1b   : > { %527 = vmatmul.mubr.msk.bf16.gmra.mrb[4].mxu1 %vm253_vm2, %v552_v13 }
  0xe5   : > { %v516_v15 = vpop.f32.mrb[0].mxu0 }
  0xe6   : > { %v328_v16 = vadd.f32 %v516_v15, %v479_v14  ;;  %v524_v17 = vpop.f32.mrb[0].mxu1  ;;  %v319_v18 = vpop.f32.mrb[1].mxu0 }
  0xe7   : > { %v360_v19 = vadd.f32 %v524_v17, %v479_v14  ;;  %v320_v20 = vadd.f32 %v479_v14, %v319_v18  ;;  %v351_v21 = vpop.f32.mrb[1].mxu1  ;;  %v517_v22 = vpop.f32.mrb[2].mxu0 }
  0xe8   : > { %v384_v23 = vmax.f32 %v328_v16, 0.0  ;;  %v352_v24 = vadd.f32 %v479_v14, %v351_v21  ;;  %v331_v25 = vadd.f32 %v517_v22, %v479_v14  ;;  %v525_v26 = vpop.f32.mrb[2].mxu1  ;;  %v322_v27 = vpop.f32.mrb[3].mxu0 }
  0xe9   : > { %v392_v28 = vmax.f32 %v360_v19, 0.0  ;;  %v382_v29 = vmax.f32 %v320_v20, 0.0  ;;  %v363_v30 = vadd.f32 %v525_v26, %v479_v14  ;;  %v323_v31 = vadd.f32 %v479_v14, %v322_v27  ;;  %v354_v32 = vpop.f32.mrb[3].mxu1 }
  0xea   : > { %400 = vst [vmem:[%s617_s28 + $0x10] sm:$0xff] %v384_v23  ;;  %v390_v33 = vmax.f32 %v352_v24, 0.0  ;;  %v385_v34 = vmax.f32 %v331_v25, 0.0  ;;  %v355_v35 = vadd.f32 %v479_v14, %v354_v32 }
  0xeb   : > { %408 = vst [vmem:[%s617_s28 + $0x50] sm:$0xff] %v392_v28  ;;  %398 = vst [vmem:[%s617_s28] sm:$0xff] %v382_v29  ;;  %v393_v36 = vmax.f32 %v363_v30, 0.0  ;;  %v383_v37 = vmax.f32 %v323_v31, 0.0 }
  0xec   : > { %406 = vst [vmem:[%s617_s28 + $0x40] sm:$0xff] %v390_v33  ;;  %401 = vst [vmem:[%s617_s28 + $0x18] sm:$0xff] %v385_v34  ;;  %v391_v38 = vmax.f32 %v355_v35, 0.0 }
  0xed   : > { %409 = vst [vmem:[%s617_s28 + $0x58] sm:$0xff] %v393_v36  ;;  %399 = vst [vmem:[%s617_s28 + $0x8] sm:$0xff] %v383_v37  ;;  %v520_v39 = vpop.f32.mrb[4].mxu0 }
  0xee   : > { %407 = vst [vmem:[%s617_s28 + $0x48] sm:$0xff] %v391_v38  ;;  %v344_v40 = vadd.f32 %v520_v39, %v479_v14  ;;  %v528_v41 = vpop.f32.mrb[4].mxu1  ;;  %v335_v42 = vpop.f32.mrb[5].mxu0 }
  0xef   : > { %v376_v43 = vadd.f32 %v528_v41, %v479_v14  ;;  %v336_v44 = vadd.f32 %v479_v14, %v335_v42  ;;  %v367_v45 = vpop.f32.mrb[5].mxu1  ;;  %v521_v46 = vpop.f32.mrb[6].mxu0 }
  0xf0   : > { %v388_v47 = vmax.f32 %v344_v40, 0.0  ;;  %v368_v48 = vadd.f32 %v479_v14, %v367_v45  ;;  %v347_v49 = vadd.f32 %v521_v46, %v479_v14  ;;  %v529_v50 = vpop.f32.mrb[6].mxu1  ;;  %v338_v51 = vpop.f32.mrb[7].mxu0 }
  0xf1   : > { %v396_v52 = vmax.f32 %v376_v43, 0.0  ;;  %v386_v53 = vmax.f32 %v336_v44, 0.0  ;;  %v379_v54 = vadd.f32 %v529_v50, %v479_v14  ;;  %v339_v55 = vadd.f32 %v479_v14, %v338_v51  ;;  %v370_v56 = vpop.f32.mrb[7].mxu1 }
  0xf2   : > { %404 = vst [vmem:[%s617_s28 + $0x30] sm:$0xff] %v388_v47  ;;  %v394_v57 = vmax.f32 %v368_v48, 0.0  ;;  %v389_v58 = vmax.f32 %v347_v49, 0.0  ;;  %v371_v59 = vadd.f32 %v479_v14, %v370_v56 }
  0xf3   : > { %412 = vst [vmem:[%s617_s28 + $0x70] sm:$0xff] %v396_v52  ;;  %402 = vst [vmem:[%s617_s28 + $0x20] sm:$0xff] %v386_v53  ;;  %v397_v60 = vmax.f32 %v379_v54, 0.0  ;;  %v387_v61 = vmax.f32 %v339_v55, 0.0 }
  0xf4   : > { %410 = vst [vmem:[%s617_s28 + $0x60] sm:$0xff] %v394_v57  ;;  %405 = vst [vmem:[%s617_s28 + $0x38] sm:$0xff] %v389_v58  ;;  %v395_v62 = vmax.f32 %v371_v59, 0.0 }
  0xf5   : > { %413 = vst [vmem:[%s617_s28 + $0x78] sm:$0xff] %v397_v60  ;;  %403 = vst [vmem:[%s617_s28 + $0x28] sm:$0xff] %v387_v61 }
  0xf6   : > { %411 = vst [vmem:[%s617_s28 + $0x68] sm:$0xff] %v395_v62 }
  0xf7 PF: > { %s13_s12 = sadd.s32 1, %s559_s12  }
  0xf8   : > { %p10_p4 = scmp.ge.s32.totalorder %s13_s12, 6  }
  0xfa   :  { %12 = sbr.rel (!%p10_p4) target bundleno = 1 (0x1), region = 62 }

// kernel: resnet_encoder.21
= control target key start
LH: loop header
LB: loop body
LE: loop exit
PB: predicated region body
PF: predicated region fallthrough
CT: control target
= control target key end

     0   :  { %s691_s12 = smov 0   ;;  %s807_s0 = inlined_call_operand.vmem [shape: bf16[512,144], index: 0, kind: input, shape index: {}]   ;;  %s808_s1 = inlined_call_operand.vmem [shape: bf16[144,128], index: 1, kind: input, shape index: {}]   ;;  %s809_s2 = inlined_call_operand.vmem [shape: f32[1,128], index: 2, kind: input, shape index: {}]   ;;  %s810_s3 = inlined_call_operand.vmem [shape: f32[512,128], index: 3, kind: output, shape index: {}]  }
   0x1 LB: > { %s555_s13 = sadd.s32 4294967295, %s668_s12   ;;  %p559_p0 = scmp.ge.s32.totalorder %s668_s12, 1  ;;  %s668_s12 = sphi %s691_s12, %s13_s12  }
   0x2   : > { %p139_p1 = scmp.lt.s32.totalorder %s668_s12, 5 }
   0x4   : > { %p140_p2 = pnand %p559_p0, %p139_p1 }
   0x5   : > { %v629_v0 = vld [vmem:[%s808_s1] sm:$0xff] (!%p140_p2)   ;;  %v670_v1 = vmov (!%p140_p2), 0   ;;  %s560_s16 = sshll.u32 (!%p140_p2), %s555_s13, 4  ;;  %v630_v2 = vld [vmem:[%s808_s1 + $0x8] sm:$0xff] (!%p140_p2)   ;;  %v631_v3 = vld [vmem:[%s808_s1 + $0x10] sm:$0xff] (!%p140_p2)   ;;  %vm345_vm0 = vcmask (!%p140_p2), 130048  }
   0x6   : > { %143 = sbr.rel (%p140_p2) target bundleno = 285 (0x11d), region = 32  ;;  %370 = vmatprep.subr.bf16.mxu0 (!%p140_p2), %v670_v1  ;;  %602 = vmatprep.subr.bf16.mxu1 (!%p140_p2), %v670_v1  ;;  %p165_p3 = scmp.lt.s32.totalorder (!%p140_p2), %s560_s16, 63  ;;  %v632_v4 = vld [vmem:[%s808_s1 + $0x18] sm:$0xff] (!%p140_p2)   ;;  %v633_v7 = vld [vmem:[%s808_s1 + $0x20] sm:$0xff] (!%p140_p2)   ;;  %v634_v8 = vld [vmem:[%s808_s1 + $0x28] sm:$0xff] (!%p140_p2)  }
   0x7   : > { %371 = vmatpush1.bf16.msra.mxu0 (!%p140_p2), %v629_v0  ;;  %611 = vmatpush1.bf16.msra.mxu1 (!%p140_p2), %v629_v0  ;;  %v635_v9 = vld [vmem:[%s808_s1 + $0x30] sm:$0xff] (!%p140_p2)   ;;  %v636_v10 = vld [vmem:[%s808_s1 + $0x38] sm:$0xff] (!%p140_p2)   ;;  %v637_v11 = vld [vmem:[%s808_s1 + $0x40] sm:$0xff] (!%p140_p2)  }
   0x8   : > { %372 = vmatprep.subr.bf16.mxu0 (!%p140_p2), %v670_v1  ;;  %603 = vmatprep.subr.bf16.mxu1 (!%p140_p2), %v670_v1  ;;  %v763_v26 = vld [vmem:[%s809_s2] ss:$0 sm:$0xff] (!%p140_p2) }
   0xb   : > { %373 = vmatpush1.bf16.msra.mxu0 (!%p140_p2), %v630_v2  ;;  %612 = vmatpush1.bf16.msra.mxu1 (!%p140_p2), %v630_v2 }
   0xc   : > { %374 = vmatprep.subr.bf16.mxu0 (!%p140_p2), %v670_v1  ;;  %604 = vmatprep.subr.bf16.mxu1 (!%p140_p2), %v670_v1 }
   0xd   : > { %s812_s16 = smov (!%p165_p3, %s560_s16), 63 }
   0xe   : > { %s601_s21 = sshll.u32 %s812_s16, 3 }
   0xf   : > { %s716_s24 = scalar_lea.vmem %s807_s0, %s601_s21  ;;  %375 = vmatpush1.bf16.msra.mxu0 %v631_v3  ;;  %613 = vmatpush1.bf16.msra.mxu1 %v631_v3  ;;  %s772_s15 = scalar_lea.vmem %s810_s3, %s601_s21 }
  0x10   : > { %v640_v5 = vld [vmem:[%s716_s24 + $0x4] ss:$8 sps:$4 sm:$0xff]   ;;  %376 = vmatprep.subr.bf16.mxu0 %v670_v1  ;;  %605 = vmatprep.subr.bf16.mxu1 %v670_v1  ;;  %v638_v12 = vld [vmem:[%s716_s24] ss:$8 sps:$4 sm:$0xff]   ;;  %v644_v14 = vld [vmem:[%s716_s24 + $0x14] ss:$8 sps:$4 sm:$0xff]  }
  0x11   : > { %v643_v6 = vld [vmem:[%s716_s24 + $0x44] ss:$8 sps:$4 sm:$0xff]   ;;  %591 = vmatprep.mubr.msk.bf16.mxu0 %vm345_vm0, %v640_v5  ;;  %v641_v13 = vld [vmem:[%s716_s24 + $0x40] ss:$8 sps:$4 sm:$0xff]   ;;  %v646_v15 = vld [vmem:[%s716_s24 + $0x54] ss:$8 sps:$4 sm:$0xff]  }
  0x12   : > { %595 = vmatprep.mubr.msk.bf16.mxu1 %vm345_vm0, %v643_v6  ;;  %v648_v16 = vld [vmem:[%s716_s24 + $0x10] ss:$8 sps:$4 sm:$0xff]   ;;  %v650_v18 = vld [vmem:[%s716_s24 + $0x24] ss:$8 sps:$4 sm:$0xff]   ;;  %v654_v20 = vld [vmem:[%s716_s24 + $0x20] ss:$8 sps:$4 sm:$0xff]  }
  0x13   : > { %377 = vmatpush1.bf16.msra.mxu0 %v632_v4  ;;  %614 = vmatpush1.bf16.msra.mxu1 %v632_v4  ;;  %v649_v17 = vld [vmem:[%s716_s24 + $0x50] ss:$8 sps:$4 sm:$0xff]   ;;  %v652_v19 = vld [vmem:[%s716_s24 + $0x64] ss:$8 sps:$4 sm:$0xff]   ;;  %v655_v21 = vld [vmem:[%s716_s24 + $0x60] ss:$8 sps:$4 sm:$0xff]  }
  0x14   : > { %378 = vmatprep.subr.bf16.mxu0 %v670_v1  ;;  %606 = vmatprep.subr.bf16.mxu1 %v670_v1  ;;  %v656_v22 = vld [vmem:[%s716_s24 + $0x34] ss:$8 sps:$4 sm:$0xff]   ;;  %v660_v24 = vld [vmem:[%s716_s24 + $0x30] ss:$8 sps:$4 sm:$0xff]  }
  0x15   : > { %v658_v23 = vld [vmem:[%s716_s24 + $0x74] ss:$8 sps:$4 sm:$0xff]   ;;  %v661_v25 = vld [vmem:[%s716_s24 + $0x70] ss:$8 sps:$4 sm:$0xff]  }
  0x17   : > { %379 = vmatpush1.bf16.msra.mxu0 %v633_v7  ;;  %615 = vmatpush1.bf16.msra.mxu1 %v633_v7 }
  0x18   : > { %380 = vmatprep.subr.bf16.mxu0 %v670_v1  ;;  %607 = vmatprep.subr.bf16.mxu1 %v670_v1 }
  0x1b   : > { %381 = vmatpush1.bf16.msra.mxu0 %v634_v8  ;;  %616 = vmatpush1.bf16.msra.mxu1 %v634_v8 }
  0x1c   : > { %382 = vmatprep.subr.bf16.mxu0 %v670_v1  ;;  %608 = vmatprep.subr.bf16.mxu1 %v670_v1 }
  0x1f   : > { %383 = vmatpush1.bf16.msra.mxu0 %v635_v9  ;;  %617 = vmatpush1.bf16.msra.mxu1 %v635_v9 }
  0x20   : > { %384 = vmatprep.subr.bf16.mxu0 %v670_v1  ;;  %609 = vmatprep.subr.bf16.mxu1 %v670_v1 }
  0x23   : > { %385 = vmatpush1.bf16.msra.mxu0 %v636_v10  ;;  %618 = vmatpush1.bf16.msra.mxu1 %v636_v10 }
  0x24   : > { %386 = vmatprep.subr.bf16.mxu0 %v670_v1  ;;  %610 = vmatprep.subr.bf16.mxu1 %v670_v1 }
  0x27   : > { %387 = vmatpush1.bf16.msra.mxu0 %v637_v11  ;;  %619 = vmatpush1.bf16.msra.mxu1 %v637_v11 }
  0x2a   : > { %403 = vmatmul.mubr.bf16.vlgmr.msra.gmra.mrb[0].mxu0 %v638_v12  ;;  %435 = vmatmul.mubr.bf16.vlgmr.msra.gmra.mrb[0].mxu1 %v641_v13 }
  0x2b   : > { %592 = vmatprep.mubr.msk.bf16.mxu0 %vm345_vm0, %v644_v14  ;;  %596 = vmatprep.mubr.msk.bf16.mxu1 %vm345_vm0, %v646_v15 }
  0x32   : > { %411 = vmatmul.mubr.bf16.gmra.mrb[4].mxu0 %v648_v16  ;;  %443 = vmatmul.mubr.bf16.gmra.mrb[4].mxu1 %v649_v17 }
  0x33   : > { %593 = vmatprep.mubr.msk.bf16.mxu0 %vm345_vm0, %v650_v18  ;;  %597 = vmatprep.mubr.msk.bf16.mxu1 %vm345_vm0, %v652_v19 }
  0x3a   : > { %419 = vmatmul.mubr.bf16.gmra.mrb[8].mxu0 %v654_v20  ;;  %451 = vmatmul.mubr.bf16.gmra.mrb[8].mxu1 %v655_v21 }
  0x3b   : > { %594 = vmatprep.mubr.msk.bf16.mxu0 %vm345_vm0, %v656_v22  ;;  %598 = vmatprep.mubr.msk.bf16.mxu1 %vm345_vm0, %v658_v23 }
  0x42   : > { %427 = vmatmul.mubr.bf16.gmra.mrb[12].mxu0 %v660_v24  ;;  %459 = vmatmul.mubr.bf16.gmra.mrb[12].mxu1 %v661_v25 }
  0xfd   : > { %v404_v27 = vpop.f32.mrb[0].mxu0  ;;  %v436_v28 = vpop.f32.mrb[0].mxu1 }
  0xfe   : > { %v405_v29 = vadd.f32 %v763_v26, %v404_v27  ;;  %v437_v30 = vadd.f32 %v763_v26, %v436_v28  ;;  %v406_v31 = vpop.f32.mrb[1].mxu0  ;;  %v438_v32 = vpop.f32.mrb[1].mxu1 }
  0xff   : > { %v407_v33 = vpop.f32.mrb[2].mxu0  ;;  %v439_v34 = vpop.f32.mrb[2].mxu1 }
 0x100   : > { %v467_v35 = vmax.f32 %v405_v29, 0.0  ;;  %v475_v36 = vmax.f32 %v437_v30, 0.0  ;;  %v408_v37 = vadd.f32 %v763_v26, %v407_v33  ;;  %v440_v38 = vadd.f32 %v763_v26, %v439_v34  ;;  %v409_v39 = vpop.f32.mrb[3].mxu0  ;;  %v441_v40 = vpop.f32.mrb[3].mxu1 }
 0x102   : > { %483 = vst [vmem:[%s772_s15] sm:$0xff] %v467_v35  ;;  %491 = vst [vmem:[%s772_s15 + $0x40] sm:$0xff] %v475_v36  ;;  %v468_v41 = vmax.f32 %v408_v37, 0.0  ;;  %v476_v42 = vmax.f32 %v440_v38, 0.0 }
 0x104   : > { %484 = vst [vmem:[%s772_s15 + $0x8] sm:$0xff] %v468_v41  ;;  %492 = vst [vmem:[%s772_s15 + $0x48] sm:$0xff] %v476_v42 }
 0x105   : > { %v412_v43 = vpop.f32.mrb[4].mxu0  ;;  %v444_v44 = vpop.f32.mrb[4].mxu1 }
 0x106   : > { %v413_v45 = vadd.f32 %v763_v26, %v412_v43  ;;  %v445_v46 = vadd.f32 %v763_v26, %v444_v44  ;;  %v414_v47 = vpop.f32.mrb[5].mxu0  ;;  %v446_v48 = vpop.f32.mrb[5].mxu1 }
 0x107   : > { %v415_v49 = vpop.f32.mrb[6].mxu0  ;;  %v447_v50 = vpop.f32.mrb[6].mxu1 }
 0x108   : > { %v469_v51 = vmax.f32 %v413_v45, 0.0  ;;  %v477_v52 = vmax.f32 %v445_v46, 0.0  ;;  %v416_v53 = vadd.f32 %v763_v26, %v415_v49  ;;  %v448_v54 = vadd.f32 %v763_v26, %v447_v50  ;;  %v417_v55 = vpop.f32.mrb[7].mxu0  ;;  %v449_v56 = vpop.f32.mrb[7].mxu1 }
 0x10a   : > { %485 = vst [vmem:[%s772_s15 + $0x10] sm:$0xff] %v469_v51  ;;  %493 = vst [vmem:[%s772_s15 + $0x50] sm:$0xff] %v477_v52  ;;  %v470_v57 = vmax.f32 %v416_v53, 0.0  ;;  %v478_v58 = vmax.f32 %v448_v54, 0.0 }
 0x10c   : > { %486 = vst [vmem:[%s772_s15 + $0x18] sm:$0xff] %v470_v57  ;;  %494 = vst [vmem:[%s772_s15 + $0x58] sm:$0xff] %v478_v58 }
 0x10d   : > { %v420_v59 = vpop.f32.mrb[8].mxu0  ;;  %v452_v60 = vpop.f32.mrb[8].mxu1 }
 0x10e   : > { %v421_v61 = vadd.f32 %v763_v26, %v420_v59  ;;  %v453_v62 = vadd.f32 %v763_v26, %v452_v60  ;;  %v422_v63 = vpop.f32.mrb[9].mxu0  ;;  %v454_v0 = vpop.f32.mrb[9].mxu1 }
 0x10f   : > { %v423_v1 = vpop.f32.mrb[10].mxu0  ;;  %v455_v2 = vpop.f32.mrb[10].mxu1 }
 0x110   : > { %v471_v3 = vmax.f32 %v421_v61, 0.0  ;;  %v479_v4 = vmax.f32 %v453_v62, 0.0  ;;  %v424_v5 = vadd.f32 %v763_v26, %v423_v1  ;;  %v456_v6 = vadd.f32 %v763_v26, %v455_v2  ;;  %v425_v7 = vpop.f32.mrb[11].mxu0  ;;  %v457_v8 = vpop.f32.mrb[11].mxu1 }
 0x112   : > { %487 = vst [vmem:[%s772_s15 + $0x20] sm:$0xff] %v471_v3  ;;  %495 = vst [vmem:[%s772_s15 + $0x60] sm:$0xff] %v479_v4  ;;  %v472_v9 = vmax.f32 %v424_v5, 0.0  ;;  %v480_v10 = vmax.f32 %v456_v6, 0.0 }
 0x114   : > { %488 = vst [vmem:[%s772_s15 + $0x28] sm:$0xff] %v472_v9  ;;  %496 = vst [vmem:[%s772_s15 + $0x68] sm:$0xff] %v480_v10 }
 0x115   : > { %v428_v11 = vpop.f32.mrb[12].mxu0  ;;  %v460_v12 = vpop.f32.mrb[12].mxu1 }
 0x116   : > { %v429_v13 = vadd.f32 %v763_v26, %v428_v11  ;;  %v461_v14 = vadd.f32 %v763_v26, %v460_v12  ;;  %v430_v15 = vpop.f32.mrb[13].mxu0  ;;  %v462_v16 = vpop.f32.mrb[13].mxu1 }
 0x117   : > { %v431_v17 = vpop.f32.mrb[14].mxu0  ;;  %v463_v18 = vpop.f32.mrb[14].mxu1 }
 0x118   : > { %v473_v19 = vmax.f32 %v429_v13, 0.0  ;;  %v481_v20 = vmax.f32 %v461_v14, 0.0  ;;  %v432_v21 = vadd.f32 %v763_v26, %v431_v17  ;;  %v464_v22 = vadd.f32 %v763_v26, %v463_v18  ;;  %v433_v23 = vpop.f32.mrb[15].mxu0  ;;  %v465_v24 = vpop.f32.mrb[15].mxu1 }
 0x11a   : > { %489 = vst [vmem:[%s772_s15 + $0x30] sm:$0xff] %v473_v19  ;;  %497 = vst [vmem:[%s772_s15 + $0x70] sm:$0xff] %v481_v20  ;;  %v474_v25 = vmax.f32 %v432_v21, 0.0  ;;  %v482_v27 = vmax.f32 %v464_v22, 0.0 }
 0x11c   : > { %490 = vst [vmem:[%s772_s15 + $0x38] sm:$0xff] %v474_v25  ;;  %498 = vst [vmem:[%s772_s15 + $0x78] sm:$0xff] %v482_v27 }
 0x11d PF: > { %s13_s12 = sadd.s32 1, %s668_s12  }
 0x11e   : > { %p10_p4 = scmp.ge.s32.totalorder %s13_s12, 6  }
 0x120   :  { %12 = sbr.rel (!%p10_p4) target bundleno = 1 (0x1), region = 62 }

// kernel: resnet_encoder.22
= control target key start
LH: loop header
LB: loop body
LE: loop exit
PB: predicated region body
PF: predicated region fallthrough
CT: control target
= control target key end

     0   :  { %s775_s15 = smov 0   ;;  %s910_s0 = inlined_call_operand.vmem [shape: bf16[512,144], index: 0, kind: input, shape index: {}]   ;;  %s911_s1 = inlined_call_operand.vmem [shape: bf16[144,128], index: 1, kind: input, shape index: {}]   ;;  %s912_s2 = inlined_call_operand.vmem [shape: f32[1,128], index: 2, kind: input, shape index: {}]   ;;  %s913_s3 = inlined_call_operand.vmem [shape: f32[512,128], index: 3, kind: input, shape index: {}]   ;;  %s914_s4 = inlined_call_operand.vmem [shape: f32[512,128], index: 4, kind: output, shape index: {}]  }
   0x1 LB: > { %s632_s16 = sadd.s32 4294967295, %s747_s15   ;;  %p636_p0 = scmp.ge.s32.totalorder %s747_s15, 1  ;;  %s747_s15 = sphi %s775_s15, %s14_s15  }
   0x2   : > { %p175_p1 = scmp.lt.s32.totalorder %s747_s15, 5 }
   0x4   : > { %p176_p2 = pnand %p636_p0, %p175_p1 }
   0x5   : > { %v708_v0 = vld [vmem:[%s911_s1] sm:$0xff] (!%p176_p2)   ;;  %v749_v1 = vmov (!%p176_p2), 0   ;;  %s637_s19 = sshll.u32 (!%p176_p2), %s632_s16, 4  ;;  %v709_v2 = vld [vmem:[%s911_s1 + $0x8] sm:$0xff] (!%p176_p2)   ;;  %v710_v3 = vld [vmem:[%s911_s1 + $0x10] sm:$0xff] (!%p176_p2)   ;;  %vm394_vm0 = vcmask (!%p176_p2), 130048  }
   0x6   : > { %179 = sbr.rel (%p176_p2) target bundleno = 285 (0x11d), region = 36  ;;  %419 = vmatprep.subr.bf16.mxu0 (!%p176_p2), %v749_v1  ;;  %681 = vmatprep.subr.bf16.mxu1 (!%p176_p2), %v749_v1  ;;  %p208_p3 = scmp.lt.s32.totalorder (!%p176_p2), %s637_s19, 63  ;;  %v711_v4 = vld [vmem:[%s911_s1 + $0x18] sm:$0xff] (!%p176_p2)   ;;  %v712_v7 = vld [vmem:[%s911_s1 + $0x20] sm:$0xff] (!%p176_p2)   ;;  %v713_v8 = vld [vmem:[%s911_s1 + $0x28] sm:$0xff] (!%p176_p2)  }
   0x7   : > { %420 = vmatpush1.bf16.msra.mxu0 (!%p176_p2), %v708_v0  ;;  %690 = vmatpush1.bf16.msra.mxu1 (!%p176_p2), %v708_v0  ;;  %v714_v9 = vld [vmem:[%s911_s1 + $0x30] sm:$0xff] (!%p176_p2)   ;;  %v715_v10 = vld [vmem:[%s911_s1 + $0x38] sm:$0xff] (!%p176_p2)   ;;  %v716_v11 = vld [vmem:[%s911_s1 + $0x40] sm:$0xff] (!%p176_p2)  }
   0x8   : > { %421 = vmatprep.subr.bf16.mxu0 (!%p176_p2), %v749_v1  ;;  %682 = vmatprep.subr.bf16.mxu1 (!%p176_p2), %v749_v1  ;;  %v851_v26 = vld [vmem:[%s912_s2] ss:$0 sm:$0xff] (!%p176_p2) }
   0xb   : > { %422 = vmatpush1.bf16.msra.mxu0 (!%p176_p2), %v709_v2  ;;  %691 = vmatpush1.bf16.msra.mxu1 (!%p176_p2), %v709_v2 }
   0xc   : > { %423 = vmatprep.subr.bf16.mxu0 (!%p176_p2), %v749_v1  ;;  %683 = vmatprep.subr.bf16.mxu1 (!%p176_p2), %v749_v1 }
   0xd   : > { %s916_s19 = smov (!%p208_p3, %s637_s19), 63 }
   0xe   : > { %s792_s24 = sshll.u32 %s916_s19, 3 }
   0xf   : > { %s798_s27 = scalar_lea.vmem %s910_s0, %s792_s24  ;;  %424 = vmatpush1.bf16.msra.mxu0 %v710_v3  ;;  %692 = vmatpush1.bf16.msra.mxu1 %v710_v3  ;;  %s846_s17 = scalar_lea.vmem %s913_s3, %s792_s24 }
  0x10   : > { %v719_v5 = vld [vmem:[%s798_s27 + $0x4] ss:$8 sps:$4 sm:$0xff]   ;;  %425 = vmatprep.subr.bf16.mxu0 %v749_v1  ;;  %684 = vmatprep.subr.bf16.mxu1 %v749_v1  ;;  %v717_v12 = vld [vmem:[%s798_s27] ss:$8 sps:$4 sm:$0xff]   ;;  %v723_v14 = vld [vmem:[%s798_s27 + $0x14] ss:$8 sps:$4 sm:$0xff]   ;;  %s861_s22 = scalar_lea.vmem %s914_s4, %s792_s24 }
  0x11   : > { %v722_v6 = vld [vmem:[%s798_s27 + $0x44] ss:$8 sps:$4 sm:$0xff]   ;;  %670 = vmatprep.mubr.msk.bf16.mxu0 %vm394_vm0, %v719_v5  ;;  %v720_v13 = vld [vmem:[%s798_s27 + $0x40] ss:$8 sps:$4 sm:$0xff]   ;;  %v725_v15 = vld [vmem:[%s798_s27 + $0x54] ss:$8 sps:$4 sm:$0xff]  }
  0x12   : > { %674 = vmatprep.mubr.msk.bf16.mxu1 %vm394_vm0, %v722_v6  ;;  %v727_v16 = vld [vmem:[%s798_s27 + $0x10] ss:$8 sps:$4 sm:$0xff]   ;;  %v729_v18 = vld [vmem:[%s798_s27 + $0x24] ss:$8 sps:$4 sm:$0xff]   ;;  %v733_v20 = vld [vmem:[%s798_s27 + $0x20] ss:$8 sps:$4 sm:$0xff]  }
  0x13   : > { %426 = vmatpush1.bf16.msra.mxu0 %v711_v4  ;;  %693 = vmatpush1.bf16.msra.mxu1 %v711_v4  ;;  %v728_v17 = vld [vmem:[%s798_s27 + $0x50] ss:$8 sps:$4 sm:$0xff]   ;;  %v731_v19 = vld [vmem:[%s798_s27 + $0x64] ss:$8 sps:$4 sm:$0xff]   ;;  %v734_v21 = vld [vmem:[%s798_s27 + $0x60] ss:$8 sps:$4 sm:$0xff]  }
  0x14   : > { %427 = vmatprep.subr.bf16.mxu0 %v749_v1  ;;  %685 = vmatprep.subr.bf16.mxu1 %v749_v1  ;;  %v735_v22 = vld [vmem:[%s798_s27 + $0x34] ss:$8 sps:$4 sm:$0xff]   ;;  %v739_v24 = vld [vmem:[%s798_s27 + $0x30] ss:$8 sps:$4 sm:$0xff]   ;;  %v516_v28 = vld [vmem:[%s846_s17] sm:$0xff] }
  0x15   : > { %v737_v23 = vld [vmem:[%s798_s27 + $0x74] ss:$8 sps:$4 sm:$0xff]   ;;  %v740_v25 = vld [vmem:[%s798_s27 + $0x70] ss:$8 sps:$4 sm:$0xff]   ;;  %v524_v30 = vld [vmem:[%s846_s17 + $0x40] sm:$0xff] }
  0x16   : > { %v517_v36 = vld [vmem:[%s846_s17 + $0x8] sm:$0xff]  ;;  %v518_v48 = vld [vmem:[%s846_s17 + $0x10] sm:$0xff]  ;;  %v519_v56 = vld [vmem:[%s846_s17 + $0x18] sm:$0xff] }
  0x17   : > { %428 = vmatpush1.bf16.msra.mxu0 %v712_v7  ;;  %694 = vmatpush1.bf16.msra.mxu1 %v712_v7  ;;  %v525_v38 = vld [vmem:[%s846_s17 + $0x48] sm:$0xff]  ;;  %v526_v50 = vld [vmem:[%s846_s17 + $0x50] sm:$0xff]  ;;  %v527_v58 = vld [vmem:[%s846_s17 + $0x58] sm:$0xff] }
  0x18   : > { %429 = vmatprep.subr.bf16.mxu0 %v749_v1  ;;  %686 = vmatprep.subr.bf16.mxu1 %v749_v1  ;;  %v520_v4 = vld [vmem:[%s846_s17 + $0x20] sm:$0xff] }
  0x19   : > { %v528_v6 = vld [vmem:[%s846_s17 + $0x60] sm:$0xff] }
  0x1b   : > { %430 = vmatpush1.bf16.msra.mxu0 %v713_v8  ;;  %695 = vmatpush1.bf16.msra.mxu1 %v713_v8 }
  0x1c   : > { %431 = vmatprep.subr.bf16.mxu0 %v749_v1  ;;  %687 = vmatprep.subr.bf16.mxu1 %v749_v1 }
  0x1f   : > { %432 = vmatpush1.bf16.msra.mxu0 %v714_v9  ;;  %696 = vmatpush1.bf16.msra.mxu1 %v714_v9 }
  0x20   : > { %433 = vmatprep.subr.bf16.mxu0 %v749_v1  ;;  %688 = vmatprep.subr.bf16.mxu1 %v749_v1 }
  0x23   : > { %434 = vmatpush1.bf16.msra.mxu0 %v715_v10  ;;  %697 = vmatpush1.bf16.msra.mxu1 %v715_v10 }
  0x24   : > { %435 = vmatprep.subr.bf16.mxu0 %v749_v1  ;;  %689 = vmatprep.subr.bf16.mxu1 %v749_v1 }
  0x27   : > { %436 = vmatpush1.bf16.msra.mxu0 %v716_v11  ;;  %698 = vmatpush1.bf16.msra.mxu1 %v716_v11 }
  0x2a   : > { %452 = vmatmul.mubr.bf16.vlgmr.msra.gmra.mrb[0].mxu0 %v717_v12  ;;  %484 = vmatmul.mubr.bf16.vlgmr.msra.gmra.mrb[0].mxu1 %v720_v13  ;;  %v521_v12 = vld [vmem:[%s846_s17 + $0x28] sm:$0xff] }
  0x2b   : > { %671 = vmatprep.mubr.msk.bf16.mxu0 %vm394_vm0, %v723_v14  ;;  %675 = vmatprep.mubr.msk.bf16.mxu1 %vm394_vm0, %v725_v15  ;;  %v529_v14 = vld [vmem:[%s846_s17 + $0x68] sm:$0xff] }
  0x32   : > { %460 = vmatmul.mubr.bf16.gmra.mrb[4].mxu0 %v727_v16  ;;  %492 = vmatmul.mubr.bf16.gmra.mrb[4].mxu1 %v728_v17 }
  0x33   : > { %672 = vmatprep.mubr.msk.bf16.mxu0 %vm394_vm0, %v729_v18  ;;  %676 = vmatprep.mubr.msk.bf16.mxu1 %vm394_vm0, %v731_v19 }
  0x3a   : > { %468 = vmatmul.mubr.bf16.gmra.mrb[8].mxu0 %v733_v20  ;;  %500 = vmatmul.mubr.bf16.gmra.mrb[8].mxu1 %v734_v21 }
  0x3b   : > { %673 = vmatprep.mubr.msk.bf16.mxu0 %vm394_vm0, %v735_v22  ;;  %677 = vmatprep.mubr.msk.bf16.mxu1 %vm394_vm0, %v737_v23 }
  0x42   : > { %476 = vmatmul.mubr.bf16.gmra.mrb[12].mxu0 %v739_v24  ;;  %508 = vmatmul.mubr.bf16.gmra.mrb[12].mxu1 %v740_v25  ;;  %v522_v24 = vld [vmem:[%s846_s17 + $0x30] sm:$0xff] }
  0xfd   : > { %v453_v27 = vpop.f32.mrb[0].mxu0  ;;  %v485_v29 = vpop.f32.mrb[0].mxu1 }
  0xfe   : > { %v454_v31 = vadd.f32 %v851_v26, %v453_v27  ;;  %v486_v32 = vadd.f32 %v851_v26, %v485_v29  ;;  %v455_v33 = vpop.f32.mrb[1].mxu0  ;;  %v487_v34 = vpop.f32.mrb[1].mxu1  ;;  %v530_v27 = vld [vmem:[%s846_s17 + $0x70] sm:$0xff] }
  0xff   : > { %v456_v35 = vpop.f32.mrb[2].mxu0  ;;  %v488_v37 = vpop.f32.mrb[2].mxu1  ;;  %v523_v33 = vld [vmem:[%s846_s17 + $0x38] sm:$0xff] }
 0x100   : > { %v532_v39 = vadd.f32 %v516_v28, %v454_v31  ;;  %v540_v40 = vadd.f32 %v524_v30, %v486_v32  ;;  %v457_v41 = vadd.f32 %v851_v26, %v456_v35  ;;  %v489_v42 = vadd.f32 %v851_v26, %v488_v37  ;;  %v458_v43 = vpop.f32.mrb[3].mxu0  ;;  %v490_v44 = vpop.f32.mrb[3].mxu1  ;;  %v531_v35 = vld [vmem:[%s846_s17 + $0x78] sm:$0xff] }
 0x102   : > { %548 = vst [vmem:[%s861_s22] sm:$0xff] %v532_v39  ;;  %556 = vst [vmem:[%s861_s22 + $0x40] sm:$0xff] %v540_v40  ;;  %v533_v45 = vadd.f32 %v517_v36, %v457_v41  ;;  %v541_v46 = vadd.f32 %v525_v38, %v489_v42 }
 0x104   : > { %549 = vst [vmem:[%s861_s22 + $0x8] sm:$0xff] %v533_v45  ;;  %557 = vst [vmem:[%s861_s22 + $0x48] sm:$0xff] %v541_v46 }
 0x105   : > { %v461_v47 = vpop.f32.mrb[4].mxu0  ;;  %v493_v49 = vpop.f32.mrb[4].mxu1 }
 0x106   : > { %v462_v51 = vadd.f32 %v851_v26, %v461_v47  ;;  %v494_v52 = vadd.f32 %v851_v26, %v493_v49  ;;  %v463_v53 = vpop.f32.mrb[5].mxu0  ;;  %v495_v54 = vpop.f32.mrb[5].mxu1 }
 0x107   : > { %v464_v55 = vpop.f32.mrb[6].mxu0  ;;  %v496_v57 = vpop.f32.mrb[6].mxu1 }
 0x108   : > { %v534_v59 = vadd.f32 %v518_v48, %v462_v51  ;;  %v542_v60 = vadd.f32 %v526_v50, %v494_v52  ;;  %v465_v61 = vadd.f32 %v851_v26, %v464_v55  ;;  %v497_v62 = vadd.f32 %v851_v26, %v496_v57  ;;  %v466_v63 = vpop.f32.mrb[7].mxu0  ;;  %v498_v0 = vpop.f32.mrb[7].mxu1 }
 0x10a   : > { %550 = vst [vmem:[%s861_s22 + $0x10] sm:$0xff] %v534_v59  ;;  %558 = vst [vmem:[%s861_s22 + $0x50] sm:$0xff] %v542_v60  ;;  %v535_v1 = vadd.f32 %v519_v56, %v465_v61  ;;  %v543_v2 = vadd.f32 %v527_v58, %v497_v62 }
 0x10c   : > { %551 = vst [vmem:[%s861_s22 + $0x18] sm:$0xff] %v535_v1  ;;  %559 = vst [vmem:[%s861_s22 + $0x58] sm:$0xff] %v543_v2 }
 0x10d   : > { %v469_v3 = vpop.f32.mrb[8].mxu0  ;;  %v501_v5 = vpop.f32.mrb[8].mxu1 }
 0x10e   : > { %v470_v7 = vadd.f32 %v851_v26, %v469_v3  ;;  %v502_v8 = vadd.f32 %v851_v26, %v501_v5  ;;  %v471_v9 = vpop.f32.mrb[9].mxu0  ;;  %v503_v10 = vpop.f32.mrb[9].mxu1 }
 0x10f   : > { %v472_v11 = vpop.f32.mrb[10].mxu0  ;;  %v504_v13 = vpop.f32.mrb[10].mxu1 }
 0x110   : > { %v536_v15 = vadd.f32 %v520_v4, %v470_v7  ;;  %v544_v16 = vadd.f32 %v528_v6, %v502_v8  ;;  %v473_v17 = vadd.f32 %v851_v26, %v472_v11  ;;  %v505_v18 = vadd.f32 %v851_v26, %v504_v13  ;;  %v474_v19 = vpop.f32.mrb[11].mxu0  ;;  %v506_v20 = vpop.f32.mrb[11].mxu1 }
 0x112   : > { %552 = vst [vmem:[%s861_s22 + $0x20] sm:$0xff] %v536_v15  ;;  %560 = vst [vmem:[%s861_s22 + $0x60] sm:$0xff] %v544_v16  ;;  %v537_v21 = vadd.f32 %v521_v12, %v473_v17  ;;  %v545_v22 = vadd.f32 %v529_v14, %v505_v18 }
 0x114   : > { %553 = vst [vmem:[%s861_s22 + $0x28] sm:$0xff] %v537_v21  ;;  %561 = vst [vmem:[%s861_s22 + $0x68] sm:$0xff] %v545_v22 }
 0x115   : > { %v477_v23 = vpop.f32.mrb[12].mxu0  ;;  %v509_v25 = vpop.f32.mrb[12].mxu1 }
 0x116   : > { %v478_v28 = vadd.f32 %v851_v26, %v477_v23  ;;  %v510_v29 = vadd.f32 %v851_v26, %v509_v25  ;;  %v479_v30 = vpop.f32.mrb[13].mxu0  ;;  %v511_v31 = vpop.f32.mrb[13].mxu1 }
 0x117   : > { %v480_v32 = vpop.f32.mrb[14].mxu0  ;;  %v512_v34 = vpop.f32.mrb[14].mxu1 }
 0x118   : > { %v538_v36 = vadd.f32 %v522_v24, %v478_v28  ;;  %v546_v37 = vadd.f32 %v530_v27, %v510_v29  ;;  %v481_v38 = vadd.f32 %v851_v26, %v480_v32  ;;  %v513_v39 = vadd.f32 %v851_v26, %v512_v34  ;;  %v482_v40 = vpop.f32.mrb[15].mxu0  ;;  %v514_v41 = vpop.f32.mrb[15].mxu1 }
 0x11a   : > { %554 = vst [vmem:[%s861_s22 + $0x30] sm:$0xff] %v538_v36  ;;  %562 = vst [vmem:[%s861_s22 + $0x70] sm:$0xff] %v546_v37  ;;  %v539_v42 = vadd.f32 %v523_v33, %v481_v38  ;;  %v547_v43 = vadd.f32 %v531_v35, %v513_v39 }
 0x11c   : > { %555 = vst [vmem:[%s861_s22 + $0x38] sm:$0xff] %v539_v42  ;;  %563 = vst [vmem:[%s861_s22 + $0x78] sm:$0xff] %v547_v43 }
 0x11d PF: > { %s14_s15 = sadd.s32 1, %s747_s15  }
 0x11e   : > { %p11_p4 = scmp.ge.s32.totalorder %s14_s15, 6  }
 0x120   :  { %13 = sbr.rel (!%p11_p4) target bundleno = 1 (0x1), region = 69 }

// kernel: resnet_encoder.26
= control target key start
LH: loop header
LB: loop body
LE: loop exit
PB: predicated region body
PF: predicated region fallthrough
CT: control target
= control target key end

     0   :  { %v426_v0 = vmov 0   ;;  %vm182_vm0 = vcmask 130048   ;;  %s599_s1 = inlined_call_operand.vmem [shape: bf16[144,128], index: 1, kind: input, shape index: {}]   ;;  %s600_s0 = inlined_call_operand.vmem [shape: bf16[128,144], index: 0, kind: input, shape index: {}]   ;;  %s601_s2 = inlined_call_operand.vmem [shape: f32[1,128], index: 2, kind: input, shape index: {}]   ;;  %s602_s3 = inlined_call_operand.vmem [shape: f32[128,128], index: 3, kind: output, shape index: {}]  }
   0x1   :  { %207 = vmatprep.subr.bf16.mxu0 %v426_v0  ;;  %374 = vmatprep.subr.bf16.mxu1 %v426_v0  ;;  %v393_v1 = vld [vmem:[%s599_s1] sm:$0xff]   ;;  %v394_v2 = vld [vmem:[%s599_s1 + $0x8] sm:$0xff]   ;;  %v395_v3 = vld [vmem:[%s599_s1 + $0x10] sm:$0xff]  }
   0x2   :  { %208 = vmatpush1.bf16.msra.mxu0 %v393_v1  ;;  %383 = vmatpush1.bf16.msra.mxu1 %v393_v1  ;;  %v396_v4 = vld [vmem:[%s599_s1 + $0x18] sm:$0xff]   ;;  %v404_v5 = vld [vmem:[%s600_s0 + $0x4] ss:$8 sps:$4 sm:$0xff]   ;;  %v399_v9 = vld [vmem:[%s599_s1 + $0x30] sm:$0xff]  }
   0x3   :  { %209 = vmatprep.subr.bf16.mxu0 %v426_v0  ;;  %375 = vmatprep.subr.bf16.mxu1 %v426_v0  ;;  %v407_v6 = vld [vmem:[%s600_s0 + $0x44] ss:$8 sps:$4 sm:$0xff]   ;;  %v400_v10 = vld [vmem:[%s599_s1 + $0x38] sm:$0xff]   ;;  %v402_v12 = vld [vmem:[%s600_s0] ss:$8 sps:$4 sm:$0xff]  }
   0x4   :  { %366 = vmatprep.mubr.msk.bf16.mxu0 %vm182_vm0, %v404_v5  ;;  %370 = vmatprep.mubr.msk.bf16.mxu1 %vm182_vm0, %v407_v6  ;;  %v397_v7 = vld [vmem:[%s599_s1 + $0x20] sm:$0xff]   ;;  %v398_v8 = vld [vmem:[%s599_s1 + $0x28] sm:$0xff]   ;;  %v408_v14 = vld [vmem:[%s600_s0 + $0x14] ss:$8 sps:$4 sm:$0xff]  }
   0x5   :  { %v401_v11 = vld [vmem:[%s599_s1 + $0x40] sm:$0xff]   ;;  %v410_v15 = vld [vmem:[%s600_s0 + $0x54] ss:$8 sps:$4 sm:$0xff]   ;;  %v412_v16 = vld [vmem:[%s600_s0 + $0x10] ss:$8 sps:$4 sm:$0xff]  }
   0x6   :  { %210 = vmatpush1.bf16.msra.mxu0 %v394_v2  ;;  %384 = vmatpush1.bf16.msra.mxu1 %v394_v2  ;;  %v405_v13 = vld [vmem:[%s600_s0 + $0x40] ss:$8 sps:$4 sm:$0xff]   ;;  %v413_v17 = vld [vmem:[%s600_s0 + $0x50] ss:$8 sps:$4 sm:$0xff]   ;;  %v414_v18 = vld [vmem:[%s600_s0 + $0x24] ss:$8 sps:$4 sm:$0xff]  }
   0x7   :  { %211 = vmatprep.subr.bf16.mxu0 %v426_v0  ;;  %376 = vmatprep.subr.bf16.mxu1 %v426_v0  ;;  %v416_v19 = vld [vmem:[%s600_s0 + $0x64] ss:$8 sps:$4 sm:$0xff]   ;;  %v418_v20 = vld [vmem:[%s600_s0 + $0x20] ss:$8 sps:$4 sm:$0xff]   ;;  %v420_v22 = vld [vmem:[%s600_s0 + $0x34] ss:$8 sps:$4 sm:$0xff]  }
   0x8   :  { %v419_v21 = vld [vmem:[%s600_s0 + $0x60] ss:$8 sps:$4 sm:$0xff]   ;;  %v422_v23 = vld [vmem:[%s600_s0 + $0x74] ss:$8 sps:$4 sm:$0xff]   ;;  %v424_v24 = vld [vmem:[%s600_s0 + $0x30] ss:$8 sps:$4 sm:$0xff]  }
   0x9   :  { %v425_v25 = vld [vmem:[%s600_s0 + $0x70] ss:$8 sps:$4 sm:$0xff]   ;;  %v533_v26 = vld [vmem:[%s601_s2] ss:$0 sm:$0xff] }
   0xa   :  { %212 = vmatpush1.bf16.msra.mxu0 %v395_v3  ;;  %385 = vmatpush1.bf16.msra.mxu1 %v395_v3 }
   0xb   :  { %213 = vmatprep.subr.bf16.mxu0 %v426_v0  ;;  %377 = vmatprep.subr.bf16.mxu1 %v426_v0 }
   0xe   :  { %214 = vmatpush1.bf16.msra.mxu0 %v396_v4  ;;  %386 = vmatpush1.bf16.msra.mxu1 %v396_v4 }
   0xf   :  { %215 = vmatprep.subr.bf16.mxu0 %v426_v0  ;;  %378 = vmatprep.subr.bf16.mxu1 %v426_v0 }
  0x12   :  { %216 = vmatpush1.bf16.msra.mxu0 %v397_v7  ;;  %387 = vmatpush1.bf16.msra.mxu1 %v397_v7 }
  0x13   :  { %217 = vmatprep.subr.bf16.mxu0 %v426_v0  ;;  %379 = vmatprep.subr.bf16.mxu1 %v426_v0 }
  0x16   :  { %218 = vmatpush1.bf16.msra.mxu0 %v398_v8  ;;  %388 = vmatpush1.bf16.msra.mxu1 %v398_v8 }
  0x17   :  { %219 = vmatprep.subr.bf16.mxu0 %v426_v0  ;;  %380 = vmatprep.subr.bf16.mxu1 %v426_v0 }
  0x1a   :  { %220 = vmatpush1.bf16.msra.mxu0 %v399_v9  ;;  %389 = vmatpush1.bf16.msra.mxu1 %v399_v9 }
  0x1b   :  { %221 = vmatprep.subr.bf16.mxu0 %v426_v0  ;;  %381 = vmatprep.subr.bf16.mxu1 %v426_v0 }
  0x1e   :  { %222 = vmatpush1.bf16.msra.mxu0 %v400_v10  ;;  %390 = vmatpush1.bf16.msra.mxu1 %v400_v10 }
  0x1f   :  { %223 = vmatprep.subr.bf16.mxu0 %v426_v0  ;;  %382 = vmatprep.subr.bf16.mxu1 %v426_v0 }
  0x22   :  { %224 = vmatpush1.bf16.msra.mxu0 %v401_v11  ;;  %391 = vmatpush1.bf16.msra.mxu1 %v401_v11 }
  0x25   :  { %240 = vmatmul.mubr.bf16.vlgmr.msra.gmra.mrb[0].mxu0 %v402_v12  ;;  %272 = vmatmul.mubr.bf16.vlgmr.msra.gmra.mrb[0].mxu1 %v405_v13 }
  0x26   :  { %367 = vmatprep.mubr.msk.bf16.mxu0 %vm182_vm0, %v408_v14  ;;  %371 = vmatprep.mubr.msk.bf16.mxu1 %vm182_vm0, %v410_v15 }
  0x2d   :  { %248 = vmatmul.mubr.bf16.gmra.mrb[4].mxu0 %v412_v16  ;;  %280 = vmatmul.mubr.bf16.gmra.mrb[4].mxu1 %v413_v17 }
  0x2e   :  { %368 = vmatprep.mubr.msk.bf16.mxu0 %vm182_vm0, %v414_v18  ;;  %372 = vmatprep.mubr.msk.bf16.mxu1 %vm182_vm0, %v416_v19 }
  0x35   :  { %256 = vmatmul.mubr.bf16.gmra.mrb[8].mxu0 %v418_v20  ;;  %288 = vmatmul.mubr.bf16.gmra.mrb[8].mxu1 %v419_v21 }
  0x36   :  { %369 = vmatprep.mubr.msk.bf16.mxu0 %vm182_vm0, %v420_v22  ;;  %373 = vmatprep.mubr.msk.bf16.mxu1 %vm182_vm0, %v422_v23 }
  0x3d   :  { %264 = vmatmul.mubr.bf16.gmra.mrb[12].mxu0 %v424_v24  ;;  %296 = vmatmul.mubr.bf16.gmra.mrb[12].mxu1 %v425_v25 }
  0xf8   :  { %v241_v27 = vpop.f32.mrb[0].mxu0  ;;  %v273_v28 = vpop.f32.mrb[0].mxu1 }
  0xf9   :  { %v242_v29 = vadd.f32 %v533_v26, %v241_v27  ;;  %v274_v30 = vadd.f32 %v533_v26, %v273_v28  ;;  %v243_v31 = vpop.f32.mrb[1].mxu0  ;;  %v275_v32 = vpop.f32.mrb[1].mxu1 }
  0xfa   :  { %v244_v33 = vpop.f32.mrb[2].mxu0  ;;  %v276_v34 = vpop.f32.mrb[2].mxu1 }
  0xfb   :  { %v304_v35 = vmax.f32 %v242_v29, 0.0  ;;  %v312_v36 = vmax.f32 %v274_v30, 0.0  ;;  %v245_v37 = vadd.f32 %v533_v26, %v244_v33  ;;  %v277_v38 = vadd.f32 %v533_v26, %v276_v34  ;;  %v246_v39 = vpop.f32.mrb[3].mxu0  ;;  %v278_v40 = vpop.f32.mrb[3].mxu1 }
  0xfd   :  { %320 = vst [vmem:[%s602_s3] sm:$0xff] %v304_v35  ;;  %328 = vst [vmem:[%s602_s3 + $0x40] sm:$0xff] %v312_v36  ;;  %v305_v41 = vmax.f32 %v245_v37, 0.0  ;;  %v313_v42 = vmax.f32 %v277_v38, 0.0 }
  0xff   :  { %321 = vst [vmem:[%s602_s3 + $0x8] sm:$0xff] %v305_v41  ;;  %329 = vst [vmem:[%s602_s3 + $0x48] sm:$0xff] %v313_v42 }
 0x100   :  { %v249_v43 = vpop.f32.mrb[4].mxu0  ;;  %v281_v44 = vpop.f32.mrb[4].mxu1 }
 0x101   :  { %v250_v45 = vadd.f32 %v533_v26, %v249_v43  ;;  %v282_v46 = vadd.f32 %v533_v26, %v281_v44  ;;  %v251_v47 = vpop.f32.mrb[5].mxu0  ;;  %v283_v48 = vpop.f32.mrb[5].mxu1 }
 0x102   :  { %v252_v49 = vpop.f32.mrb[6].mxu0  ;;  %v284_v50 = vpop.f32.mrb[6].mxu1 }
 0x103   :  { %v306_v51 = vmax.f32 %v250_v45, 0.0  ;;  %v314_v52 = vmax.f32 %v282_v46, 0.0  ;;  %v253_v53 = vadd.f32 %v533_v26, %v252_v49  ;;  %v285_v54 = vadd.f32 %v533_v26, %v284_v50  ;;  %v254_v55 = vpop.f32.mrb[7].mxu0  ;;  %v286_v56 = vpop.f32.mrb[7].mxu1 }
 0x105   :  { %322 = vst [vmem:[%s602_s3 + $0x10] sm:$0xff] %v306_v51  ;;  %330 = vst [vmem:[%s602_s3 + $0x50] sm:$0xff] %v314_v52  ;;  %v307_v57 = vmax.f32 %v253_v53, 0.0  ;;  %v315_v58 = vmax.f32 %v285_v54, 0.0 }
 0x107   :  { %323 = vst [vmem:[%s602_s3 + $0x18] sm:$0xff] %v307_v57  ;;  %331 = vst [vmem:[%s602_s3 + $0x58] sm:$0xff] %v315_v58 }
 0x108   :  { %v257_v59 = vpop.f32.mrb[8].mxu0  ;;  %v289_v60 = vpop.f32.mrb[8].mxu1 }
 0x109   :  { %v258_v61 = vadd.f32 %v533_v26, %v257_v59  ;;  %v290_v62 = vadd.f32 %v533_v26, %v289_v60  ;;  %v259_v63 = vpop.f32.mrb[9].mxu0  ;;  %v291_v0 = vpop.f32.mrb[9].mxu1 }
 0x10a   :  { %v260_v1 = vpop.f32.mrb[10].mxu0  ;;  %v292_v2 = vpop.f32.mrb[10].mxu1 }
 0x10b   :  { %v308_v3 = vmax.f32 %v258_v61, 0.0  ;;  %v316_v4 = vmax.f32 %v290_v62, 0.0  ;;  %v261_v5 = vadd.f32 %v533_v26, %v260_v1  ;;  %v293_v6 = vadd.f32 %v533_v26, %v292_v2  ;;  %v262_v7 = vpop.f32.mrb[11].mxu0  ;;  %v294_v8 = vpop.f32.mrb[11].mxu1 }
 0x10d   :  { %324 = vst [vmem:[%s602_s3 + $0x20] sm:$0xff] %v308_v3  ;;  %332 = vst [vmem:[%s602_s3 + $0x60] sm:$0xff] %v316_v4  ;;  %v309_v9 = vmax.f32 %v261_v5, 0.0  ;;  %v317_v10 = vmax.f32 %v293_v6, 0.0 }
 0x10f   :  { %325 = vst [vmem:[%s602_s3 + $0x28] sm:$0xff] %v309_v9  ;;  %333 = vst [vmem:[%s602_s3 + $0x68] sm:$0xff] %v317_v10 }
 0x110   :  { %v265_v11 = vpop.f32.mrb[12].mxu0  ;;  %v297_v12 = vpop.f32.mrb[12].mxu1 }
 0x111   :  { %v266_v13 = vadd.f32 %v533_v26, %v265_v11  ;;  %v298_v14 = vadd.f32 %v533_v26, %v297_v12  ;;  %v267_v15 = vpop.f32.mrb[13].mxu0  ;;  %v299_v16 = vpop.f32.mrb[13].mxu1 }
 0x112   :  { %v268_v17 = vpop.f32.mrb[14].mxu0  ;;  %v300_v18 = vpop.f32.mrb[14].mxu1 }
 0x113   :  { %v310_v19 = vmax.f32 %v266_v13, 0.0  ;;  %v318_v20 = vmax.f32 %v298_v14, 0.0  ;;  %v269_v21 = vadd.f32 %v533_v26, %v268_v17  ;;  %v301_v22 = vadd.f32 %v533_v26, %v300_v18  ;;  %v270_v23 = vpop.f32.mrb[15].mxu0  ;;  %v302_v24 = vpop.f32.mrb[15].mxu1 }
 0x115   :  { %326 = vst [vmem:[%s602_s3 + $0x30] sm:$0xff] %v310_v19  ;;  %334 = vst [vmem:[%s602_s3 + $0x70] sm:$0xff] %v318_v20  ;;  %v311_v25 = vmax.f32 %v269_v21, 0.0  ;;  %v319_v27 = vmax.f32 %v301_v22, 0.0 }
 0x117   :  { %327 = vst [vmem:[%s602_s3 + $0x38] sm:$0xff] %v311_v25  ;;  %335 = vst [vmem:[%s602_s3 + $0x78] sm:$0xff] %v319_v27 }

// kernel: resnet_encoder.25
= control target key start
LH: loop header
LB: loop body
LE: loop exit
PB: predicated region body
PF: predicated region fallthrough
CT: control target
= control target key end

     0   :  { %vm86_vm0 = vcmask 130048   ;;  %s390_s1 = inlined_call_operand.vmem [shape: bf16[16,128], index: 1, kind: input, shape index: {}]   ;;  %s391_s0 = inlined_call_operand.vmem [shape: bf16[128,16], index: 0, kind: input, shape index: {}]   ;;  %s392_s2 = inlined_call_operand.vmem [shape: f32[1,128], index: 2, kind: input, shape index: {}]   ;;  %s393_s3 = inlined_call_operand.vmem [shape: f32[128,128], index: 3, kind: output, shape index: {}]  }
   0x1   :  { %v275_v0 = vld [vmem:[%s390_s1] sm:$0xff]   ;;  %v278_v3 = vld [vmem:[%s391_s0 + $0x8] sm:$0xff]   ;;  %v280_v5 = vld [vmem:[%s391_s0 + $0x10] sm:$0xff]  }
   0x2   :  { %v276_v1 = vld [vmem:[%s391_s0] sm:$0xff]   ;;  %255 = vmatprep.subr.bf16.mxu0 %v275_v0  ;;  %273 = vmatprep.subr.bf16.mxu1 %v275_v0  ;;  %v279_v4 = vld [vmem:[%s391_s0 + $0x28] sm:$0xff]   ;;  %v281_v6 = vld [vmem:[%s391_s0 + $0x30] sm:$0xff]  }
   0x3   :  { %v277_v2 = vld [vmem:[%s391_s0 + $0x20] sm:$0xff]   ;;  %256 = vmatpush3.bf16.msra.mxu0 %v275_v0  ;;  %274 = vmatpush3.bf16.msra.mxu1 %v275_v0  ;;  %v282_v7 = vld [vmem:[%s391_s0 + $0x18] sm:$0xff]  }
   0x4   :  { %257 = vmatprep.mubr.msk.bf16.mxu0 %vm86_vm0, %v276_v1  ;;  %265 = vmatprep.mubr.msk.bf16.mxu1 %vm86_vm0, %v277_v2  ;;  %v283_v8 = vld [vmem:[%s391_s0 + $0x38] sm:$0xff]   ;;  %v228_v9 = vld [vmem:[%s392_s2] ss:$0 sm:$0xff] }
   0x6   :  { %258 = vmatmul.mubr.msk.bf16.vlgmr.msra.gmra.mrb[0].mxu0 %vm86_vm0, %v278_v3  ;;  %266 = vmatmul.mubr.msk.bf16.vlgmr.msra.gmra.mrb[0].mxu1 %vm86_vm0, %v279_v4 }
   0x7   :  { %261 = vmatprep.mubr.msk.bf16.mxu0 %vm86_vm0, %v280_v5  ;;  %269 = vmatprep.mubr.msk.bf16.mxu1 %vm86_vm0, %v281_v6 }
   0xe   :  { %262 = vmatmul.mubr.msk.bf16.gmra.mrb[4].mxu0 %vm86_vm0, %v282_v7  ;;  %270 = vmatmul.mubr.msk.bf16.gmra.mrb[4].mxu1 %vm86_vm0, %v283_v8 }
  0xd9   :  { %v259_v10 = vpop.f32.mrb[0].mxu0  ;;  %v267_v11 = vpop.f32.mrb[0].mxu1 }
  0xda   :  { %v154_v12 = vadd.f32 %v259_v10, %v228_v9  ;;  %v186_v13 = vadd.f32 %v267_v11, %v228_v9  ;;  %v145_v14 = vpop.f32.mrb[1].mxu0  ;;  %v177_v15 = vpop.f32.mrb[1].mxu1 }
  0xdb   :  { %v146_v16 = vadd.f32 %v228_v9, %v145_v14  ;;  %v178_v17 = vadd.f32 %v228_v9, %v177_v15  ;;  %v260_v18 = vpop.f32.mrb[2].mxu0  ;;  %v268_v19 = vpop.f32.mrb[2].mxu1 }
  0xdc   :  { %210 = vst [vmem:[%s393_s3 + $0x10] sm:$0xff] %v154_v12  ;;  %218 = vst [vmem:[%s393_s3 + $0x50] sm:$0xff] %v186_v13  ;;  %v157_v20 = vadd.f32 %v260_v18, %v228_v9  ;;  %v189_v21 = vadd.f32 %v268_v19, %v228_v9  ;;  %v148_v22 = vpop.f32.mrb[3].mxu0  ;;  %v180_v23 = vpop.f32.mrb[3].mxu1 }
  0xdd   :  { %208 = vst [vmem:[%s393_s3] sm:$0xff] %v146_v16  ;;  %216 = vst [vmem:[%s393_s3 + $0x40] sm:$0xff] %v178_v17  ;;  %v149_v24 = vadd.f32 %v228_v9, %v148_v22  ;;  %v181_v25 = vadd.f32 %v228_v9, %v180_v23 }
  0xde   :  { %211 = vst [vmem:[%s393_s3 + $0x18] sm:$0xff] %v157_v20  ;;  %219 = vst [vmem:[%s393_s3 + $0x58] sm:$0xff] %v189_v21 }
  0xdf   :  { %209 = vst [vmem:[%s393_s3 + $0x8] sm:$0xff] %v149_v24  ;;  %217 = vst [vmem:[%s393_s3 + $0x48] sm:$0xff] %v181_v25 }
  0xe1   :  { %v263_v26 = vpop.f32.mrb[4].mxu0  ;;  %v271_v27 = vpop.f32.mrb[4].mxu1 }
  0xe2   :  { %v170_v28 = vadd.f32 %v263_v26, %v228_v9  ;;  %v202_v29 = vadd.f32 %v271_v27, %v228_v9  ;;  %v161_v30 = vpop.f32.mrb[5].mxu0  ;;  %v193_v31 = vpop.f32.mrb[5].mxu1 }
  0xe3   :  { %v162_v32 = vadd.f32 %v228_v9, %v161_v30  ;;  %v194_v33 = vadd.f32 %v228_v9, %v193_v31  ;;  %v264_v34 = vpop.f32.mrb[6].mxu0  ;;  %v272_v35 = vpop.f32.mrb[6].mxu1 }
  0xe4   :  { %214 = vst [vmem:[%s393_s3 + $0x30] sm:$0xff] %v170_v28  ;;  %222 = vst [vmem:[%s393_s3 + $0x70] sm:$0xff] %v202_v29  ;;  %v173_v36 = vadd.f32 %v264_v34, %v228_v9  ;;  %v205_v37 = vadd.f32 %v272_v35, %v228_v9  ;;  %v164_v38 = vpop.f32.mrb[7].mxu0  ;;  %v196_v39 = vpop.f32.mrb[7].mxu1 }
  0xe5   :  { %212 = vst [vmem:[%s393_s3 + $0x20] sm:$0xff] %v162_v32  ;;  %220 = vst [vmem:[%s393_s3 + $0x60] sm:$0xff] %v194_v33  ;;  %v165_v40 = vadd.f32 %v228_v9, %v164_v38  ;;  %v197_v41 = vadd.f32 %v228_v9, %v196_v39 }
  0xe6   :  { %215 = vst [vmem:[%s393_s3 + $0x38] sm:$0xff] %v173_v36  ;;  %223 = vst [vmem:[%s393_s3 + $0x78] sm:$0xff] %v205_v37 }
  0xe7   :  { %213 = vst [vmem:[%s393_s3 + $0x28] sm:$0xff] %v165_v40  ;;  %221 = vst [vmem:[%s393_s3 + $0x68] sm:$0xff] %v197_v41 }

// kernel: resnet_encoder.27
= control target key start
LH: loop header
LB: loop body
LE: loop exit
PB: predicated region body
PF: predicated region fallthrough
CT: control target
= control target key end

     0   :  { %vm321_vm0 = vcmask 261120   ;;  %s1091_s1 = inlined_call_operand.vmem [shape: bf16[288,128], index: 1, kind: input, shape index: {}]   ;;  %s1092_s0 = inlined_call_operand.vmem [shape: bf16[128,288], index: 0, kind: input, shape index: {}]   ;;  %s1093_s2 = inlined_call_operand.vmem [shape: f32[1,128], index: 2, kind: input, shape index: {}]   ;;  %s1094_s3 = inlined_call_operand.vmem [shape: f32[128,128], index: 3, kind: input, shape index: {}]   ;;  %s1095_s4 = inlined_call_operand.vmem [shape: f32[128,128], index: 4, kind: output, shape index: {}]  }
   0x1   :  { %v753_v0 = vld [vmem:[%s1091_s1 + $0x40] sm:$0xff]   ;;  %v755_v2 = vld [vmem:[%s1091_s1 + $0x48] sm:$0xff]   ;;  %v757_v4 = vld [vmem:[%s1091_s1 + $0x50] sm:$0xff]  }
   0x2   :  { %v754_v1 = vld [vmem:[%s1091_s1] sm:$0xff]   ;;  %643 = vmatprep.subr.bf16.mxu0 %v753_v0  ;;  %737 = vmatprep.subr.bf16.mxu1 %v753_v0  ;;  %v756_v3 = vld [vmem:[%s1091_s1 + $0x8] sm:$0xff]   ;;  %v758_v5 = vld [vmem:[%s1091_s1 + $0x10] sm:$0xff]  }
   0x3   :  { %644 = vmatpush3.bf16.msra.mxu0 %v754_v1  ;;  %745 = vmatpush3.bf16.msra.mxu1 %v754_v1  ;;  %v759_v6 = vld [vmem:[%s1091_s1 + $0x58] sm:$0xff]   ;;  %v761_v8 = vld [vmem:[%s1091_s1 + $0x60] sm:$0xff]   ;;  %v763_v10 = vld [vmem:[%s1091_s1 + $0x68] sm:$0xff]  }
   0x4   :  { %645 = vmatprep.subr.bf16.mxu0 %v755_v2  ;;  %738 = vmatprep.subr.bf16.mxu1 %v755_v2  ;;  %v760_v7 = vld [vmem:[%s1091_s1 + $0x18] sm:$0xff]   ;;  %v762_v9 = vld [vmem:[%s1091_s1 + $0x20] sm:$0xff]   ;;  %v764_v13 = vld [vmem:[%s1091_s1 + $0x28] sm:$0xff]  }
   0x5   :  { %v771_v11 = vld [vmem:[%s1092_s0 + $0x4] ss:$12 sps:$4 sm:$0xff]   ;;  %v774_v12 = vld [vmem:[%s1092_s0 + $0x94] ss:$12 sps:$4 sm:$0xff]   ;;  %v767_v16 = vld [vmem:[%s1091_s1 + $0x78] sm:$0xff]  }
   0x6   :  { %v765_v14 = vld [vmem:[%s1091_s1 + $0x70] sm:$0xff]   ;;  %378 = vmatprep.mubr.bf16.mxu0 %v771_v11  ;;  %426 = vmatprep.mubr.bf16.mxu1 %v774_v12  ;;  %v768_v17 = vld [vmem:[%s1091_s1 + $0x38] sm:$0xff]   ;;  %v769_v18 = vld [vmem:[%s1092_s0] ss:$12 sps:$4 sm:$0xff]  }
   0x7   :  { %646 = vmatpush3.bf16.msra.mxu0 %v756_v3  ;;  %746 = vmatpush3.bf16.msra.mxu1 %v756_v3  ;;  %v766_v15 = vld [vmem:[%s1091_s1 + $0x30] sm:$0xff]   ;;  %v775_v19 = vld [vmem:[%s1091_s1 + $0x80] sm:$0xff]   ;;  %v776_v21 = vld [vmem:[%s1092_s0 + $0x1c] ss:$12 sps:$4 sm:$0xff]  }
   0x8   :  { %647 = vmatprep.subr.bf16.mxu0 %v757_v4  ;;  %739 = vmatprep.subr.bf16.mxu1 %v757_v4  ;;  %v772_v20 = vld [vmem:[%s1092_s0 + $0x90] ss:$12 sps:$4 sm:$0xff]   ;;  %v778_v22 = vld [vmem:[%s1092_s0 + $0xac] ss:$12 sps:$4 sm:$0xff]   ;;  %v781_v25 = vld [vmem:[%s1092_s0 + $0xa8] ss:$12 sps:$4 sm:$0xff]  }
   0x9   :  { %v782_v23 = vld [vmem:[%s1091_s1 + $0x88] sm:$0xff]   ;;  %v780_v24 = vld [vmem:[%s1092_s0 + $0x18] ss:$12 sps:$4 sm:$0xff]   ;;  %v783_v26 = vld [vmem:[%s1092_s0 + $0x34] ss:$12 sps:$4 sm:$0xff]  }
   0xa   :  { %v785_v27 = vld [vmem:[%s1092_s0 + $0x8] ss:$12 sps:$4 sm:$0xff]   ;;  %v786_v28 = vld [vmem:[%s1092_s0 + $0x30] ss:$12 sps:$4 sm:$0xff]   ;;  %v787_v29 = vld [vmem:[%s1092_s0 + $0x20] ss:$12 sps:$4 sm:$0xff]  }
   0xb   :  { %648 = vmatpush3.bf16.msra.mxu0 %v758_v5  ;;  %747 = vmatpush3.bf16.msra.mxu1 %v758_v5  ;;  %v788_v30 = vld [vmem:[%s1092_s0 + $0x4c] ss:$12 sps:$4 sm:$0xff]   ;;  %v791_v32 = vld [vmem:[%s1092_s0 + $0x48] ss:$12 sps:$4 sm:$0xff]   ;;  %v792_v33 = vld [vmem:[%s1092_s0 + $0x50] ss:$12 sps:$4 sm:$0xff]  }
   0xc   :  { %649 = vmatprep.subr.bf16.mxu0 %v759_v6  ;;  %740 = vmatprep.subr.bf16.mxu1 %v759_v6  ;;  %v790_v31 = vld [vmem:[%s1092_s0 + $0x38] ss:$12 sps:$4 sm:$0xff]   ;;  %v795_v35 = vld [vmem:[%s1092_s0 + $0x68] ss:$12 sps:$4 sm:$0xff]   ;;  %v796_v36 = vld [vmem:[%s1092_s0 + $0x60] ss:$12 sps:$4 sm:$0xff]  }
   0xd   :  { %v793_v34 = vld [vmem:[%s1092_s0 + $0x64] ss:$12 sps:$4 sm:$0xff]   ;;  %v797_v37 = vld [vmem:[%s1092_s0 + $0x80] ss:$12 sps:$4 sm:$0xff]   ;;  %v798_v38 = vld [vmem:[%s1092_s0 + $0x7c] ss:$12 sps:$4 sm:$0xff]  }
   0xe   :  { %v800_v39 = vld [vmem:[%s1092_s0 + $0x98] ss:$12 sps:$4 sm:$0xff]   ;;  %v802_v41 = vld [vmem:[%s1092_s0 + $0xb0] ss:$12 sps:$4 sm:$0xff]   ;;  %v973_v2 = vld [vmem:[%s1093_s2] ss:$0 sm:$0xff] }
   0xf   :  { %650 = vmatpush3.bf16.msra.mxu0 %v760_v7  ;;  %748 = vmatpush3.bf16.msra.mxu1 %v760_v7  ;;  %v801_v40 = vld [vmem:[%s1092_s0 + $0x78] ss:$12 sps:$4 sm:$0xff]   ;;  %v542_v6 = vld [vmem:[%s1094_s3 + $0x10] sm:$0xff] }
  0x10   :  { %651 = vmatprep.subr.bf16.mxu0 %v761_v8  ;;  %741 = vmatprep.subr.bf16.mxu1 %v761_v8  ;;  %v540_v11 = vld [vmem:[%s1094_s3] sm:$0xff] }
  0x13   :  { %652 = vmatpush3.bf16.msra.mxu0 %v762_v9  ;;  %749 = vmatpush3.bf16.msra.mxu1 %v762_v9 }
  0x14   :  { %653 = vmatprep.subr.bf16.mxu0 %v763_v10  ;;  %742 = vmatprep.subr.bf16.mxu1 %v763_v10 }
  0x17   :  { %654 = vmatpush3.bf16.msra.mxu0 %v764_v13  ;;  %750 = vmatpush3.bf16.msra.mxu1 %v764_v13 }
  0x18   :  { %655 = vmatprep.subr.bf16.mxu0 %v765_v14  ;;  %743 = vmatprep.subr.bf16.mxu1 %v765_v14 }
  0x1b   :  { %656 = vmatpush3.bf16.msra.mxu0 %v766_v15  ;;  %751 = vmatpush3.bf16.msra.mxu1 %v766_v15 }
  0x1c   :  { %657 = vmatprep.subr.bf16.mxu0 %v767_v16  ;;  %744 = vmatprep.subr.bf16.mxu1 %v767_v16 }
  0x1f   :  { %658 = vmatpush3.bf16.msra.mxu0 %v768_v17  ;;  %752 = vmatpush3.bf16.msra.mxu1 %v768_v17  ;;  %v543_v17 = vld [vmem:[%s1094_s3 + $0x18] sm:$0xff] }
  0x20   :  { %717 = vmatprep.subr.bf16.mxu1 %v775_v19 }
  0x22   :  { %379 = vmatmul.mubr.bf16.vlgmr.msra.gmra.mrb[0].mxu0 %v769_v18  ;;  %427 = vmatmul.mubr.bf16.vlgmr.msra.gmra.mrb[0].mxu1 %v772_v20 }
  0x23   :  { %718 = vmatpush3.bf16.msra.mxu1 %v775_v19  ;;  %386 = vmatprep.mubr.bf16.mxu0 %v776_v21 }
  0x24   :  { %434 = vmatprep.mubr.bf16.mxu1 %v778_v22  ;;  %719 = vmatprep.subr.bf16.mxu1 %v782_v23 }
  0x27   :  { %720 = vmatpush3.bf16.msra.mxu1 %v782_v23  ;;  %v541_v23 = vld [vmem:[%s1094_s3 + $0x8] sm:$0xff] }
  0x2a   :  { %387 = vmatmul.mubr.bf16.gmra.mrb[4].mxu0 %v780_v24  ;;  %435 = vmatmul.mubr.bf16.gmra.mrb[4].mxu1 %v781_v25 }
  0x2b   :  { %394 = vmatprep.mubr.bf16.mxu0 %v783_v26  ;;  %721 = vmatprep.mubr.msk.bf16.mxu1 %vm321_vm0, %v785_v27 }
  0x32   :  { %395 = vmatmul.mubr.bf16.gmra.mrb[8].mxu0 %v786_v28  ;;  %722 = vmatmul.mubr.msk.bf16.vlgmr.msra.gmra.mrb[8].mxu1 %vm321_vm0, %v787_v29 }
  0x33   :  { %402 = vmatprep.mubr.bf16.mxu0 %v788_v30  ;;  %725 = vmatprep.mubr.msk.bf16.mxu1 %vm321_vm0, %v790_v31 }
  0x3a   :  { %403 = vmatmul.mubr.bf16.gmra.mrb[12].mxu0 %v791_v32  ;;  %726 = vmatmul.mubr.msk.bf16.gmra.mrb[12].mxu1 %vm321_vm0, %v792_v33 }
  0x3b   :  { %410 = vmatprep.mubr.bf16.mxu0 %v793_v34  ;;  %729 = vmatprep.mubr.msk.bf16.mxu1 %vm321_vm0, %v795_v35  ;;  %v544_v34 = vld [vmem:[%s1094_s3 + $0x20] sm:$0xff] }
  0x42   :  { %411 = vmatmul.mubr.bf16.gmra.mrb[16].mxu0 %v796_v36  ;;  %730 = vmatmul.mubr.msk.bf16.gmra.mrb[16].mxu1 %vm321_vm0, %v797_v37 }
  0x43   :  { %418 = vmatprep.mubr.bf16.mxu0 %v798_v38  ;;  %733 = vmatprep.mubr.msk.bf16.mxu1 %vm321_vm0, %v800_v39 }
  0x4a   :  { %419 = vmatmul.mubr.bf16.gmra.mrb[20].mxu0 %v801_v40  ;;  %734 = vmatmul.mubr.msk.bf16.gmra.mrb[20].mxu1 %vm321_vm0, %v802_v41 }
  0xf5   :  { %v659_v42 = vpop.f32.mrb[0].mxu0  ;;  %v695_v43 = vpop.f32.mrb[0].mxu1 }
  0xf6   :  { %v660_v44 = vpop.f32.mrb[1].mxu0  ;;  %v696_v45 = vpop.f32.mrb[1].mxu1 }
  0xf7   :  { %v661_v46 = vadd.f32 %v660_v44, %v659_v42  ;;  %v662_v47 = vpop.f32.mrb[2].mxu0  ;;  %v962_v48 = vadd.f32 %v696_v45, %v695_v43  ;;  %v698_v49 = vpop.f32.mrb[2].mxu1  ;;  %v545_v42 = vld [vmem:[%s1094_s3 + $0x28] sm:$0xff] }
  0xf8   :  { %v663_v50 = vpop.f32.mrb[3].mxu0  ;;  %v699_v51 = vpop.f32.mrb[3].mxu1 }
  0xf9   :  { %v664_v52 = vadd.f32 %v663_v50, %v662_v47  ;;  %v964_v53 = vadd.f32 %v699_v51, %v698_v49  ;;  %v381_v7 = vadd.f32 %v661_v46, %v973_v2  ;;  %v546_v47 = vld [vmem:[%s1094_s3 + $0x30] sm:$0xff] }
  0xfb   :  { %v384_v18 = vadd.f32 %v664_v52, %v973_v2  ;;  %v547_v52 = vld [vmem:[%s1094_s3 + $0x38] sm:$0xff] }
  0xfd   :  { %v665_v54 = vpop.f32.mrb[4].mxu0  ;;  %v701_v55 = vpop.f32.mrb[4].mxu1 }
  0xfe   :  { %v666_v56 = vpop.f32.mrb[5].mxu0  ;;  %v702_v57 = vpop.f32.mrb[5].mxu1 }
  0xff   :  { %v667_v58 = vadd.f32 %v666_v56, %v665_v54  ;;  %v668_v59 = vpop.f32.mrb[6].mxu0  ;;  %v966_v60 = vadd.f32 %v702_v57, %v701_v55  ;;  %v704_v61 = vpop.f32.mrb[6].mxu1 }
 0x100   :  { %v669_v62 = vpop.f32.mrb[7].mxu0  ;;  %v705_v63 = vpop.f32.mrb[7].mxu1 }
 0x101   :  { %v670_v0 = vadd.f32 %v669_v62, %v668_v59  ;;  %v968_v1 = vadd.f32 %v705_v63, %v704_v61  ;;  %v389_v3 = vadd.f32 %v667_v58, %v973_v2 }
 0x103   :  { %v392_v12 = vadd.f32 %v670_v0, %v973_v2 }
 0x105   :  { %v671_v4 = vpop.f32.mrb[8].mxu0  ;;  %v723_v5 = vpop.f32.mrb[8].mxu1 }
 0x106   :  { %v486_v8 = vadd.f32 %v723_v5, %v389_v3  ;;  %v672_v9 = vpop.f32.mrb[9].mxu0  ;;  %v477_v10 = vpop.f32.mrb[9].mxu1 }
 0x107   :  { %v673_v13 = vadd.f32 %v672_v9, %v671_v4  ;;  %v478_v14 = vadd.f32 %v477_v10, %v381_v7  ;;  %v674_v15 = vpop.f32.mrb[10].mxu0  ;;  %v724_v16 = vpop.f32.mrb[10].mxu1  ;;  %v548_v7 = vld [vmem:[%s1094_s3 + $0x40] sm:$0xff]  ;;  %v549_v10 = vld [vmem:[%s1094_s3 + $0x48] sm:$0xff] }
 0x108   :  { %v558_v19 = vadd.f32 %v542_v6, %v486_v8  ;;  %v489_v20 = vadd.f32 %v724_v16, %v392_v12  ;;  %v675_v21 = vpop.f32.mrb[11].mxu0  ;;  %v480_v22 = vpop.f32.mrb[11].mxu1  ;;  %v554_v16 = vld [vmem:[%s1094_s3 + $0x70] sm:$0xff] }
 0x109   :  { %v556_v24 = vadd.f32 %v540_v11, %v478_v14  ;;  %v676_v25 = vadd.f32 %v675_v21, %v674_v15  ;;  %v481_v26 = vadd.f32 %v480_v22, %v384_v18  ;;  %v397_v31 = vadd.f32 %v673_v13, %v973_v2  ;;  %v552_v21 = vld [vmem:[%s1094_s3 + $0x60] sm:$0xff] }
 0x10a   :  { %574 = vst [vmem:[%s1095_s4 + $0x10] sm:$0xff] %v558_v19  ;;  %v559_v27 = vadd.f32 %v543_v17, %v489_v20  ;;  %v437_v11 = vadd.f32 %v966_v60, %v973_v2  ;;  %v429_v17 = vadd.f32 %v962_v48, %v973_v2  ;;  %v440_v60 = vadd.f32 %v968_v1, %v973_v2  ;;  %v555_v48 = vld [vmem:[%s1094_s3 + $0x78] sm:$0xff] }
 0x10b   :  { %572 = vst [vmem:[%s1095_s4] sm:$0xff] %v556_v24  ;;  %v557_v28 = vadd.f32 %v541_v23, %v481_v26  ;;  %v400_v39 = vadd.f32 %v676_v25, %v973_v2 }
 0x10c   :  { %575 = vst [vmem:[%s1095_s4 + $0x18] sm:$0xff] %v559_v27  ;;  %v432_v27 = vadd.f32 %v964_v53, %v973_v2  ;;  %v550_v53 = vld [vmem:[%s1094_s3 + $0x50] sm:$0xff] }
 0x10d   :  { %573 = vst [vmem:[%s1095_s4 + $0x8] sm:$0xff] %v557_v28  ;;  %v677_v29 = vpop.f32.mrb[12].mxu0  ;;  %v727_v30 = vpop.f32.mrb[12].mxu1 }
 0x10e   :  { %v678_v32 = vpop.f32.mrb[13].mxu0  ;;  %v493_v33 = vpop.f32.mrb[13].mxu1 }
 0x10f   :  { %v679_v35 = vadd.f32 %v678_v32, %v677_v29  ;;  %v494_v36 = vadd.f32 %v493_v33, %v397_v31  ;;  %v680_v37 = vpop.f32.mrb[14].mxu0  ;;  %v728_v38 = vpop.f32.mrb[14].mxu1  ;;  %v553_v31 = vld [vmem:[%s1094_s3 + $0x68] sm:$0xff] }
 0x110   :  { %v681_v40 = vpop.f32.mrb[15].mxu0  ;;  %v496_v41 = vpop.f32.mrb[15].mxu1 }
 0x111   :  { %v405_v43 = vadd.f32 %v679_v35, %v973_v2  ;;  %v560_v44 = vadd.f32 %v544_v34, %v494_v36  ;;  %v682_v45 = vadd.f32 %v681_v40, %v680_v37  ;;  %v497_v46 = vadd.f32 %v496_v41, %v400_v39  ;;  %v551_v40 = vld [vmem:[%s1094_s3 + $0x58] sm:$0xff] }
 0x113   :  { %v502_v49 = vadd.f32 %v727_v30, %v405_v43  ;;  %576 = vst [vmem:[%s1095_s4 + $0x20] sm:$0xff] %v560_v44  ;;  %v408_v50 = vadd.f32 %v682_v45, %v973_v2  ;;  %v561_v51 = vadd.f32 %v545_v42, %v497_v46 }
 0x115   :  { %v562_v54 = vadd.f32 %v546_v47, %v502_v49  ;;  %v505_v55 = vadd.f32 %v728_v38, %v408_v50  ;;  %577 = vst [vmem:[%s1095_s4 + $0x28] sm:$0xff] %v561_v51  ;;  %v683_v56 = vpop.f32.mrb[16].mxu0  ;;  %v731_v57 = vpop.f32.mrb[16].mxu1 }
 0x116   :  { %v684_v58 = vpop.f32.mrb[17].mxu0  ;;  %v509_v59 = vpop.f32.mrb[17].mxu1 }
 0x117   :  { %578 = vst [vmem:[%s1095_s4 + $0x30] sm:$0xff] %v562_v54  ;;  %v563_v61 = vadd.f32 %v547_v52, %v505_v55  ;;  %v685_v62 = vadd.f32 %v684_v58, %v683_v56  ;;  %v686_v63 = vpop.f32.mrb[18].mxu0  ;;  %v732_v0 = vpop.f32.mrb[18].mxu1 }
 0x118   :  { %v687_v3 = vpop.f32.mrb[19].mxu0  ;;  %v512_v4 = vpop.f32.mrb[19].mxu1 }
 0x119   :  { %579 = vst [vmem:[%s1095_s4 + $0x38] sm:$0xff] %v563_v61  ;;  %v413_v5 = vadd.f32 %v685_v62, %v973_v2  ;;  %v688_v6 = vadd.f32 %v687_v3, %v686_v63 }
 0x11b   :  { %v510_v8 = vadd.f32 %v509_v59, %v413_v5  ;;  %v416_v9 = vadd.f32 %v688_v6, %v973_v2 }
 0x11d   :  { %v564_v12 = vadd.f32 %v548_v7, %v510_v8  ;;  %v513_v13 = vadd.f32 %v512_v4, %v416_v9  ;;  %v689_v14 = vpop.f32.mrb[20].mxu0  ;;  %v735_v15 = vpop.f32.mrb[20].mxu1 }
 0x11e   :  { %v534_v18 = vadd.f32 %v735_v15, %v437_v11  ;;  %v690_v19 = vpop.f32.mrb[21].mxu0  ;;  %v525_v20 = vpop.f32.mrb[21].mxu1 }
 0x11f   :  { %580 = vst [vmem:[%s1095_s4 + $0x40] sm:$0xff] %v564_v12  ;;  %v565_v22 = vadd.f32 %v549_v10, %v513_v13  ;;  %v691_v23 = vadd.f32 %v690_v19, %v689_v14  ;;  %v526_v24 = vadd.f32 %v525_v20, %v429_v17  ;;  %v692_v25 = vpop.f32.mrb[22].mxu0  ;;  %v736_v26 = vpop.f32.mrb[22].mxu1 }
 0x120   :  { %v570_v28 = vadd.f32 %v554_v16, %v534_v18  ;;  %v537_v29 = vadd.f32 %v736_v26, %v440_v60  ;;  %v693_v30 = vpop.f32.mrb[23].mxu0  ;;  %v528_v1 = vpop.f32.mrb[23].mxu1 }
 0x121   :  { %581 = vst [vmem:[%s1095_s4 + $0x48] sm:$0xff] %v565_v22  ;;  %v421_v32 = vadd.f32 %v691_v23, %v973_v2  ;;  %v568_v33 = vadd.f32 %v552_v21, %v526_v24  ;;  %v694_v34 = vadd.f32 %v693_v30, %v692_v25  ;;  %v529_v35 = vadd.f32 %v528_v1, %v432_v27 }
 0x122   :  { %586 = vst [vmem:[%s1095_s4 + $0x70] sm:$0xff] %v570_v28  ;;  %v571_v36 = vadd.f32 %v555_v48, %v537_v29 }
 0x123   :  { %v518_v37 = vadd.f32 %v731_v57, %v421_v32  ;;  %584 = vst [vmem:[%s1095_s4 + $0x60] sm:$0xff] %v568_v33  ;;  %v424_v38 = vadd.f32 %v694_v34, %v973_v2  ;;  %v569_v39 = vadd.f32 %v553_v31, %v529_v35 }
 0x124   :  { %587 = vst [vmem:[%s1095_s4 + $0x78] sm:$0xff] %v571_v36 }
 0x125   :  { %v566_v41 = vadd.f32 %v550_v53, %v518_v37  ;;  %v521_v42 = vadd.f32 %v732_v0, %v424_v38  ;;  %585 = vst [vmem:[%s1095_s4 + $0x68] sm:$0xff] %v569_v39 }
 0x127   :  { %582 = vst [vmem:[%s1095_s4 + $0x50] sm:$0xff] %v566_v41  ;;  %v567_v2 = vadd.f32 %v551_v40, %v521_v42 }
 0x129   :  { %583 = vst [vmem:[%s1095_s4 + $0x58] sm:$0xff] %v567_v2 }

// kernel: resnet_encoder.28
= control target key start
LH: loop header
LB: loop body
LE: loop exit
PB: predicated region body
PF: predicated region fallthrough
CT: control target
= control target key end

     0   :  { %vm318_vm0 = vcmask 261120   ;;  %s1019_s1 = inlined_call_operand.vmem [shape: bf16[288,128], index: 1, kind: input, shape index: {}]   ;;  %s1020_s0 = inlined_call_operand.vmem [shape: bf16[128,288], index: 0, kind: input, shape index: {}]   ;;  %s1021_s2 = inlined_call_operand.vmem [shape: f32[1,128], index: 2, kind: input, shape index: {}]   ;;  %s1022_s3 = inlined_call_operand.vmem [shape: f32[128,128], index: 3, kind: output, shape index: {}]  }
   0x1   :  { %v734_v0 = vld [vmem:[%s1019_s1 + $0x40] sm:$0xff]   ;;  %v736_v2 = vld [vmem:[%s1019_s1 + $0x48] sm:$0xff]   ;;  %v738_v4 = vld [vmem:[%s1019_s1 + $0x50] sm:$0xff]  }
   0x2   :  { %v735_v1 = vld [vmem:[%s1019_s1] sm:$0xff]   ;;  %624 = vmatprep.subr.bf16.mxu0 %v734_v0  ;;  %718 = vmatprep.subr.bf16.mxu1 %v734_v0  ;;  %v737_v3 = vld [vmem:[%s1019_s1 + $0x8] sm:$0xff]   ;;  %v739_v5 = vld [vmem:[%s1019_s1 + $0x10] sm:$0xff]  }
   0x3   :  { %625 = vmatpush3.bf16.msra.mxu0 %v735_v1  ;;  %726 = vmatpush3.bf16.msra.mxu1 %v735_v1  ;;  %v740_v6 = vld [vmem:[%s1019_s1 + $0x58] sm:$0xff]   ;;  %v742_v8 = vld [vmem:[%s1019_s1 + $0x60] sm:$0xff]   ;;  %v744_v10 = vld [vmem:[%s1019_s1 + $0x68] sm:$0xff]  }
   0x4   :  { %626 = vmatprep.subr.bf16.mxu0 %v736_v2  ;;  %719 = vmatprep.subr.bf16.mxu1 %v736_v2  ;;  %v741_v7 = vld [vmem:[%s1019_s1 + $0x18] sm:$0xff]   ;;  %v743_v9 = vld [vmem:[%s1019_s1 + $0x20] sm:$0xff]   ;;  %v745_v13 = vld [vmem:[%s1019_s1 + $0x28] sm:$0xff]  }
   0x5   :  { %v752_v11 = vld [vmem:[%s1020_s0 + $0x4] ss:$12 sps:$4 sm:$0xff]   ;;  %v755_v12 = vld [vmem:[%s1020_s0 + $0x94] ss:$12 sps:$4 sm:$0xff]   ;;  %v748_v16 = vld [vmem:[%s1019_s1 + $0x78] sm:$0xff]  }
   0x6   :  { %v746_v14 = vld [vmem:[%s1019_s1 + $0x70] sm:$0xff]   ;;  %375 = vmatprep.mubr.bf16.mxu0 %v752_v11  ;;  %423 = vmatprep.mubr.bf16.mxu1 %v755_v12  ;;  %v749_v17 = vld [vmem:[%s1019_s1 + $0x38] sm:$0xff]   ;;  %v750_v18 = vld [vmem:[%s1020_s0] ss:$12 sps:$4 sm:$0xff]  }
   0x7   :  { %627 = vmatpush3.bf16.msra.mxu0 %v737_v3  ;;  %727 = vmatpush3.bf16.msra.mxu1 %v737_v3  ;;  %v747_v15 = vld [vmem:[%s1019_s1 + $0x30] sm:$0xff]   ;;  %v756_v19 = vld [vmem:[%s1019_s1 + $0x80] sm:$0xff]   ;;  %v757_v21 = vld [vmem:[%s1020_s0 + $0x1c] ss:$12 sps:$4 sm:$0xff]  }
   0x8   :  { %628 = vmatprep.subr.bf16.mxu0 %v738_v4  ;;  %720 = vmatprep.subr.bf16.mxu1 %v738_v4  ;;  %v753_v20 = vld [vmem:[%s1020_s0 + $0x90] ss:$12 sps:$4 sm:$0xff]   ;;  %v759_v22 = vld [vmem:[%s1020_s0 + $0xac] ss:$12 sps:$4 sm:$0xff]   ;;  %v762_v25 = vld [vmem:[%s1020_s0 + $0xa8] ss:$12 sps:$4 sm:$0xff]  }
   0x9   :  { %v763_v23 = vld [vmem:[%s1019_s1 + $0x88] sm:$0xff]   ;;  %v761_v24 = vld [vmem:[%s1020_s0 + $0x18] ss:$12 sps:$4 sm:$0xff]   ;;  %v764_v26 = vld [vmem:[%s1020_s0 + $0x34] ss:$12 sps:$4 sm:$0xff]  }
   0xa   :  { %v766_v27 = vld [vmem:[%s1020_s0 + $0x8] ss:$12 sps:$4 sm:$0xff]   ;;  %v767_v28 = vld [vmem:[%s1020_s0 + $0x30] ss:$12 sps:$4 sm:$0xff]   ;;  %v768_v29 = vld [vmem:[%s1020_s0 + $0x20] ss:$12 sps:$4 sm:$0xff]  }
   0xb   :  { %629 = vmatpush3.bf16.msra.mxu0 %v739_v5  ;;  %728 = vmatpush3.bf16.msra.mxu1 %v739_v5  ;;  %v769_v30 = vld [vmem:[%s1020_s0 + $0x4c] ss:$12 sps:$4 sm:$0xff]   ;;  %v772_v32 = vld [vmem:[%s1020_s0 + $0x48] ss:$12 sps:$4 sm:$0xff]   ;;  %v773_v33 = vld [vmem:[%s1020_s0 + $0x50] ss:$12 sps:$4 sm:$0xff]  }
   0xc   :  { %630 = vmatprep.subr.bf16.mxu0 %v740_v6  ;;  %721 = vmatprep.subr.bf16.mxu1 %v740_v6  ;;  %v771_v31 = vld [vmem:[%s1020_s0 + $0x38] ss:$12 sps:$4 sm:$0xff]   ;;  %v776_v35 = vld [vmem:[%s1020_s0 + $0x68] ss:$12 sps:$4 sm:$0xff]   ;;  %v777_v36 = vld [vmem:[%s1020_s0 + $0x60] ss:$12 sps:$4 sm:$0xff]  }
   0xd   :  { %v774_v34 = vld [vmem:[%s1020_s0 + $0x64] ss:$12 sps:$4 sm:$0xff]   ;;  %v778_v37 = vld [vmem:[%s1020_s0 + $0x80] ss:$12 sps:$4 sm:$0xff]   ;;  %v779_v38 = vld [vmem:[%s1020_s0 + $0x7c] ss:$12 sps:$4 sm:$0xff]  }
   0xe   :  { %v781_v39 = vld [vmem:[%s1020_s0 + $0x98] ss:$12 sps:$4 sm:$0xff]   ;;  %v783_v41 = vld [vmem:[%s1020_s0 + $0xb0] ss:$12 sps:$4 sm:$0xff]   ;;  %v949_v2 = vld [vmem:[%s1021_s2] ss:$0 sm:$0xff] }
   0xf   :  { %631 = vmatpush3.bf16.msra.mxu0 %v741_v7  ;;  %729 = vmatpush3.bf16.msra.mxu1 %v741_v7  ;;  %v782_v40 = vld [vmem:[%s1020_s0 + $0x78] ss:$12 sps:$4 sm:$0xff]  }
  0x10   :  { %632 = vmatprep.subr.bf16.mxu0 %v742_v8  ;;  %722 = vmatprep.subr.bf16.mxu1 %v742_v8 }
  0x13   :  { %633 = vmatpush3.bf16.msra.mxu0 %v743_v9  ;;  %730 = vmatpush3.bf16.msra.mxu1 %v743_v9 }
  0x14   :  { %634 = vmatprep.subr.bf16.mxu0 %v744_v10  ;;  %723 = vmatprep.subr.bf16.mxu1 %v744_v10 }
  0x17   :  { %635 = vmatpush3.bf16.msra.mxu0 %v745_v13  ;;  %731 = vmatpush3.bf16.msra.mxu1 %v745_v13 }
  0x18   :  { %636 = vmatprep.subr.bf16.mxu0 %v746_v14  ;;  %724 = vmatprep.subr.bf16.mxu1 %v746_v14 }
  0x1b   :  { %637 = vmatpush3.bf16.msra.mxu0 %v747_v15  ;;  %732 = vmatpush3.bf16.msra.mxu1 %v747_v15 }
  0x1c   :  { %638 = vmatprep.subr.bf16.mxu0 %v748_v16  ;;  %725 = vmatprep.subr.bf16.mxu1 %v748_v16 }
  0x1f   :  { %639 = vmatpush3.bf16.msra.mxu0 %v749_v17  ;;  %733 = vmatpush3.bf16.msra.mxu1 %v749_v17 }
  0x20   :  { %698 = vmatprep.subr.bf16.mxu1 %v756_v19 }
  0x22   :  { %376 = vmatmul.mubr.bf16.vlgmr.msra.gmra.mrb[0].mxu0 %v750_v18  ;;  %424 = vmatmul.mubr.bf16.vlgmr.msra.gmra.mrb[0].mxu1 %v753_v20 }
  0x23   :  { %699 = vmatpush3.bf16.msra.mxu1 %v756_v19  ;;  %383 = vmatprep.mubr.bf16.mxu0 %v757_v21 }
  0x24   :  { %431 = vmatprep.mubr.bf16.mxu1 %v759_v22  ;;  %700 = vmatprep.subr.bf16.mxu1 %v763_v23 }
  0x27   :  { %701 = vmatpush3.bf16.msra.mxu1 %v763_v23 }
  0x2a   :  { %384 = vmatmul.mubr.bf16.gmra.mrb[4].mxu0 %v761_v24  ;;  %432 = vmatmul.mubr.bf16.gmra.mrb[4].mxu1 %v762_v25 }
  0x2b   :  { %391 = vmatprep.mubr.bf16.mxu0 %v764_v26  ;;  %702 = vmatprep.mubr.msk.bf16.mxu1 %vm318_vm0, %v766_v27 }
  0x32   :  { %392 = vmatmul.mubr.bf16.gmra.mrb[8].mxu0 %v767_v28  ;;  %703 = vmatmul.mubr.msk.bf16.vlgmr.msra.gmra.mrb[8].mxu1 %vm318_vm0, %v768_v29 }
  0x33   :  { %399 = vmatprep.mubr.bf16.mxu0 %v769_v30  ;;  %706 = vmatprep.mubr.msk.bf16.mxu1 %vm318_vm0, %v771_v31 }
  0x3a   :  { %400 = vmatmul.mubr.bf16.gmra.mrb[12].mxu0 %v772_v32  ;;  %707 = vmatmul.mubr.msk.bf16.gmra.mrb[12].mxu1 %vm318_vm0, %v773_v33 }
  0x3b   :  { %407 = vmatprep.mubr.bf16.mxu0 %v774_v34  ;;  %710 = vmatprep.mubr.msk.bf16.mxu1 %vm318_vm0, %v776_v35 }
  0x42   :  { %408 = vmatmul.mubr.bf16.gmra.mrb[16].mxu0 %v777_v36  ;;  %711 = vmatmul.mubr.msk.bf16.gmra.mrb[16].mxu1 %vm318_vm0, %v778_v37 }
  0x43   :  { %415 = vmatprep.mubr.bf16.mxu0 %v779_v38  ;;  %714 = vmatprep.mubr.msk.bf16.mxu1 %vm318_vm0, %v781_v39 }
  0x4a   :  { %416 = vmatmul.mubr.bf16.gmra.mrb[20].mxu0 %v782_v40  ;;  %715 = vmatmul.mubr.msk.bf16.gmra.mrb[20].mxu1 %vm318_vm0, %v783_v41 }
  0xf5   :  { %v640_v42 = vpop.f32.mrb[0].mxu0  ;;  %v676_v43 = vpop.f32.mrb[0].mxu1 }
  0xf6   :  { %v641_v44 = vpop.f32.mrb[1].mxu0  ;;  %v677_v45 = vpop.f32.mrb[1].mxu1 }
  0xf7   :  { %v642_v46 = vadd.f32 %v641_v44, %v640_v42  ;;  %v643_v47 = vpop.f32.mrb[2].mxu0  ;;  %v938_v48 = vadd.f32 %v677_v45, %v676_v43  ;;  %v679_v49 = vpop.f32.mrb[2].mxu1 }
  0xf8   :  { %v644_v50 = vpop.f32.mrb[3].mxu0  ;;  %v680_v51 = vpop.f32.mrb[3].mxu1 }
  0xf9   :  { %v645_v52 = vadd.f32 %v644_v50, %v643_v47  ;;  %v940_v53 = vadd.f32 %v680_v51, %v679_v49  ;;  %v378_v6 = vadd.f32 %v642_v46, %v949_v2 }
  0xfb   :  { %v381_v15 = vadd.f32 %v645_v52, %v949_v2 }
  0xfd   :  { %v646_v54 = vpop.f32.mrb[4].mxu0  ;;  %v682_v55 = vpop.f32.mrb[4].mxu1 }
  0xfe   :  { %v647_v56 = vpop.f32.mrb[5].mxu0  ;;  %v683_v57 = vpop.f32.mrb[5].mxu1 }
  0xff   :  { %v648_v58 = vadd.f32 %v647_v56, %v646_v54  ;;  %v649_v59 = vpop.f32.mrb[6].mxu0  ;;  %v942_v60 = vadd.f32 %v683_v57, %v682_v55  ;;  %v685_v61 = vpop.f32.mrb[6].mxu1 }
 0x100   :  { %v650_v62 = vpop.f32.mrb[7].mxu0  ;;  %v686_v63 = vpop.f32.mrb[7].mxu1 }
 0x101   :  { %v651_v0 = vadd.f32 %v650_v62, %v649_v59  ;;  %v944_v1 = vadd.f32 %v686_v63, %v685_v61  ;;  %v386_v3 = vadd.f32 %v648_v58, %v949_v2  ;;  %v434_v63 = vadd.f32 %v942_v60, %v949_v2 }
 0x103   :  { %v389_v10 = vadd.f32 %v651_v0, %v949_v2 }
 0x105   :  { %v652_v4 = vpop.f32.mrb[8].mxu0  ;;  %v704_v5 = vpop.f32.mrb[8].mxu1 }
 0x106   :  { %v483_v7 = vadd.f32 %v704_v5, %v386_v3  ;;  %v653_v8 = vpop.f32.mrb[9].mxu0  ;;  %v474_v9 = vpop.f32.mrb[9].mxu1 }
 0x107   :  { %v654_v11 = vadd.f32 %v653_v8, %v652_v4  ;;  %v475_v12 = vadd.f32 %v474_v9, %v378_v6  ;;  %v655_v13 = vpop.f32.mrb[10].mxu0  ;;  %v705_v14 = vpop.f32.mrb[10].mxu1  ;;  %v426_v6 = vadd.f32 %v938_v48, %v949_v2 }
 0x108   :  { %v539_v16 = vmax.f32 %v483_v7, 0.0  ;;  %v486_v17 = vadd.f32 %v705_v14, %v389_v10  ;;  %v656_v18 = vpop.f32.mrb[11].mxu0  ;;  %v477_v19 = vpop.f32.mrb[11].mxu1  ;;  %v437_v10 = vadd.f32 %v944_v1, %v949_v2 }
 0x109   :  { %v537_v20 = vmax.f32 %v475_v12, 0.0  ;;  %v657_v21 = vadd.f32 %v656_v18, %v655_v13  ;;  %v478_v22 = vadd.f32 %v477_v19, %v381_v15  ;;  %v394_v27 = vadd.f32 %v654_v11, %v949_v2 }
 0x10a   :  { %555 = vst [vmem:[%s1022_s3 + $0x10] sm:$0xff] %v539_v16  ;;  %v540_v23 = vmax.f32 %v486_v17, 0.0  ;;  %v429_v15 = vadd.f32 %v940_v53, %v949_v2 }
 0x10b   :  { %553 = vst [vmem:[%s1022_s3] sm:$0xff] %v537_v20  ;;  %v538_v24 = vmax.f32 %v478_v22, 0.0  ;;  %v397_v34 = vadd.f32 %v657_v21, %v949_v2 }
 0x10c   :  { %556 = vst [vmem:[%s1022_s3 + $0x18] sm:$0xff] %v540_v23 }
 0x10d   :  { %554 = vst [vmem:[%s1022_s3 + $0x8] sm:$0xff] %v538_v24  ;;  %v658_v25 = vpop.f32.mrb[12].mxu0  ;;  %v708_v26 = vpop.f32.mrb[12].mxu1 }
 0x10e   :  { %v659_v28 = vpop.f32.mrb[13].mxu0  ;;  %v490_v29 = vpop.f32.mrb[13].mxu1 }
 0x10f   :  { %v660_v30 = vadd.f32 %v659_v28, %v658_v25  ;;  %v491_v31 = vadd.f32 %v490_v29, %v394_v27  ;;  %v661_v32 = vpop.f32.mrb[14].mxu0  ;;  %v709_v33 = vpop.f32.mrb[14].mxu1 }
 0x110   :  { %v662_v35 = vpop.f32.mrb[15].mxu0  ;;  %v493_v36 = vpop.f32.mrb[15].mxu1 }
 0x111   :  { %v402_v37 = vadd.f32 %v660_v30, %v949_v2  ;;  %v541_v38 = vmax.f32 %v491_v31, 0.0  ;;  %v663_v39 = vadd.f32 %v662_v35, %v661_v32  ;;  %v494_v40 = vadd.f32 %v493_v36, %v397_v34 }
 0x113   :  { %v499_v41 = vadd.f32 %v708_v26, %v402_v37  ;;  %557 = vst [vmem:[%s1022_s3 + $0x20] sm:$0xff] %v541_v38  ;;  %v405_v42 = vadd.f32 %v663_v39, %v949_v2  ;;  %v542_v43 = vmax.f32 %v494_v40, 0.0 }
 0x115   :  { %v543_v44 = vmax.f32 %v499_v41, 0.0  ;;  %v502_v45 = vadd.f32 %v709_v33, %v405_v42  ;;  %558 = vst [vmem:[%s1022_s3 + $0x28] sm:$0xff] %v542_v43  ;;  %v664_v46 = vpop.f32.mrb[16].mxu0  ;;  %v712_v47 = vpop.f32.mrb[16].mxu1 }
 0x116   :  { %v665_v49 = vpop.f32.mrb[17].mxu0  ;;  %v506_v50 = vpop.f32.mrb[17].mxu1 }
 0x117   :  { %559 = vst [vmem:[%s1022_s3 + $0x30] sm:$0xff] %v543_v44  ;;  %v544_v51 = vmax.f32 %v502_v45, 0.0  ;;  %v666_v52 = vadd.f32 %v665_v49, %v664_v46  ;;  %v667_v54 = vpop.f32.mrb[18].mxu0  ;;  %v713_v55 = vpop.f32.mrb[18].mxu1 }
 0x118   :  { %v668_v56 = vpop.f32.mrb[19].mxu0  ;;  %v509_v57 = vpop.f32.mrb[19].mxu1 }
 0x119   :  { %560 = vst [vmem:[%s1022_s3 + $0x38] sm:$0xff] %v544_v51  ;;  %v410_v58 = vadd.f32 %v666_v52, %v949_v2  ;;  %v669_v59 = vadd.f32 %v668_v56, %v667_v54 }
 0x11b   :  { %v507_v61 = vadd.f32 %v506_v50, %v410_v58  ;;  %v413_v62 = vadd.f32 %v669_v59, %v949_v2 }
 0x11d   :  { %v545_v0 = vmax.f32 %v507_v61, 0.0  ;;  %v510_v3 = vadd.f32 %v509_v57, %v413_v62  ;;  %v670_v4 = vpop.f32.mrb[20].mxu0  ;;  %v716_v5 = vpop.f32.mrb[20].mxu1 }
 0x11e   :  { %v531_v7 = vadd.f32 %v716_v5, %v434_v63  ;;  %v671_v8 = vpop.f32.mrb[21].mxu0  ;;  %v522_v9 = vpop.f32.mrb[21].mxu1 }
 0x11f   :  { %561 = vst [vmem:[%s1022_s3 + $0x40] sm:$0xff] %v545_v0  ;;  %v546_v11 = vmax.f32 %v510_v3, 0.0  ;;  %v672_v12 = vadd.f32 %v671_v8, %v670_v4  ;;  %v523_v60 = vadd.f32 %v522_v9, %v426_v6  ;;  %v673_v13 = vpop.f32.mrb[22].mxu0  ;;  %v717_v14 = vpop.f32.mrb[22].mxu1 }
 0x120   :  { %v551_v16 = vmax.f32 %v531_v7, 0.0  ;;  %v534_v48 = vadd.f32 %v717_v14, %v437_v10  ;;  %v674_v17 = vpop.f32.mrb[23].mxu0  ;;  %v525_v18 = vpop.f32.mrb[23].mxu1 }
 0x121   :  { %562 = vst [vmem:[%s1022_s3 + $0x48] sm:$0xff] %v546_v11  ;;  %v418_v1 = vadd.f32 %v672_v12, %v949_v2  ;;  %v549_v19 = vmax.f32 %v523_v60, 0.0  ;;  %v675_v20 = vadd.f32 %v674_v17, %v673_v13  ;;  %v526_v21 = vadd.f32 %v525_v18, %v429_v15 }
 0x122   :  { %567 = vst [vmem:[%s1022_s3 + $0x70] sm:$0xff] %v551_v16  ;;  %v552_v22 = vmax.f32 %v534_v48, 0.0 }
 0x123   :  { %v515_v23 = vadd.f32 %v712_v47, %v418_v1  ;;  %565 = vst [vmem:[%s1022_s3 + $0x60] sm:$0xff] %v549_v19  ;;  %v421_v53 = vadd.f32 %v675_v20, %v949_v2  ;;  %v550_v24 = vmax.f32 %v526_v21, 0.0 }
 0x124   :  { %568 = vst [vmem:[%s1022_s3 + $0x78] sm:$0xff] %v552_v22 }
 0x125   :  { %v547_v25 = vmax.f32 %v515_v23, 0.0  ;;  %v518_v26 = vadd.f32 %v713_v55, %v421_v53  ;;  %566 = vst [vmem:[%s1022_s3 + $0x68] sm:$0xff] %v550_v24 }
 0x127   :  { %563 = vst [vmem:[%s1022_s3 + $0x50] sm:$0xff] %v547_v25  ;;  %v548_v27 = vmax.f32 %v518_v26, 0.0 }
 0x129   :  { %564 = vst [vmem:[%s1022_s3 + $0x58] sm:$0xff] %v548_v27 }

// kernel: resnet_encoder.31
= control target key start
LH: loop header
LB: loop body
LE: loop exit
PB: predicated region body
PF: predicated region fallthrough
CT: control target
= control target key end

     0   :  { %vm204_vm0 = vcmask 261120   ;;  %s521_s1 = inlined_call_operand.vmem [shape: bf16[288,128], index: 1, kind: input, shape index: {}]   ;;  %s522_s0 = inlined_call_operand.vmem [shape: bf16[32,288], index: 0, kind: input, shape index: {}]   ;;  %s523_s2 = inlined_call_operand.vmem [shape: f32[1,128], index: 2, kind: input, shape index: {}]   ;;  %s524_s3 = inlined_call_operand.vmem [shape: f32[32,128], index: 3, kind: output, shape index: {}]  }
   0x1   :  { %v388_v0 = vld [vmem:[%s521_s1 + $0x40] sm:$0xff]   ;;  %v390_v2 = vld [vmem:[%s521_s1 + $0x48] sm:$0xff]   ;;  %v392_v4 = vld [vmem:[%s521_s1 + $0x50] sm:$0xff]  }
   0x2   :  { %v389_v1 = vld [vmem:[%s521_s1] sm:$0xff]   ;;  %348 = vmatprep.subr.bf16.mxu0 %v388_v0  ;;  %v391_v3 = vld [vmem:[%s521_s1 + $0x8] sm:$0xff]   ;;  %v393_v5 = vld [vmem:[%s521_s1 + $0x10] sm:$0xff]  }
   0x3   :  { %349 = vmatpush3.bf16.msra.mxu0 %v389_v1  ;;  %v394_v6 = vld [vmem:[%s521_s1 + $0x58] sm:$0xff]   ;;  %v396_v8 = vld [vmem:[%s521_s1 + $0x60] sm:$0xff]   ;;  %v398_v11 = vld [vmem:[%s521_s1 + $0x68] sm:$0xff]  }
   0x4   :  { %350 = vmatprep.subr.bf16.mxu0 %v390_v2  ;;  %v395_v7 = vld [vmem:[%s521_s1 + $0x18] sm:$0xff]   ;;  %v397_v9 = vld [vmem:[%s521_s1 + $0x20] sm:$0xff]   ;;  %v399_v12 = vld [vmem:[%s521_s1 + $0x28] sm:$0xff]  }
   0x5   :  { %v403_v10 = vld [vmem:[%s521_s1 + $0x80] sm:$0xff]   ;;  %v400_v13 = vld [vmem:[%s521_s1 + $0x70] sm:$0xff]   ;;  %v408_v15 = vld [vmem:[%s521_s1 + $0x88] sm:$0xff]  }
   0x6   :  { %380 = vmatprep.subr.bf16.mxu1 %v403_v10  ;;  %v407_v14 = vld [vmem:[%s522_s0 + $0x4] ss:$12 sps:$4 sm:$0xff]   ;;  %v409_v16 = vld [vmem:[%s522_s0 + $0x8] ss:$12 sps:$4 sm:$0xff]   ;;  %v410_v17 = vld [vmem:[%s522_s0 + $0x20] ss:$12 sps:$4 sm:$0xff]  }
   0x7   :  { %351 = vmatpush3.bf16.msra.mxu0 %v391_v3  ;;  %381 = vmatpush3.bf16.msra.mxu1 %v403_v10  ;;  %v401_v18 = vld [vmem:[%s521_s1 + $0x30] sm:$0xff]   ;;  %v402_v19 = vld [vmem:[%s521_s1 + $0x78] sm:$0xff]   ;;  %v405_v21 = vld [vmem:[%s522_s0] ss:$12 sps:$4 sm:$0xff]  }
   0x8   :  { %352 = vmatprep.subr.bf16.mxu0 %v392_v4  ;;  %243 = vmatprep.mubr.bf16.mxu0 %v407_v14  ;;  %v404_v20 = vld [vmem:[%s521_s1 + $0x38] sm:$0xff]   ;;  %v321_v30 = vld [vmem:[%s523_s2] ss:$0 sm:$0xff] }
   0x9   :  { %382 = vmatprep.subr.bf16.mxu1 %v408_v15  ;;  %384 = vmatprep.mubr.msk.bf16.mxu1 %vm204_vm0, %v409_v16  ;;  %v411_v22 = vld [vmem:[%s522_s0 + $0x1c] ss:$12 sps:$4 sm:$0xff]   ;;  %v413_v23 = vld [vmem:[%s522_s0 + $0x18] ss:$12 sps:$4 sm:$0xff]  }
   0xb   :  { %353 = vmatpush3.bf16.msra.mxu0 %v393_v5  ;;  %383 = vmatpush3.bf16.msra.mxu1 %v408_v15 }
   0xc   :  { %354 = vmatprep.subr.bf16.mxu0 %v394_v6 }
   0xe   :  { %385 = vmatmul.mubr.msk.bf16.vlgmr.msra.gmra.mrb[0].mxu1 %vm204_vm0, %v410_v17 }
   0xf   :  { %355 = vmatpush3.bf16.msra.mxu0 %v395_v7 }
  0x10   :  { %356 = vmatprep.subr.bf16.mxu0 %v396_v8 }
  0x13   :  { %357 = vmatpush3.bf16.msra.mxu0 %v397_v9 }
  0x14   :  { %358 = vmatprep.subr.bf16.mxu0 %v398_v11 }
  0x17   :  { %359 = vmatpush3.bf16.msra.mxu0 %v399_v12 }
  0x18   :  { %360 = vmatprep.subr.bf16.mxu0 %v400_v13 }
  0x1b   :  { %361 = vmatpush3.bf16.msra.mxu0 %v401_v18 }
  0x1c   :  { %362 = vmatprep.subr.bf16.mxu0 %v402_v19 }
  0x1f   :  { %363 = vmatpush3.bf16.msra.mxu0 %v404_v20 }
  0x22   :  { %244 = vmatmul.mubr.bf16.vlgmr.msra.gmra.mrb[0].mxu0 %v405_v21 }
  0x23   :  { %251 = vmatprep.mubr.bf16.mxu0 %v411_v22 }
  0x2a   :  { %252 = vmatmul.mubr.bf16.gmra.mrb[4].mxu0 %v413_v23 }
  0xe1   :  { %v386_v24 = vpop.f32.mrb[0].mxu1 }
  0xe2   :  { %v294_v25 = vpop.f32.mrb[1].mxu1 }
  0xe3   :  { %v387_v26 = vpop.f32.mrb[2].mxu1 }
  0xe4   :  { %v297_v27 = vpop.f32.mrb[3].mxu1 }
  0xf5   :  { %v364_v28 = vpop.f32.mrb[0].mxu0 }
  0xf6   :  { %v365_v29 = vpop.f32.mrb[1].mxu0 }
  0xf7   :  { %v366_v31 = vadd.f32 %v365_v29, %v364_v28  ;;  %v367_v32 = vpop.f32.mrb[2].mxu0 }
  0xf8   :  { %v368_v33 = vpop.f32.mrb[3].mxu0 }
  0xf9   :  { %v369_v34 = vadd.f32 %v368_v33, %v367_v32  ;;  %v246_v35 = vadd.f32 %v366_v31, %v321_v30 }
  0xfb   :  { %v295_v36 = vadd.f32 %v294_v25, %v246_v35  ;;  %v249_v37 = vadd.f32 %v369_v34, %v321_v30 }
  0xfd   :  { %v309_v38 = vmax.f32 %v295_v36, 0.0  ;;  %v298_v39 = vadd.f32 %v297_v27, %v249_v37  ;;  %v370_v40 = vpop.f32.mrb[4].mxu0 }
  0xfe   :  { %v371_v41 = vpop.f32.mrb[5].mxu0 }
  0xff   :  { %313 = vst [vmem:[%s524_s3] sm:$0xff] %v309_v38  ;;  %v310_v42 = vmax.f32 %v298_v39, 0.0  ;;  %v372_v43 = vadd.f32 %v371_v41, %v370_v40  ;;  %v373_v44 = vpop.f32.mrb[6].mxu0 }
 0x100   :  { %v374_v45 = vpop.f32.mrb[7].mxu0 }
 0x101   :  { %314 = vst [vmem:[%s524_s3 + $0x8] sm:$0xff] %v310_v42  ;;  %v254_v46 = vadd.f32 %v372_v43, %v321_v30  ;;  %v375_v47 = vadd.f32 %v374_v45, %v373_v44 }
 0x103   :  { %v303_v48 = vadd.f32 %v386_v24, %v254_v46  ;;  %v257_v49 = vadd.f32 %v375_v47, %v321_v30 }
 0x105   :  { %v311_v50 = vmax.f32 %v303_v48, 0.0  ;;  %v306_v51 = vadd.f32 %v387_v26, %v257_v49 }
 0x107   :  { %315 = vst [vmem:[%s524_s3 + $0x10] sm:$0xff] %v311_v50  ;;  %v312_v52 = vmax.f32 %v306_v51, 0.0 }
 0x109   :  { %316 = vst [vmem:[%s524_s3 + $0x18] sm:$0xff] %v312_v52 }

// kernel: resnet_encoder.30
= control target key start
LH: loop header
LB: loop body
LE: loop exit
PB: predicated region body
PF: predicated region fallthrough
CT: control target
= control target key end

     0   :  { %vm52_vm0 = vcmask 261120   ;;  %s186_s1 = inlined_call_operand.vmem [shape: bf16[32,128], index: 1, kind: input, shape index: {}]   ;;  %s187_s0 = inlined_call_operand.vmem [shape: bf16[32,32], index: 0, kind: input, shape index: {}]   ;;  %s188_s2 = inlined_call_operand.vmem [shape: f32[1,128], index: 2, kind: input, shape index: {}]   ;;  %s189_s3 = inlined_call_operand.vmem [shape: f32[32,128], index: 3, kind: output, shape index: {}]  }
   0x1   :  { %v135_v0 = vld [vmem:[%s186_s1] sm:$0xff]   ;;  %v136_v1 = vld [vmem:[%s186_s1 + $0x8] sm:$0xff]  }
   0x2   :  { %127 = vmatprep.subr.bf16.mxu0 %v135_v0  ;;  %v137_v2 = vld [vmem:[%s187_s0] sm:$0xff]   ;;  %v138_v3 = vld [vmem:[%s187_s0 + $0x8] sm:$0xff]  }
   0x3   :  { %128 = vmatpush3.bf16.msra.mxu0 %v135_v0  ;;  %131 = vmatprep.mubr.msk.bf16.mxu0 %vm52_vm0, %v137_v2  ;;  %v116_v4 = vld [vmem:[%s188_s2] ss:$0 sm:$0xff] }
   0x4   :  { %129 = vmatprep.subr.bf16.mxu0 %v136_v1 }
   0x7   :  { %130 = vmatpush3.bf16.msra.mxu0 %v136_v1 }
   0xa   :  { %132 = vmatmul.mubr.msk.bf16.vlgmr.msra.gmra.mrb[0].mxu0 %vm52_vm0, %v138_v3 }
  0xdd   :  { %v133_v5 = vpop.f32.mrb[0].mxu0 }
  0xde   :  { %v102_v6 = vadd.f32 %v133_v5, %v116_v4  ;;  %v93_v7 = vpop.f32.mrb[1].mxu0 }
  0xdf   :  { %v94_v8 = vadd.f32 %v116_v4, %v93_v7  ;;  %v134_v9 = vpop.f32.mrb[2].mxu0 }
  0xe0   :  { %110 = vst [vmem:[%s189_s3 + $0x10] sm:$0xff] %v102_v6  ;;  %v105_v10 = vadd.f32 %v134_v9, %v116_v4  ;;  %v96_v11 = vpop.f32.mrb[3].mxu0 }
  0xe1   :  { %108 = vst [vmem:[%s189_s3] sm:$0xff] %v94_v8  ;;  %v97_v12 = vadd.f32 %v116_v4, %v96_v11 }
  0xe2   :  { %111 = vst [vmem:[%s189_s3 + $0x18] sm:$0xff] %v105_v10 }
  0xe3   :  { %109 = vst [vmem:[%s189_s3 + $0x8] sm:$0xff] %v97_v12 }

// kernel: resnet_encoder.32
= control target key start
LH: loop header
LB: loop body
LE: loop exit
PB: predicated region body
PF: predicated region fallthrough
CT: control target
= control target key end

     0   :  { %vm375_vm0 = vcmask 523264   ;;  %s908_s1 = inlined_call_operand.vmem [shape: bf16[576,128], index: 1, kind: input, shape index: {}]   ;;  %s909_s0 = inlined_call_operand.vmem [shape: bf16[32,576], index: 0, kind: input, shape index: {}]   ;;  %s910_s2 = inlined_call_operand.vmem [shape: f32[1,128], index: 2, kind: input, shape index: {}]   ;;  %s911_s3 = inlined_call_operand.vmem [shape: f32[32,128], index: 3, kind: input, shape index: {}]   ;;  %s912_s4 = inlined_call_operand.vmem [shape: f32[32,128], index: 4, kind: output, shape index: {}]  }
   0x1   :  { %v668_v0 = vld [vmem:[%s908_s1 + $0x40] sm:$0xff]   ;;  %v672_v4 = vld [vmem:[%s908_s1 + $0x48] sm:$0xff]   ;;  %v676_v8 = vld [vmem:[%s908_s1 + $0x50] sm:$0xff]  }
   0x2   :  { %v669_v1 = vld [vmem:[%s908_s1] sm:$0xff]   ;;  %594 = vmatprep.subr.bf16.mxu0 %v668_v0  ;;  %v673_v5 = vld [vmem:[%s908_s1 + $0x8] sm:$0xff]   ;;  %v677_v9 = vld [vmem:[%s908_s1 + $0x10] sm:$0xff]  }
   0x3   :  { %v670_v2 = vld [vmem:[%s908_s1 + $0xc0] sm:$0xff]   ;;  %595 = vmatpush3.bf16.msra.mxu0 %v669_v1  ;;  %v674_v6 = vld [vmem:[%s908_s1 + $0xc8] sm:$0xff]   ;;  %v678_v10 = vld [vmem:[%s908_s1 + $0xd0] sm:$0xff]  }
   0x4   :  { %v671_v3 = vld [vmem:[%s908_s1 + $0x80] sm:$0xff]   ;;  %622 = vmatprep.subr.bf16.mxu1 %v670_v2  ;;  %596 = vmatprep.subr.bf16.mxu0 %v672_v4  ;;  %v675_v7 = vld [vmem:[%s908_s1 + $0x88] sm:$0xff]   ;;  %v679_v11 = vld [vmem:[%s908_s1 + $0x90] sm:$0xff]  }
   0x5   :  { %623 = vmatpush3.bf16.msra.mxu1 %v671_v3  ;;  %v680_v12 = vld [vmem:[%s908_s1 + $0x58] sm:$0xff]   ;;  %v684_v16 = vld [vmem:[%s908_s1 + $0x60] sm:$0xff]   ;;  %v688_v20 = vld [vmem:[%s908_s1 + $0x68] sm:$0xff]  }
   0x6   :  { %624 = vmatprep.subr.bf16.mxu1 %v674_v6  ;;  %v681_v13 = vld [vmem:[%s908_s1 + $0x18] sm:$0xff]   ;;  %v685_v17 = vld [vmem:[%s908_s1 + $0x20] sm:$0xff]   ;;  %v689_v21 = vld [vmem:[%s908_s1 + $0x28] sm:$0xff]  }
   0x7   :  { %597 = vmatpush3.bf16.msra.mxu0 %v673_v5  ;;  %v682_v14 = vld [vmem:[%s908_s1 + $0xd8] sm:$0xff]   ;;  %v686_v18 = vld [vmem:[%s908_s1 + $0xe0] sm:$0xff]   ;;  %v690_v22 = vld [vmem:[%s908_s1 + $0xe8] sm:$0xff]  }
   0x8   :  { %598 = vmatprep.subr.bf16.mxu0 %v676_v8  ;;  %v683_v15 = vld [vmem:[%s908_s1 + $0x98] sm:$0xff]   ;;  %v687_v19 = vld [vmem:[%s908_s1 + $0xa0] sm:$0xff]   ;;  %v691_v23 = vld [vmem:[%s908_s1 + $0xa8] sm:$0xff]  }
   0x9   :  { %625 = vmatpush3.bf16.msra.mxu1 %v675_v7  ;;  %v692_v24 = vld [vmem:[%s908_s1 + $0x70] sm:$0xff]   ;;  %v696_v28 = vld [vmem:[%s908_s1 + $0x78] sm:$0xff]   ;;  %v703_v34 = vld [vmem:[%s908_s1 + $0x100] sm:$0xff]  }
   0xa   :  { %626 = vmatprep.subr.bf16.mxu1 %v678_v10  ;;  %v693_v25 = vld [vmem:[%s908_s1 + $0x30] sm:$0xff]   ;;  %v697_v29 = vld [vmem:[%s908_s1 + $0x38] sm:$0xff]   ;;  %v706_v36 = vld [vmem:[%s909_s0 + $0xc] ss:$20 sps:$4 sm:$0xff]  }
   0xb   :  { %599 = vmatpush3.bf16.msra.mxu0 %v677_v9  ;;  %v694_v26 = vld [vmem:[%s908_s1 + $0xf0] sm:$0xff]   ;;  %v698_v30 = vld [vmem:[%s908_s1 + $0xf8] sm:$0xff]   ;;  %v707_v37 = vld [vmem:[%s908_s1 + $0x108] sm:$0xff]   ;;  %463 = vmatprep.mubr.bf16.mxu1 %v706_v36 }
   0xc   :  { %600 = vmatprep.subr.bf16.mxu0 %v680_v12  ;;  %v695_v27 = vld [vmem:[%s908_s1 + $0xb0] sm:$0xff]   ;;  %v701_v32 = vld [vmem:[%s909_s0 + $0x4] ss:$20 sps:$4 sm:$0xff]   ;;  %v704_v35 = vld [vmem:[%s909_s0 + $0x8] ss:$20 sps:$4 sm:$0xff]  }
   0xd   :  { %627 = vmatpush3.bf16.msra.mxu1 %v679_v11  ;;  %v699_v31 = vld [vmem:[%s909_s0] ss:$20 sps:$4 sm:$0xff]   ;;  %v702_v33 = vld [vmem:[%s908_s1 + $0xb8] sm:$0xff]   ;;  %414 = vmatprep.mubr.bf16.mxu0 %v701_v32  ;;  %v714_v42 = vld [vmem:[%s909_s0 + $0x30] ss:$20 sps:$4 sm:$0xff]  }
   0xe   :  { %628 = vmatprep.subr.bf16.mxu1 %v682_v14  ;;  %v708_v38 = vld [vmem:[%s909_s0 + $0x2c] ss:$20 sps:$4 sm:$0xff]   ;;  %v710_v39 = vld [vmem:[%s909_s0 + $0x28] ss:$20 sps:$4 sm:$0xff]   ;;  %v711_v40 = vld [vmem:[%s908_s1 + $0x110] sm:$0xff]  }
   0xf   :  { %601 = vmatpush3.bf16.msra.mxu0 %v681_v13  ;;  %v712_v41 = vld [vmem:[%s909_s0 + $0x34] ss:$20 sps:$4 sm:$0xff]   ;;  %v715_v43 = vld [vmem:[%s908_s1 + $0x118] sm:$0xff]   ;;  %v716_v44 = vld [vmem:[%s909_s0 + $0x10] ss:$20 sps:$4 sm:$0xff]  }
  0x10   :  { %602 = vmatprep.subr.bf16.mxu0 %v684_v16  ;;  %v717_v45 = vld [vmem:[%s909_s0 + $0x38] ss:$20 sps:$4 sm:$0xff]   ;;  %v545_v47 = vld [vmem:[%s910_s2] ss:$0 sm:$0xff] }
  0x11   :  { %629 = vmatpush3.bf16.msra.mxu1 %v683_v15  ;;  %v531_v15 = vld [vmem:[%s911_s3 + $0x10] sm:$0xff] }
  0x12   :  { %630 = vmatprep.subr.bf16.mxu1 %v686_v18 }
  0x13   :  { %603 = vmatpush3.bf16.msra.mxu0 %v685_v17 }
  0x14   :  { %604 = vmatprep.subr.bf16.mxu0 %v688_v20 }
  0x15   :  { %631 = vmatpush3.bf16.msra.mxu1 %v687_v19  ;;  %v529_v19 = vld [vmem:[%s911_s3] sm:$0xff] }
  0x16   :  { %632 = vmatprep.subr.bf16.mxu1 %v690_v22  ;;  %v532_v22 = vld [vmem:[%s911_s3 + $0x18] sm:$0xff] }
  0x17   :  { %605 = vmatpush3.bf16.msra.mxu0 %v689_v21 }
  0x18   :  { %606 = vmatprep.subr.bf16.mxu0 %v692_v24 }
  0x19   :  { %633 = vmatpush3.bf16.msra.mxu1 %v691_v23 }
  0x1a   :  { %634 = vmatprep.subr.bf16.mxu1 %v694_v26  ;;  %v530_v26 = vld [vmem:[%s911_s3 + $0x8] sm:$0xff] }
  0x1b   :  { %607 = vmatpush3.bf16.msra.mxu0 %v693_v25 }
  0x1c   :  { %608 = vmatprep.subr.bf16.mxu0 %v696_v28 }
  0x1d   :  { %635 = vmatpush3.bf16.msra.mxu1 %v695_v27 }
  0x1e   :  { %636 = vmatprep.subr.bf16.mxu1 %v698_v30 }
  0x1f   :  { %609 = vmatpush3.bf16.msra.mxu0 %v697_v29 }
  0x20   :  { %656 = vmatprep.subr.bf16.mxu0 %v703_v34 }
  0x21   :  { %637 = vmatpush3.bf16.msra.mxu1 %v702_v33 }
  0x22   :  { %415 = vmatmul.mubr.bf16.vlgmr.msra.gmra.mrb[0].mxu0 %v699_v31 }
  0x23   :  { %657 = vmatpush3.bf16.msra.mxu0 %v703_v34  ;;  %422 = vmatprep.mubr.bf16.mxu0 %v708_v38 }
  0x24   :  { %464 = vmatmul.mubr.bf16.vlgmr.msra.gmra.mrb[0].mxu1 %v704_v35  ;;  %658 = vmatprep.subr.bf16.mxu0 %v707_v37 }
  0x25   :  { %471 = vmatprep.mubr.bf16.mxu1 %v712_v41 }
  0x27   :  { %659 = vmatpush3.bf16.msra.mxu0 %v707_v37 }
  0x28   :  { %660 = vmatprep.subr.bf16.mxu0 %v711_v40 }
  0x2a   :  { %423 = vmatmul.mubr.bf16.gmra.mrb[4].mxu0 %v710_v39 }
  0x2b   :  { %664 = vmatprep.mubr.msk.bf16.mxu0 %vm375_vm0, %v716_v44  ;;  %661 = vmatpush3.bf16.msra.mxu0 %v711_v40 }
  0x2c   :  { %472 = vmatmul.mubr.bf16.gmra.mrb[4].mxu1 %v714_v42  ;;  %662 = vmatprep.subr.bf16.mxu0 %v715_v43 }
  0x2f   :  { %663 = vmatpush3.bf16.msra.mxu0 %v715_v43 }
  0x32   :  { %665 = vmatmul.mubr.msk.bf16.vlgmr.msra.gmra.mrb[8].mxu0 %vm375_vm0, %v717_v45 }
  0xf5   :  { %v610_v46 = vpop.f32.mrb[0].mxu0 }
  0xf6   :  { %v611_v48 = vpop.f32.mrb[1].mxu0 }
  0xf7   :  { %v612_v49 = vadd.f32 %v611_v48, %v610_v46  ;;  %v613_v50 = vpop.f32.mrb[2].mxu0  ;;  %v638_v51 = vpop.f32.mrb[0].mxu1 }
  0xf8   :  { %v614_v52 = vpop.f32.mrb[3].mxu0  ;;  %v639_v55 = vpop.f32.mrb[1].mxu1 }
  0xf9   :  { %v417_v53 = vadd.f32 %v612_v49, %v545_v47  ;;  %v615_v54 = vadd.f32 %v614_v52, %v613_v50  ;;  %v640_v56 = vadd.f32 %v639_v55, %v638_v51  ;;  %v641_v57 = vpop.f32.mrb[2].mxu1 }
  0xfa   :  { %v642_v59 = vpop.f32.mrb[3].mxu1 }
  0xfb   :  { %v420_v58 = vadd.f32 %v615_v54, %v545_v47  ;;  %v643_v60 = vadd.f32 %v642_v59, %v641_v57  ;;  %v466_v61 = vadd.f32 %v640_v56, %v417_v53 }
  0xfd   :  { %v616_v62 = vpop.f32.mrb[4].mxu0  ;;  %v469_v0 = vadd.f32 %v643_v60, %v420_v58 }
  0xfe   :  { %v617_v63 = vpop.f32.mrb[5].mxu0 }
  0xff   :  { %v618_v1 = vadd.f32 %v617_v63, %v616_v62  ;;  %v619_v2 = vpop.f32.mrb[6].mxu0  ;;  %v644_v3 = vpop.f32.mrb[4].mxu1 }
 0x100   :  { %v620_v4 = vpop.f32.mrb[7].mxu0  ;;  %v645_v7 = vpop.f32.mrb[5].mxu1 }
 0x101   :  { %v425_v5 = vadd.f32 %v618_v1, %v545_v47  ;;  %v621_v6 = vadd.f32 %v620_v4, %v619_v2  ;;  %v646_v8 = vadd.f32 %v645_v7, %v644_v3  ;;  %v647_v9 = vpop.f32.mrb[6].mxu1 }
 0x102   :  { %v648_v11 = vpop.f32.mrb[7].mxu1 }
 0x103   :  { %v428_v10 = vadd.f32 %v621_v6, %v545_v47  ;;  %v649_v12 = vadd.f32 %v648_v11, %v647_v9  ;;  %v474_v13 = vadd.f32 %v646_v8, %v425_v5 }
 0x105   :  { %v666_v14 = vpop.f32.mrb[8].mxu0  ;;  %v477_v16 = vadd.f32 %v649_v12, %v428_v10 }
 0x106   :  { %v523_v17 = vadd.f32 %v666_v14, %v474_v13  ;;  %v514_v18 = vpop.f32.mrb[9].mxu0 }
 0x107   :  { %v515_v20 = vadd.f32 %v514_v18, %v466_v61  ;;  %v667_v21 = vpop.f32.mrb[10].mxu0 }
 0x108   :  { %v535_v23 = vadd.f32 %v531_v15, %v523_v17  ;;  %v526_v24 = vadd.f32 %v667_v21, %v477_v16  ;;  %v517_v25 = vpop.f32.mrb[11].mxu0 }
 0x109   :  { %v533_v27 = vadd.f32 %v529_v19, %v515_v20  ;;  %v518_v28 = vadd.f32 %v517_v25, %v469_v0 }
 0x10a   :  { %539 = vst [vmem:[%s912_s4 + $0x10] sm:$0xff] %v535_v23  ;;  %v536_v29 = vadd.f32 %v532_v22, %v526_v24 }
 0x10b   :  { %537 = vst [vmem:[%s912_s4] sm:$0xff] %v533_v27  ;;  %v534_v30 = vadd.f32 %v530_v26, %v518_v28 }
 0x10c   :  { %540 = vst [vmem:[%s912_s4 + $0x18] sm:$0xff] %v536_v29 }
 0x10d   :  { %538 = vst [vmem:[%s912_s4 + $0x8] sm:$0xff] %v534_v30 }

// kernel: resnet_encoder.33
= control target key start
LH: loop header
LB: loop body
LE: loop exit
PB: predicated region body
PF: predicated region fallthrough
CT: control target
= control target key end

     0   :  { %vm372_vm0 = vcmask 523264   ;;  %s884_s1 = inlined_call_operand.vmem [shape: bf16[576,128], index: 1, kind: input, shape index: {}]   ;;  %s885_s0 = inlined_call_operand.vmem [shape: bf16[32,576], index: 0, kind: input, shape index: {}]   ;;  %s886_s2 = inlined_call_operand.vmem [shape: f32[1,128], index: 2, kind: input, shape index: {}]   ;;  %s887_s3 = inlined_call_operand.vmem [shape: f32[32,128], index: 3, kind: output, shape index: {}]  }
   0x1   :  { %v661_v0 = vld [vmem:[%s884_s1 + $0x40] sm:$0xff]   ;;  %v665_v4 = vld [vmem:[%s884_s1 + $0x48] sm:$0xff]   ;;  %v669_v8 = vld [vmem:[%s884_s1 + $0x50] sm:$0xff]  }
   0x2   :  { %v662_v1 = vld [vmem:[%s884_s1] sm:$0xff]   ;;  %587 = vmatprep.subr.bf16.mxu0 %v661_v0  ;;  %v666_v5 = vld [vmem:[%s884_s1 + $0x8] sm:$0xff]   ;;  %v670_v9 = vld [vmem:[%s884_s1 + $0x10] sm:$0xff]  }
   0x3   :  { %v663_v2 = vld [vmem:[%s884_s1 + $0xc0] sm:$0xff]   ;;  %588 = vmatpush3.bf16.msra.mxu0 %v662_v1  ;;  %v667_v6 = vld [vmem:[%s884_s1 + $0xc8] sm:$0xff]   ;;  %v671_v10 = vld [vmem:[%s884_s1 + $0xd0] sm:$0xff]  }
   0x4   :  { %v664_v3 = vld [vmem:[%s884_s1 + $0x80] sm:$0xff]   ;;  %615 = vmatprep.subr.bf16.mxu1 %v663_v2  ;;  %589 = vmatprep.subr.bf16.mxu0 %v665_v4  ;;  %v668_v7 = vld [vmem:[%s884_s1 + $0x88] sm:$0xff]   ;;  %v672_v11 = vld [vmem:[%s884_s1 + $0x90] sm:$0xff]  }
   0x5   :  { %616 = vmatpush3.bf16.msra.mxu1 %v664_v3  ;;  %v673_v12 = vld [vmem:[%s884_s1 + $0x58] sm:$0xff]   ;;  %v677_v16 = vld [vmem:[%s884_s1 + $0x60] sm:$0xff]   ;;  %v681_v20 = vld [vmem:[%s884_s1 + $0x68] sm:$0xff]  }
   0x6   :  { %617 = vmatprep.subr.bf16.mxu1 %v667_v6  ;;  %v674_v13 = vld [vmem:[%s884_s1 + $0x18] sm:$0xff]   ;;  %v678_v17 = vld [vmem:[%s884_s1 + $0x20] sm:$0xff]   ;;  %v682_v21 = vld [vmem:[%s884_s1 + $0x28] sm:$0xff]  }
   0x7   :  { %590 = vmatpush3.bf16.msra.mxu0 %v666_v5  ;;  %v675_v14 = vld [vmem:[%s884_s1 + $0xd8] sm:$0xff]   ;;  %v679_v18 = vld [vmem:[%s884_s1 + $0xe0] sm:$0xff]   ;;  %v683_v22 = vld [vmem:[%s884_s1 + $0xe8] sm:$0xff]  }
   0x8   :  { %591 = vmatprep.subr.bf16.mxu0 %v669_v8  ;;  %v676_v15 = vld [vmem:[%s884_s1 + $0x98] sm:$0xff]   ;;  %v680_v19 = vld [vmem:[%s884_s1 + $0xa0] sm:$0xff]   ;;  %v684_v23 = vld [vmem:[%s884_s1 + $0xa8] sm:$0xff]  }
   0x9   :  { %618 = vmatpush3.bf16.msra.mxu1 %v668_v7  ;;  %v685_v24 = vld [vmem:[%s884_s1 + $0x70] sm:$0xff]   ;;  %v689_v28 = vld [vmem:[%s884_s1 + $0x78] sm:$0xff]   ;;  %v696_v34 = vld [vmem:[%s884_s1 + $0x100] sm:$0xff]  }
   0xa   :  { %619 = vmatprep.subr.bf16.mxu1 %v671_v10  ;;  %v686_v25 = vld [vmem:[%s884_s1 + $0x30] sm:$0xff]   ;;  %v690_v29 = vld [vmem:[%s884_s1 + $0x38] sm:$0xff]   ;;  %v699_v36 = vld [vmem:[%s885_s0 + $0xc] ss:$20 sps:$4 sm:$0xff]  }
   0xb   :  { %592 = vmatpush3.bf16.msra.mxu0 %v670_v9  ;;  %v687_v26 = vld [vmem:[%s884_s1 + $0xf0] sm:$0xff]   ;;  %v691_v30 = vld [vmem:[%s884_s1 + $0xf8] sm:$0xff]   ;;  %v700_v37 = vld [vmem:[%s884_s1 + $0x108] sm:$0xff]   ;;  %460 = vmatprep.mubr.bf16.mxu1 %v699_v36 }
   0xc   :  { %593 = vmatprep.subr.bf16.mxu0 %v673_v12  ;;  %v688_v27 = vld [vmem:[%s884_s1 + $0xb0] sm:$0xff]   ;;  %v694_v32 = vld [vmem:[%s885_s0 + $0x4] ss:$20 sps:$4 sm:$0xff]   ;;  %v697_v35 = vld [vmem:[%s885_s0 + $0x8] ss:$20 sps:$4 sm:$0xff]  }
   0xd   :  { %620 = vmatpush3.bf16.msra.mxu1 %v672_v11  ;;  %v692_v31 = vld [vmem:[%s885_s0] ss:$20 sps:$4 sm:$0xff]   ;;  %v695_v33 = vld [vmem:[%s884_s1 + $0xb8] sm:$0xff]   ;;  %411 = vmatprep.mubr.bf16.mxu0 %v694_v32  ;;  %v707_v42 = vld [vmem:[%s885_s0 + $0x30] ss:$20 sps:$4 sm:$0xff]  }
   0xe   :  { %621 = vmatprep.subr.bf16.mxu1 %v675_v14  ;;  %v701_v38 = vld [vmem:[%s885_s0 + $0x2c] ss:$20 sps:$4 sm:$0xff]   ;;  %v703_v39 = vld [vmem:[%s885_s0 + $0x28] ss:$20 sps:$4 sm:$0xff]   ;;  %v704_v40 = vld [vmem:[%s884_s1 + $0x110] sm:$0xff]  }
   0xf   :  { %594 = vmatpush3.bf16.msra.mxu0 %v674_v13  ;;  %v705_v41 = vld [vmem:[%s885_s0 + $0x34] ss:$20 sps:$4 sm:$0xff]   ;;  %v708_v43 = vld [vmem:[%s884_s1 + $0x118] sm:$0xff]   ;;  %v709_v44 = vld [vmem:[%s885_s0 + $0x10] ss:$20 sps:$4 sm:$0xff]  }
  0x10   :  { %595 = vmatprep.subr.bf16.mxu0 %v677_v16  ;;  %v710_v45 = vld [vmem:[%s885_s0 + $0x38] ss:$20 sps:$4 sm:$0xff]   ;;  %v538_v47 = vld [vmem:[%s886_s2] ss:$0 sm:$0xff] }
  0x11   :  { %622 = vmatpush3.bf16.msra.mxu1 %v676_v15 }
  0x12   :  { %623 = vmatprep.subr.bf16.mxu1 %v679_v18 }
  0x13   :  { %596 = vmatpush3.bf16.msra.mxu0 %v678_v17 }
  0x14   :  { %597 = vmatprep.subr.bf16.mxu0 %v681_v20 }
  0x15   :  { %624 = vmatpush3.bf16.msra.mxu1 %v680_v19 }
  0x16   :  { %625 = vmatprep.subr.bf16.mxu1 %v683_v22 }
  0x17   :  { %598 = vmatpush3.bf16.msra.mxu0 %v682_v21 }
  0x18   :  { %599 = vmatprep.subr.bf16.mxu0 %v685_v24 }
  0x19   :  { %626 = vmatpush3.bf16.msra.mxu1 %v684_v23 }
  0x1a   :  { %627 = vmatprep.subr.bf16.mxu1 %v687_v26 }
  0x1b   :  { %600 = vmatpush3.bf16.msra.mxu0 %v686_v25 }
  0x1c   :  { %601 = vmatprep.subr.bf16.mxu0 %v689_v28 }
  0x1d   :  { %628 = vmatpush3.bf16.msra.mxu1 %v688_v27 }
  0x1e   :  { %629 = vmatprep.subr.bf16.mxu1 %v691_v30 }
  0x1f   :  { %602 = vmatpush3.bf16.msra.mxu0 %v690_v29 }
  0x20   :  { %649 = vmatprep.subr.bf16.mxu0 %v696_v34 }
  0x21   :  { %630 = vmatpush3.bf16.msra.mxu1 %v695_v33 }
  0x22   :  { %412 = vmatmul.mubr.bf16.vlgmr.msra.gmra.mrb[0].mxu0 %v692_v31 }
  0x23   :  { %650 = vmatpush3.bf16.msra.mxu0 %v696_v34  ;;  %419 = vmatprep.mubr.bf16.mxu0 %v701_v38 }
  0x24   :  { %461 = vmatmul.mubr.bf16.vlgmr.msra.gmra.mrb[0].mxu1 %v697_v35  ;;  %651 = vmatprep.subr.bf16.mxu0 %v700_v37 }
  0x25   :  { %468 = vmatprep.mubr.bf16.mxu1 %v705_v41 }
  0x27   :  { %652 = vmatpush3.bf16.msra.mxu0 %v700_v37 }
  0x28   :  { %653 = vmatprep.subr.bf16.mxu0 %v704_v40 }
  0x2a   :  { %420 = vmatmul.mubr.bf16.gmra.mrb[4].mxu0 %v703_v39 }
  0x2b   :  { %657 = vmatprep.mubr.msk.bf16.mxu0 %vm372_vm0, %v709_v44  ;;  %654 = vmatpush3.bf16.msra.mxu0 %v704_v40 }
  0x2c   :  { %469 = vmatmul.mubr.bf16.gmra.mrb[4].mxu1 %v707_v42  ;;  %655 = vmatprep.subr.bf16.mxu0 %v708_v43 }
  0x2f   :  { %656 = vmatpush3.bf16.msra.mxu0 %v708_v43 }
  0x32   :  { %658 = vmatmul.mubr.msk.bf16.vlgmr.msra.gmra.mrb[8].mxu0 %vm372_vm0, %v710_v45 }
  0xf5   :  { %v603_v46 = vpop.f32.mrb[0].mxu0 }
  0xf6   :  { %v604_v48 = vpop.f32.mrb[1].mxu0 }
  0xf7   :  { %v605_v49 = vadd.f32 %v604_v48, %v603_v46  ;;  %v606_v50 = vpop.f32.mrb[2].mxu0  ;;  %v631_v51 = vpop.f32.mrb[0].mxu1 }
  0xf8   :  { %v607_v52 = vpop.f32.mrb[3].mxu0  ;;  %v632_v55 = vpop.f32.mrb[1].mxu1 }
  0xf9   :  { %v414_v53 = vadd.f32 %v605_v49, %v538_v47  ;;  %v608_v54 = vadd.f32 %v607_v52, %v606_v50  ;;  %v633_v56 = vadd.f32 %v632_v55, %v631_v51  ;;  %v634_v57 = vpop.f32.mrb[2].mxu1 }
  0xfa   :  { %v635_v59 = vpop.f32.mrb[3].mxu1 }
  0xfb   :  { %v417_v58 = vadd.f32 %v608_v54, %v538_v47  ;;  %v636_v60 = vadd.f32 %v635_v59, %v634_v57  ;;  %v463_v61 = vadd.f32 %v633_v56, %v414_v53 }
  0xfd   :  { %v609_v62 = vpop.f32.mrb[4].mxu0  ;;  %v466_v0 = vadd.f32 %v636_v60, %v417_v58 }
  0xfe   :  { %v610_v63 = vpop.f32.mrb[5].mxu0 }
  0xff   :  { %v611_v1 = vadd.f32 %v610_v63, %v609_v62  ;;  %v612_v2 = vpop.f32.mrb[6].mxu0  ;;  %v637_v3 = vpop.f32.mrb[4].mxu1 }
 0x100   :  { %v613_v4 = vpop.f32.mrb[7].mxu0  ;;  %v638_v7 = vpop.f32.mrb[5].mxu1 }
 0x101   :  { %v422_v5 = vadd.f32 %v611_v1, %v538_v47  ;;  %v614_v6 = vadd.f32 %v613_v4, %v612_v2  ;;  %v639_v8 = vadd.f32 %v638_v7, %v637_v3  ;;  %v640_v9 = vpop.f32.mrb[6].mxu1 }
 0x102   :  { %v641_v11 = vpop.f32.mrb[7].mxu1 }
 0x103   :  { %v425_v10 = vadd.f32 %v614_v6, %v538_v47  ;;  %v642_v12 = vadd.f32 %v641_v11, %v640_v9  ;;  %v471_v13 = vadd.f32 %v639_v8, %v422_v5 }
 0x105   :  { %v659_v14 = vpop.f32.mrb[8].mxu0  ;;  %v474_v15 = vadd.f32 %v642_v12, %v425_v10 }
 0x106   :  { %v520_v16 = vadd.f32 %v659_v14, %v471_v13  ;;  %v511_v17 = vpop.f32.mrb[9].mxu0 }
 0x107   :  { %v512_v18 = vadd.f32 %v511_v17, %v463_v61  ;;  %v660_v19 = vpop.f32.mrb[10].mxu0 }
 0x108   :  { %v528_v20 = vmax.f32 %v520_v16, 0.0  ;;  %v523_v21 = vadd.f32 %v660_v19, %v474_v15  ;;  %v514_v22 = vpop.f32.mrb[11].mxu0 }
 0x109   :  { %v526_v23 = vmax.f32 %v512_v18, 0.0  ;;  %v515_v24 = vadd.f32 %v514_v22, %v466_v0 }
 0x10a   :  { %532 = vst [vmem:[%s887_s3 + $0x10] sm:$0xff] %v528_v20  ;;  %v529_v25 = vmax.f32 %v523_v21, 0.0 }
 0x10b   :  { %530 = vst [vmem:[%s887_s3] sm:$0xff] %v526_v23  ;;  %v527_v26 = vmax.f32 %v515_v24, 0.0 }
 0x10c   :  { %533 = vst [vmem:[%s887_s3 + $0x18] sm:$0xff] %v529_v25 }
 0x10d   :  { %531 = vst [vmem:[%s887_s3 + $0x8] sm:$0xff] %v527_v26 }

// kernel: resnet_encoder.36
= control target key start
LH: loop header
LB: loop body
LE: loop exit
PB: predicated region body
PF: predicated region fallthrough
CT: control target
= control target key end

     0   :  { %v607_v35 = vmov 0.0   ;;  %vm608_vm0 = vmmov 0   ;;  %vm330_vm1 = vcmask 523264   ;;  %s752_s1 = inlined_call_operand.vmem [shape: bf16[576,128], index: 1, kind: input, shape index: {}]   ;;  %s753_s0 = inlined_call_operand.vmem [shape: bf16[8,576], index: 0, kind: input, shape index: {}]   ;;  %s754_s2 = inlined_call_operand.vmem [shape: f32[1,128], index: 2, kind: input, shape index: {}]   ;;  %s755_s3 = inlined_call_operand.vmem [shape: f32[8,128], index: 3, kind: output, shape index: {}]  }
   0x1   :  { %v566_v0 = vld [vmem:[%s752_s1 + $0x40] sm:$0xff]   ;;  %v570_v4 = vld [vmem:[%s752_s1 + $0x48] sm:$0xff]   ;;  %v574_v8 = vld [vmem:[%s752_s1 + $0x50] sm:$0xff]  }
   0x2   :  { %v567_v1 = vld [vmem:[%s752_s1] sm:$0xff]   ;;  %503 = vmatprep.subr.bf16.mxu0 %v566_v0  ;;  %v571_v5 = vld [vmem:[%s752_s1 + $0x8] sm:$0xff]   ;;  %v575_v9 = vld [vmem:[%s752_s1 + $0x10] sm:$0xff]  }
   0x3   :  { %v568_v2 = vld [vmem:[%s752_s1 + $0xc0] sm:$0xff]   ;;  %504 = vmatpush3.bf16.msra.mxu0 %v567_v1  ;;  %v572_v6 = vld [vmem:[%s752_s1 + $0xc8] sm:$0xff]   ;;  %v576_v10 = vld [vmem:[%s752_s1 + $0xd0] sm:$0xff]  }
   0x4   :  { %v569_v3 = vld [vmem:[%s752_s1 + $0x80] sm:$0xff]   ;;  %525 = vmatprep.subr.bf16.mxu1 %v568_v2  ;;  %505 = vmatprep.subr.bf16.mxu0 %v570_v4  ;;  %v573_v7 = vld [vmem:[%s752_s1 + $0x88] sm:$0xff]   ;;  %v577_v11 = vld [vmem:[%s752_s1 + $0x90] sm:$0xff]  }
   0x5   :  { %526 = vmatpush3.bf16.msra.mxu1 %v569_v3  ;;  %v578_v12 = vld [vmem:[%s752_s1 + $0x58] sm:$0xff]   ;;  %v582_v16 = vld [vmem:[%s752_s1 + $0x60] sm:$0xff]   ;;  %v586_v20 = vld [vmem:[%s752_s1 + $0x68] sm:$0xff]  }
   0x6   :  { %527 = vmatprep.subr.bf16.mxu1 %v572_v6  ;;  %v579_v13 = vld [vmem:[%s752_s1 + $0x18] sm:$0xff]   ;;  %v583_v17 = vld [vmem:[%s752_s1 + $0x20] sm:$0xff]   ;;  %v587_v21 = vld [vmem:[%s752_s1 + $0x28] sm:$0xff]  }
   0x7   :  { %506 = vmatpush3.bf16.msra.mxu0 %v571_v5  ;;  %v580_v14 = vld [vmem:[%s752_s1 + $0xd8] sm:$0xff]   ;;  %v584_v18 = vld [vmem:[%s752_s1 + $0xe0] sm:$0xff]   ;;  %v588_v22 = vld [vmem:[%s752_s1 + $0xe8] sm:$0xff]  }
   0x8   :  { %507 = vmatprep.subr.bf16.mxu0 %v574_v8  ;;  %v581_v15 = vld [vmem:[%s752_s1 + $0x98] sm:$0xff]   ;;  %v585_v19 = vld [vmem:[%s752_s1 + $0xa0] sm:$0xff]   ;;  %v589_v23 = vld [vmem:[%s752_s1 + $0xa8] sm:$0xff]  }
   0x9   :  { %528 = vmatpush3.bf16.msra.mxu1 %v573_v7  ;;  %v590_v24 = vld [vmem:[%s752_s1 + $0x70] sm:$0xff]   ;;  %v594_v28 = vld [vmem:[%s752_s1 + $0x78] sm:$0xff]   ;;  %v15_v31 = vld [vmem:[%s753_s0] sm:$0xff] }
   0xa   :  { %529 = vmatprep.subr.bf16.mxu1 %v576_v10  ;;  %v591_v25 = vld [vmem:[%s752_s1 + $0x30] sm:$0xff]   ;;  %v595_v29 = vld [vmem:[%s752_s1 + $0x38] sm:$0xff]   ;;  %v461_v32 = vcombine.low %v15_v31, %v15_v31  ;;  %v462_v33 = vcombine.high %v15_v31, %v15_v31  ;;  %v16_v36 = vld [vmem:[%s753_s0 + $0x8] sm:$0xff] }
   0xb   :  { %508 = vmatpush3.bf16.msra.mxu0 %v575_v9  ;;  %v592_v26 = vld [vmem:[%s752_s1 + $0xf0] sm:$0xff]   ;;  %v596_v30 = vld [vmem:[%s752_s1 + $0xf8] sm:$0xff]   ;;  %v463_v37 = vcombine.low %v16_v36, %v16_v36  ;;  %v464_v38 = vcombine.high %v16_v36, %v16_v36  ;;  %v603_v39 = vld [vmem:[%s752_s1 + $0x100] sm:$0xff]  }
   0xc   :  { %509 = vmatprep.subr.bf16.mxu0 %v578_v12  ;;  %v593_v27 = vld [vmem:[%s752_s1 + $0xb0] sm:$0xff]   ;;  %v600_v34 = vld [vmem:[%s752_s1 + $0xb8] sm:$0xff]   ;;  %366 = vmatprep.mubr.bf16.mxu0 %v462_v33  ;;  %v604_v40 = vld [vmem:[%s752_s1 + $0x108] sm:$0xff]  }
   0xd   :  { %530 = vmatpush3.bf16.msra.mxu1 %v577_v11  ;;  %406 = vmatprep.mubr.bf16.mxu1 %v464_v38  ;;  %v605_v41 = vld [vmem:[%s752_s1 + $0x110] sm:$0xff]   ;;  %v606_v42 = vld [vmem:[%s752_s1 + $0x118] sm:$0xff]   ;;  %v460_v45 = vld [vmem:[%s754_s2] ss:$0 sm:$0xff] }
   0xe   :  { %531 = vmatprep.subr.bf16.mxu1 %v580_v14  ;;  %v599_v43 = vld [vmem:[%s753_s0 + $0x10] ss:$0 sps:$4 sm:$0xff]  }
   0xf   :  { %510 = vmatpush3.bf16.msra.mxu0 %v579_v13 }
  0x10   :  { %511 = vmatprep.subr.bf16.mxu0 %v582_v16 }
  0x11   :  { %532 = vmatpush3.bf16.msra.mxu1 %v581_v15 }
  0x12   :  { %533 = vmatprep.subr.bf16.mxu1 %v584_v18 }
  0x13   :  { %512 = vmatpush3.bf16.msra.mxu0 %v583_v17 }
  0x14   :  { %513 = vmatprep.subr.bf16.mxu0 %v586_v20 }
  0x15   :  { %534 = vmatpush3.bf16.msra.mxu1 %v585_v19 }
  0x16   :  { %535 = vmatprep.subr.bf16.mxu1 %v588_v22 }
  0x17   :  { %514 = vmatpush3.bf16.msra.mxu0 %v587_v21 }
  0x18   :  { %515 = vmatprep.subr.bf16.mxu0 %v590_v24 }
  0x19   :  { %536 = vmatpush3.bf16.msra.mxu1 %v589_v23 }
  0x1a   :  { %537 = vmatprep.subr.bf16.mxu1 %v592_v26 }
  0x1b   :  { %516 = vmatpush3.bf16.msra.mxu0 %v591_v25 }
  0x1c   :  { %517 = vmatprep.subr.bf16.mxu0 %v594_v28 }
  0x1d   :  { %538 = vmatpush3.bf16.msra.mxu1 %v593_v27 }
  0x1e   :  { %539 = vmatprep.subr.bf16.mxu1 %v596_v30 }
  0x1f   :  { %518 = vmatpush3.bf16.msra.mxu0 %v595_v29 }
  0x20   :  { %552 = vmatprep.subr.bf16.mxu0 %v607_v35 }
  0x21   :  { %540 = vmatpush3.bf16.msra.mxu1 %v600_v34 }
  0x22   :  { %367 = vmatmul.mubr.bf16.vlgmr.msra.gmra.mrb[0].mxu0 %v461_v32 }
  0x23   :  { %553 = vmatpush3.bf16.msra.mxu0 %v603_v39  ;;  %560 = vmatprep.mubr.msk.bf16.mxu0 %vm608_vm0, %v607_v35 }
  0x24   :  { %407 = vmatmul.mubr.bf16.vlgmr.msra.gmra.mrb[0].mxu1 %v463_v37  ;;  %554 = vmatprep.subr.bf16.mxu0 %v607_v35 }
  0x27   :  { %555 = vmatpush3.bf16.msra.mxu0 %v604_v40 }
  0x28   :  { %556 = vmatprep.subr.bf16.mxu0 %v607_v35 }
  0x2b   :  { %557 = vmatpush3.bf16.msra.mxu0 %v605_v41 }
  0x2c   :  { %558 = vmatprep.subr.bf16.mxu0 %v607_v35 }
  0x2f   :  { %559 = vmatpush3.bf16.msra.mxu0 %v606_v42 }
  0x32   :  { %561 = vmatmul.mubr.msk.bf16.vlgmr.msra.gmra.mrb[4].mxu0 %vm330_vm1, %v599_v43 }
  0xf5   :  { %v519_v44 = vpop.f32.mrb[0].mxu0 }
  0xf6   :  { %v520_v46 = vpop.f32.mrb[1].mxu0 }
  0xf7   :  { %v521_v47 = vadd.f32 %v520_v46, %v519_v44  ;;  %v522_v48 = vpop.f32.mrb[2].mxu0  ;;  %v541_v49 = vpop.f32.mrb[0].mxu1 }
  0xf8   :  { %v523_v50 = vpop.f32.mrb[3].mxu0  ;;  %v542_v51 = vpop.f32.mrb[1].mxu1 }
  0xf9   :  { %v369_v52 = vadd.f32 %v521_v47, %v460_v45  ;;  %v543_v53 = vadd.f32 %v542_v51, %v541_v49  ;;  %v544_v54 = vpop.f32.mrb[2].mxu1 }
  0xfa   :  { %v545_v55 = vpop.f32.mrb[3].mxu1 }
  0xfb   :  { %v409_v56 = vadd.f32 %v543_v53, %v369_v52 }
 0x105   :  { %v448_v57 = vpop.f32.mrb[4].mxu0 }
 0x106   :  { %v449_v58 = vadd.f32 %v448_v57, %v409_v56  ;;  %v562_v59 = vpop.f32.mrb[5].mxu0 }
 0x107   :  { %v451_v60 = vpop.f32.mrb[6].mxu0 }
 0x108   :  { %v454_v61 = vmax.f32 %v449_v58, 0.0  ;;  %v563_v62 = vpop.f32.mrb[7].mxu0 }
 0x10a   :  { %455 = vst [vmem:[%s755_s3] sm:$0xff] %v454_v61 }

// kernel: resnet_encoder.35
= control target key start
LH: loop header
LB: loop body
LE: loop exit
PB: predicated region body
PF: predicated region fallthrough
CT: control target
= control target key end

     0   :  { %v133_v0 = vmov 0.0   ;;  %vm134_vm0 = vmmov 0   ;;  %vm55_vm1 = vcmask 523264   ;;  %s176_s1 = inlined_call_operand.vmem [shape: bf16[64,128], index: 1, kind: input, shape index: {}]   ;;  %s177_s0 = inlined_call_operand.vmem [shape: bf16[8,64], index: 0, kind: input, shape index: {}]   ;;  %s178_s2 = inlined_call_operand.vmem [shape: f32[1,128], index: 2, kind: input, shape index: {}]   ;;  %s179_s3 = inlined_call_operand.vmem [shape: f32[8,128], index: 3, kind: output, shape index: {}]  }
   0x1   :  { %115 = vmatprep.subr.bf16.mxu0 %v133_v0  ;;  %v129_v1 = vld [vmem:[%s176_s1] sm:$0xff]   ;;  %123 = vmatprep.mubr.msk.bf16.mxu0 %vm134_vm0, %v133_v0  ;;  %v130_v2 = vld [vmem:[%s176_s1 + $0x8] sm:$0xff]   ;;  %v131_v3 = vld [vmem:[%s176_s1 + $0x10] sm:$0xff]  }
   0x2   :  { %116 = vmatpush3.bf16.msra.mxu0 %v129_v1  ;;  %v132_v4 = vld [vmem:[%s176_s1 + $0x18] sm:$0xff]   ;;  %v15_v5 = vld [vmem:[%s177_s0] sm:$0xf] }
   0x3   :  { %117 = vmatprep.subr.bf16.mxu0 %v133_v0  ;;  %v104_v6 = vld [vmem:[%s178_s2] ss:$0 sm:$0xff] }
   0x6   :  { %118 = vmatpush3.bf16.msra.mxu0 %v130_v2 }
   0x7   :  { %119 = vmatprep.subr.bf16.mxu0 %v133_v0 }
   0xa   :  { %120 = vmatpush3.bf16.msra.mxu0 %v131_v3 }
   0xb   :  { %121 = vmatprep.subr.bf16.mxu0 %v133_v0 }
   0xe   :  { %122 = vmatpush3.bf16.msra.mxu0 %v132_v4 }
  0x11   :  { %124 = vmatmul.mubr.msk.bf16.vlgmr.msra.gmra.mrb[0].mxu0 %vm55_vm1, %v15_v5 }
  0xe4   :  { %v93_v7 = vpop.f32.mrb[0].mxu0 }
  0xe5   :  { %v94_v8 = vadd.f32 %v104_v6, %v93_v7  ;;  %v125_v9 = vpop.f32.mrb[1].mxu0 }
  0xe6   :  { %v96_v10 = vpop.f32.mrb[2].mxu0 }
  0xe7   :  { %99 = vst [vmem:[%s179_s3] sm:$0xff] %v94_v8  ;;  %v126_v11 = vpop.f32.mrb[3].mxu0 }

// kernel: resnet_encoder.37
= control target key start
LH: loop header
LB: loop body
LE: loop exit
PB: predicated region body
PF: predicated region fallthrough
CT: control target
= control target key end

     0   :  { %vm1128_vm0 = vmmov 0   ;;  %s1394_s1 = inlined_call_operand.vmem [shape: bf16[1152,128], index: 1, kind: input, shape index: {}]   ;;  %s1395_s0 = inlined_call_operand.vmem [shape: bf16[8,1152], index: 0, kind: input, shape index: {}]   ;;  %s1396_s2 = inlined_call_operand.vmem [shape: f32[1,128], index: 2, kind: input, shape index: {}]   ;;  %s1397_s3 = inlined_call_operand.vmem [shape: f32[8,128], index: 3, kind: input, shape index: {}]   ;;  %s1398_s4 = inlined_call_operand.vmem [shape: f32[8,128], index: 4, kind: output, shape index: {}]  }
   0x1   :  { %v1046_v0 = vld [vmem:[%s1394_s1 + $0x40] sm:$0xff]   ;;  %v1050_v4 = vld [vmem:[%s1394_s1 + $0x48] sm:$0xff]   ;;  %v1054_v8 = vld [vmem:[%s1394_s1 + $0x50] sm:$0xff]  }
   0x2   :  { %v1047_v1 = vld [vmem:[%s1394_s1] sm:$0xff]   ;;  %927 = vmatprep.subr.bf16.mxu0 %v1046_v0  ;;  %v1051_v5 = vld [vmem:[%s1394_s1 + $0x8] sm:$0xff]   ;;  %v1055_v9 = vld [vmem:[%s1394_s1 + $0x10] sm:$0xff]  }
   0x3   :  { %v1048_v2 = vld [vmem:[%s1394_s1 + $0xc0] sm:$0xff]   ;;  %928 = vmatpush3.bf16.msra.mxu0 %v1047_v1  ;;  %v1052_v6 = vld [vmem:[%s1394_s1 + $0xc8] sm:$0xff]   ;;  %v1056_v10 = vld [vmem:[%s1394_s1 + $0xd0] sm:$0xff]  }
   0x4   :  { %v1049_v3 = vld [vmem:[%s1394_s1 + $0x80] sm:$0xff]   ;;  %949 = vmatprep.subr.bf16.mxu1 %v1048_v2  ;;  %929 = vmatprep.subr.bf16.mxu0 %v1050_v4  ;;  %v1053_v7 = vld [vmem:[%s1394_s1 + $0x88] sm:$0xff]   ;;  %v1057_v11 = vld [vmem:[%s1394_s1 + $0x90] sm:$0xff]  }
   0x5   :  { %950 = vmatpush3.bf16.msra.mxu1 %v1049_v3  ;;  %v1058_v12 = vld [vmem:[%s1394_s1 + $0x58] sm:$0xff]   ;;  %v1062_v16 = vld [vmem:[%s1394_s1 + $0x60] sm:$0xff]   ;;  %v1066_v20 = vld [vmem:[%s1394_s1 + $0x68] sm:$0xff]  }
   0x6   :  { %951 = vmatprep.subr.bf16.mxu1 %v1052_v6  ;;  %v1059_v13 = vld [vmem:[%s1394_s1 + $0x18] sm:$0xff]   ;;  %v1063_v17 = vld [vmem:[%s1394_s1 + $0x20] sm:$0xff]   ;;  %v1067_v21 = vld [vmem:[%s1394_s1 + $0x28] sm:$0xff]  }
   0x7   :  { %930 = vmatpush3.bf16.msra.mxu0 %v1051_v5  ;;  %v1060_v14 = vld [vmem:[%s1394_s1 + $0xd8] sm:$0xff]   ;;  %v1064_v18 = vld [vmem:[%s1394_s1 + $0xe0] sm:$0xff]   ;;  %v1068_v22 = vld [vmem:[%s1394_s1 + $0xe8] sm:$0xff]  }
   0x8   :  { %931 = vmatprep.subr.bf16.mxu0 %v1054_v8  ;;  %v1061_v15 = vld [vmem:[%s1394_s1 + $0x98] sm:$0xff]   ;;  %v1065_v19 = vld [vmem:[%s1394_s1 + $0xa0] sm:$0xff]   ;;  %v1069_v23 = vld [vmem:[%s1394_s1 + $0xa8] sm:$0xff]  }
   0x9   :  { %952 = vmatpush3.bf16.msra.mxu1 %v1053_v7  ;;  %v1070_v24 = vld [vmem:[%s1394_s1 + $0x70] sm:$0xff]   ;;  %v1074_v28 = vld [vmem:[%s1394_s1 + $0x78] sm:$0xff]   ;;  %v18_v31 = vld [vmem:[%s1395_s0] sm:$0xff] }
   0xa   :  { %953 = vmatprep.subr.bf16.mxu1 %v1056_v10  ;;  %v1071_v25 = vld [vmem:[%s1394_s1 + $0x30] sm:$0xff]   ;;  %v1075_v29 = vld [vmem:[%s1394_s1 + $0x38] sm:$0xff]   ;;  %v846_v32 = vcombine.low %v18_v31, %v18_v31  ;;  %v847_v33 = vcombine.high %v18_v31, %v18_v31  ;;  %v1080_v35 = vld [vmem:[%s1394_s1 + $0x140] sm:$0xff]  }
   0xb   :  { %932 = vmatpush3.bf16.msra.mxu0 %v1055_v9  ;;  %v1072_v26 = vld [vmem:[%s1394_s1 + $0xf0] sm:$0xff]   ;;  %v1076_v30 = vld [vmem:[%s1394_s1 + $0xf8] sm:$0xff]   ;;  %v19_v36 = vld [vmem:[%s1395_s0 + $0x8] sm:$0xff]  ;;  %v1127_v9 = vmov 0.0  }
   0xc   :  { %933 = vmatprep.subr.bf16.mxu0 %v1058_v12  ;;  %v1073_v27 = vld [vmem:[%s1394_s1 + $0xb0] sm:$0xff]   ;;  %v1079_v34 = vld [vmem:[%s1394_s1 + $0xb8] sm:$0xff]   ;;  %670 = vmatprep.mubr.bf16.mxu0 %v847_v33  ;;  %v848_v37 = vcombine.low %v19_v36, %v19_v36  ;;  %v849_v38 = vcombine.high %v19_v36, %v19_v36  ;;  %v1083_v39 = vld [vmem:[%s1394_s1 + $0x100] sm:$0xff]  }
   0xd   :  { %954 = vmatpush3.bf16.msra.mxu1 %v1057_v11  ;;  %v1084_v40 = vld [vmem:[%s1394_s1 + $0x1c0] sm:$0xff]   ;;  %v1086_v42 = vld [vmem:[%s1394_s1 + $0x148] sm:$0xff]   ;;  %v1090_v46 = vld [vmem:[%s1394_s1 + $0x150] sm:$0xff]  }
   0xe   :  { %955 = vmatprep.subr.bf16.mxu1 %v1060_v14  ;;  %710 = vmatprep.mubr.bf16.mxu1 %v849_v38  ;;  %v1085_v41 = vld [vmem:[%s1394_s1 + $0x180] sm:$0xff]   ;;  %v1087_v43 = vld [vmem:[%s1394_s1 + $0x108] sm:$0xff]   ;;  %v1091_v47 = vld [vmem:[%s1394_s1 + $0x110] sm:$0xff]  }
   0xf   :  { %934 = vmatpush3.bf16.msra.mxu0 %v1059_v13  ;;  %v1088_v44 = vld [vmem:[%s1394_s1 + $0x1c8] sm:$0xff]   ;;  %v1092_v48 = vld [vmem:[%s1394_s1 + $0x1d0] sm:$0xff]   ;;  %v1094_v50 = vld [vmem:[%s1394_s1 + $0x158] sm:$0xff]  }
  0x10   :  { %935 = vmatprep.subr.bf16.mxu0 %v1062_v16  ;;  %v1089_v45 = vld [vmem:[%s1394_s1 + $0x188] sm:$0xff]   ;;  %v1093_v49 = vld [vmem:[%s1394_s1 + $0x190] sm:$0xff]   ;;  %v1095_v51 = vld [vmem:[%s1394_s1 + $0x118] sm:$0xff]  }
  0x11   :  { %956 = vmatpush3.bf16.msra.mxu1 %v1061_v15  ;;  %v1096_v52 = vld [vmem:[%s1394_s1 + $0x1d8] sm:$0xff]   ;;  %v1098_v54 = vld [vmem:[%s1394_s1 + $0x160] sm:$0xff]   ;;  %v1102_v58 = vld [vmem:[%s1394_s1 + $0x168] sm:$0xff]  }
  0x12   :  { %957 = vmatprep.subr.bf16.mxu1 %v1064_v18  ;;  %v1097_v53 = vld [vmem:[%s1394_s1 + $0x198] sm:$0xff]   ;;  %v1099_v55 = vld [vmem:[%s1394_s1 + $0x120] sm:$0xff]   ;;  %v1103_v59 = vld [vmem:[%s1394_s1 + $0x128] sm:$0xff]  }
  0x13   :  { %936 = vmatpush3.bf16.msra.mxu0 %v1063_v17  ;;  %v1100_v56 = vld [vmem:[%s1394_s1 + $0x1e0] sm:$0xff]   ;;  %v1104_v60 = vld [vmem:[%s1394_s1 + $0x1e8] sm:$0xff]   ;;  %v1106_v62 = vld [vmem:[%s1394_s1 + $0x170] sm:$0xff]  }
  0x14   :  { %937 = vmatprep.subr.bf16.mxu0 %v1066_v20  ;;  %v1101_v57 = vld [vmem:[%s1394_s1 + $0x1a0] sm:$0xff]   ;;  %v1105_v61 = vld [vmem:[%s1394_s1 + $0x1a8] sm:$0xff]   ;;  %v1107_v63 = vld [vmem:[%s1394_s1 + $0x130] sm:$0xff]  }
  0x15   :  { %958 = vmatpush3.bf16.msra.mxu1 %v1065_v19  ;;  %v1108_v0 = vld [vmem:[%s1394_s1 + $0x1f0] sm:$0xff]   ;;  %v1110_v2 = vld [vmem:[%s1394_s1 + $0x178] sm:$0xff]   ;;  %v1118_v13 = vld [vmem:[%s1394_s1 + $0x200] sm:$0xff]  }
  0x16   :  { %959 = vmatprep.subr.bf16.mxu1 %v1068_v22  ;;  %v1109_v1 = vld [vmem:[%s1394_s1 + $0x1b0] sm:$0xff]   ;;  %v1111_v3 = vld [vmem:[%s1394_s1 + $0x138] sm:$0xff]   ;;  %v1119_v14 = vld [vmem:[%s1394_s1 + $0x208] sm:$0xff]  }
  0x17   :  { %938 = vmatpush3.bf16.msra.mxu0 %v1067_v21  ;;  %v1112_v4 = vld [vmem:[%s1394_s1 + $0x1f8] sm:$0xff]   ;;  %v20_v5 = vld [vmem:[%s1395_s0 + $0x10] sm:$0xff]  ;;  %v1122_v17 = vld [vmem:[%s1394_s1 + $0x220] sm:$0xff]  }
  0x18   :  { %939 = vmatprep.subr.bf16.mxu0 %v1070_v24  ;;  %v850_v6 = vcombine.low %v20_v5, %v20_v5  ;;  %v851_v7 = vcombine.high %v20_v5, %v20_v5  ;;  %v1115_v8 = vld [vmem:[%s1394_s1 + $0x1b8] sm:$0xff]   ;;  %v1120_v15 = vld [vmem:[%s1394_s1 + $0x210] sm:$0xff]   ;;  %v1123_v18 = vld [vmem:[%s1394_s1 + $0x228] sm:$0xff]  }
  0x19   :  { %960 = vmatpush3.bf16.msra.mxu1 %v1069_v23  ;;  %v21_v10 = vld [vmem:[%s1395_s0 + $0x18] sm:$0xff]  ;;  %v1124_v19 = vld [vmem:[%s1394_s1 + $0x230] sm:$0xff]   ;;  %v1126_v21 = vld [vmem:[%s1395_s0 + $0x20] ss:$0 sps:$4 sm:$0xff]  }
  0x1a   :  { %961 = vmatprep.subr.bf16.mxu1 %v1072_v26  ;;  %v852_v11 = vcombine.low %v21_v10, %v21_v10  ;;  %v853_v12 = vcombine.high %v21_v10, %v21_v10  ;;  %v1121_v16 = vld [vmem:[%s1394_s1 + $0x218] sm:$0xff]   ;;  %v845_v23 = vld [vmem:[%s1396_s2] ss:$0 sm:$0xff] }
  0x1b   :  { %940 = vmatpush3.bf16.msra.mxu0 %v1071_v25  ;;  %v1125_v20 = vld [vmem:[%s1394_s1 + $0x238] sm:$0xff]  }
  0x1c   :  { %941 = vmatprep.subr.bf16.mxu0 %v1074_v28 }
  0x1d   :  { %962 = vmatpush3.bf16.msra.mxu1 %v1073_v27 }
  0x1e   :  { %963 = vmatprep.subr.bf16.mxu1 %v1076_v30 }
  0x1f   :  { %942 = vmatpush3.bf16.msra.mxu0 %v1075_v29 }
  0x20   :  { %971 = vmatprep.subr.bf16.mxu0 %v1080_v35 }
  0x21   :  { %964 = vmatpush3.bf16.msra.mxu1 %v1079_v34 }
  0x22   :  { %671 = vmatmul.mubr.bf16.vlgmr.msra.gmra.mrb[0].mxu0 %v846_v32  ;;  %993 = vmatprep.subr.bf16.mxu1 %v1084_v40 }
  0x23   :  { %972 = vmatpush3.bf16.msra.mxu0 %v1083_v39  ;;  %750 = vmatprep.mubr.bf16.mxu0 %v851_v7 }
  0x24   :  { %711 = vmatmul.mubr.bf16.vlgmr.msra.gmra.mrb[0].mxu1 %v848_v37  ;;  %973 = vmatprep.subr.bf16.mxu0 %v1086_v42 }
  0x25   :  { %994 = vmatpush3.bf16.msra.mxu1 %v1085_v41  ;;  %790 = vmatprep.mubr.bf16.mxu1 %v853_v12 }
  0x26   :  { %995 = vmatprep.subr.bf16.mxu1 %v1088_v44 }
  0x27   :  { %974 = vmatpush3.bf16.msra.mxu0 %v1087_v43 }
  0x28   :  { %975 = vmatprep.subr.bf16.mxu0 %v1090_v46 }
  0x29   :  { %996 = vmatpush3.bf16.msra.mxu1 %v1089_v45 }
  0x2a   :  { %997 = vmatprep.subr.bf16.mxu1 %v1092_v48  ;;  %v838_v48 = vld [vmem:[%s1397_s3] sm:$0xff] }
  0x2b   :  { %976 = vmatpush3.bf16.msra.mxu0 %v1091_v47 }
  0x2c   :  { %977 = vmatprep.subr.bf16.mxu0 %v1094_v50 }
  0x2d   :  { %998 = vmatpush3.bf16.msra.mxu1 %v1093_v49 }
  0x2e   :  { %999 = vmatprep.subr.bf16.mxu1 %v1096_v52 }
  0x2f   :  { %978 = vmatpush3.bf16.msra.mxu0 %v1095_v51 }
  0x30   :  { %979 = vmatprep.subr.bf16.mxu0 %v1098_v54 }
  0x31   :  { %1000 = vmatpush3.bf16.msra.mxu1 %v1097_v53 }
  0x32   :  { %1001 = vmatprep.subr.bf16.mxu1 %v1100_v56 }
  0x33   :  { %980 = vmatpush3.bf16.msra.mxu0 %v1099_v55 }
  0x34   :  { %981 = vmatprep.subr.bf16.mxu0 %v1102_v58 }
  0x35   :  { %1002 = vmatpush3.bf16.msra.mxu1 %v1101_v57 }
  0x36   :  { %1003 = vmatprep.subr.bf16.mxu1 %v1104_v60 }
  0x37   :  { %982 = vmatpush3.bf16.msra.mxu0 %v1103_v59 }
  0x38   :  { %983 = vmatprep.subr.bf16.mxu0 %v1106_v62 }
  0x39   :  { %1004 = vmatpush3.bf16.msra.mxu1 %v1105_v61 }
  0x3a   :  { %1005 = vmatprep.subr.bf16.mxu1 %v1108_v0 }
  0x3b   :  { %984 = vmatpush3.bf16.msra.mxu0 %v1107_v63 }
  0x3c   :  { %985 = vmatprep.subr.bf16.mxu0 %v1110_v2 }
  0x3d   :  { %1006 = vmatpush3.bf16.msra.mxu1 %v1109_v1 }
  0x3e   :  { %1007 = vmatprep.subr.bf16.mxu1 %v1112_v4 }
  0x3f   :  { %986 = vmatpush3.bf16.msra.mxu0 %v1111_v3 }
  0x40   :  { %1024 = vmatprep.subr.bf16.mxu0 %v1127_v9 }
  0x41   :  { %1008 = vmatpush3.bf16.msra.mxu1 %v1115_v8 }
  0x42   :  { %751 = vmatmul.mubr.bf16.vlgmr.msra.gmra.mrb[4].mxu0 %v850_v6 }
  0x43   :  { %1025 = vmatpush3.bf16.msra.mxu0 %v1118_v13  ;;  %1040 = vmatprep.mubr.msk.bf16.mxu0 %vm1128_vm0, %v1127_v9 }
  0x44   :  { %791 = vmatmul.mubr.bf16.vlgmr.msra.gmra.mrb[4].mxu1 %v852_v11  ;;  %1026 = vmatprep.subr.bf16.mxu0 %v1127_v9 }
  0x47   :  { %1027 = vmatpush3.bf16.msra.mxu0 %v1119_v14 }
  0x48   :  { %1028 = vmatprep.subr.bf16.mxu0 %v1127_v9 }
  0x4b   :  { %1029 = vmatpush3.bf16.msra.mxu0 %v1120_v15 }
  0x4c   :  { %1030 = vmatprep.subr.bf16.mxu0 %v1127_v9 }
  0x4f   :  { %1031 = vmatpush3.bf16.msra.mxu0 %v1121_v16 }
  0x50   :  { %1032 = vmatprep.subr.bf16.mxu0 %v1127_v9 }
  0x53   :  { %1033 = vmatpush3.bf16.msra.mxu0 %v1122_v17 }
  0x54   :  { %1034 = vmatprep.subr.bf16.mxu0 %v1127_v9 }
  0x57   :  { %1035 = vmatpush3.bf16.msra.mxu0 %v1123_v18 }
  0x58   :  { %1036 = vmatprep.subr.bf16.mxu0 %v1127_v9 }
  0x5b   :  { %1037 = vmatpush3.bf16.msra.mxu0 %v1124_v19 }
  0x5c   :  { %1038 = vmatprep.subr.bf16.mxu0 %v1127_v9 }
  0x5f   :  { %1039 = vmatpush3.bf16.msra.mxu0 %v1125_v20 }
  0x62   :  { %1041 = vmatmul.mubr.bf16.vlgmr.msra.gmra.mrb[8].mxu0 %v1126_v21 }
  0xf5   :  { %v943_v22 = vpop.f32.mrb[0].mxu0 }
  0xf6   :  { %v944_v24 = vpop.f32.mrb[1].mxu0 }
  0xf7   :  { %v945_v25 = vadd.f32 %v944_v24, %v943_v22  ;;  %v946_v26 = vpop.f32.mrb[2].mxu0  ;;  %v965_v27 = vpop.f32.mrb[0].mxu1 }
  0xf8   :  { %v947_v28 = vpop.f32.mrb[3].mxu0  ;;  %v966_v29 = vpop.f32.mrb[1].mxu1 }
  0xf9   :  { %v673_v30 = vadd.f32 %v945_v25, %v845_v23  ;;  %v967_v31 = vadd.f32 %v966_v29, %v965_v27  ;;  %v968_v32 = vpop.f32.mrb[2].mxu1 }
  0xfa   :  { %v969_v33 = vpop.f32.mrb[3].mxu1 }
  0xfb   :  { %v713_v34 = vadd.f32 %v967_v31, %v673_v30 }
 0x115   :  { %v987_v35 = vpop.f32.mrb[4].mxu0 }
 0x116   :  { %v988_v36 = vpop.f32.mrb[5].mxu0 }
 0x117   :  { %v989_v37 = vadd.f32 %v988_v36, %v987_v35  ;;  %v990_v38 = vpop.f32.mrb[6].mxu0  ;;  %v1009_v39 = vpop.f32.mrb[4].mxu1 }
 0x118   :  { %v991_v40 = vpop.f32.mrb[7].mxu0  ;;  %v1010_v41 = vpop.f32.mrb[5].mxu1 }
 0x119   :  { %v753_v42 = vadd.f32 %v989_v37, %v713_v34  ;;  %v1011_v43 = vadd.f32 %v1010_v41, %v1009_v39  ;;  %v1012_v44 = vpop.f32.mrb[6].mxu1 }
 0x11a   :  { %v1013_v45 = vpop.f32.mrb[7].mxu1 }
 0x11b   :  { %v793_v46 = vadd.f32 %v1011_v43, %v753_v42 }
 0x135   :  { %v832_v47 = vpop.f32.mrb[8].mxu0 }
 0x136   :  { %v833_v49 = vadd.f32 %v832_v47, %v793_v46  ;;  %v1042_v50 = vpop.f32.mrb[9].mxu0 }
 0x137   :  { %v835_v51 = vpop.f32.mrb[10].mxu0 }
 0x138   :  { %v839_v52 = vadd.f32 %v838_v48, %v833_v49  ;;  %v1043_v53 = vpop.f32.mrb[11].mxu0 }
 0x13a   :  { %840 = vst [vmem:[%s1398_s4] sm:$0xff] %v839_v52 }

// kernel: resnet_encoder.38
= control target key start
LH: loop header
LB: loop body
LE: loop exit
PB: predicated region body
PF: predicated region fallthrough
CT: control target
= control target key end

     0   :  { %vm1124_vm0 = vmmov 0   ;;  %s1382_s1 = inlined_call_operand.vmem [shape: bf16[1152,128], index: 1, kind: input, shape index: {}]   ;;  %s1383_s0 = inlined_call_operand.vmem [shape: bf16[8,1152], index: 0, kind: input, shape index: {}]   ;;  %s1384_s2 = inlined_call_operand.vmem [shape: f32[1,128], index: 2, kind: input, shape index: {}]   ;;  %s1385_s3 = inlined_call_operand.vmem [shape: f32[8,128], index: 3, kind: output, shape index: {}]  }
   0x1   :  { %v1042_v0 = vld [vmem:[%s1382_s1 + $0x40] sm:$0xff]   ;;  %v1046_v4 = vld [vmem:[%s1382_s1 + $0x48] sm:$0xff]   ;;  %v1050_v8 = vld [vmem:[%s1382_s1 + $0x50] sm:$0xff]  }
   0x2   :  { %v1043_v1 = vld [vmem:[%s1382_s1] sm:$0xff]   ;;  %923 = vmatprep.subr.bf16.mxu0 %v1042_v0  ;;  %v1047_v5 = vld [vmem:[%s1382_s1 + $0x8] sm:$0xff]   ;;  %v1051_v9 = vld [vmem:[%s1382_s1 + $0x10] sm:$0xff]  }
   0x3   :  { %v1044_v2 = vld [vmem:[%s1382_s1 + $0xc0] sm:$0xff]   ;;  %924 = vmatpush3.bf16.msra.mxu0 %v1043_v1  ;;  %v1048_v6 = vld [vmem:[%s1382_s1 + $0xc8] sm:$0xff]   ;;  %v1052_v10 = vld [vmem:[%s1382_s1 + $0xd0] sm:$0xff]  }
   0x4   :  { %v1045_v3 = vld [vmem:[%s1382_s1 + $0x80] sm:$0xff]   ;;  %945 = vmatprep.subr.bf16.mxu1 %v1044_v2  ;;  %925 = vmatprep.subr.bf16.mxu0 %v1046_v4  ;;  %v1049_v7 = vld [vmem:[%s1382_s1 + $0x88] sm:$0xff]   ;;  %v1053_v11 = vld [vmem:[%s1382_s1 + $0x90] sm:$0xff]  }
   0x5   :  { %946 = vmatpush3.bf16.msra.mxu1 %v1045_v3  ;;  %v1054_v12 = vld [vmem:[%s1382_s1 + $0x58] sm:$0xff]   ;;  %v1058_v16 = vld [vmem:[%s1382_s1 + $0x60] sm:$0xff]   ;;  %v1062_v20 = vld [vmem:[%s1382_s1 + $0x68] sm:$0xff]  }
   0x6   :  { %947 = vmatprep.subr.bf16.mxu1 %v1048_v6  ;;  %v1055_v13 = vld [vmem:[%s1382_s1 + $0x18] sm:$0xff]   ;;  %v1059_v17 = vld [vmem:[%s1382_s1 + $0x20] sm:$0xff]   ;;  %v1063_v21 = vld [vmem:[%s1382_s1 + $0x28] sm:$0xff]  }
   0x7   :  { %926 = vmatpush3.bf16.msra.mxu0 %v1047_v5  ;;  %v1056_v14 = vld [vmem:[%s1382_s1 + $0xd8] sm:$0xff]   ;;  %v1060_v18 = vld [vmem:[%s1382_s1 + $0xe0] sm:$0xff]   ;;  %v1064_v22 = vld [vmem:[%s1382_s1 + $0xe8] sm:$0xff]  }
   0x8   :  { %927 = vmatprep.subr.bf16.mxu0 %v1050_v8  ;;  %v1057_v15 = vld [vmem:[%s1382_s1 + $0x98] sm:$0xff]   ;;  %v1061_v19 = vld [vmem:[%s1382_s1 + $0xa0] sm:$0xff]   ;;  %v1065_v23 = vld [vmem:[%s1382_s1 + $0xa8] sm:$0xff]  }
   0x9   :  { %948 = vmatpush3.bf16.msra.mxu1 %v1049_v7  ;;  %v1066_v24 = vld [vmem:[%s1382_s1 + $0x70] sm:$0xff]   ;;  %v1070_v28 = vld [vmem:[%s1382_s1 + $0x78] sm:$0xff]   ;;  %v15_v31 = vld [vmem:[%s1383_s0] sm:$0xff] }
   0xa   :  { %949 = vmatprep.subr.bf16.mxu1 %v1052_v10  ;;  %v1067_v25 = vld [vmem:[%s1382_s1 + $0x30] sm:$0xff]   ;;  %v1071_v29 = vld [vmem:[%s1382_s1 + $0x38] sm:$0xff]   ;;  %v842_v32 = vcombine.low %v15_v31, %v15_v31  ;;  %v843_v33 = vcombine.high %v15_v31, %v15_v31  ;;  %v1076_v35 = vld [vmem:[%s1382_s1 + $0x140] sm:$0xff]  }
   0xb   :  { %928 = vmatpush3.bf16.msra.mxu0 %v1051_v9  ;;  %v1068_v26 = vld [vmem:[%s1382_s1 + $0xf0] sm:$0xff]   ;;  %v1072_v30 = vld [vmem:[%s1382_s1 + $0xf8] sm:$0xff]   ;;  %v16_v36 = vld [vmem:[%s1383_s0 + $0x8] sm:$0xff]  ;;  %v1123_v9 = vmov 0.0  }
   0xc   :  { %929 = vmatprep.subr.bf16.mxu0 %v1054_v12  ;;  %v1069_v27 = vld [vmem:[%s1382_s1 + $0xb0] sm:$0xff]   ;;  %v1075_v34 = vld [vmem:[%s1382_s1 + $0xb8] sm:$0xff]   ;;  %667 = vmatprep.mubr.bf16.mxu0 %v843_v33  ;;  %v844_v37 = vcombine.low %v16_v36, %v16_v36  ;;  %v845_v38 = vcombine.high %v16_v36, %v16_v36  ;;  %v1079_v39 = vld [vmem:[%s1382_s1 + $0x100] sm:$0xff]  }
   0xd   :  { %950 = vmatpush3.bf16.msra.mxu1 %v1053_v11  ;;  %v1080_v40 = vld [vmem:[%s1382_s1 + $0x1c0] sm:$0xff]   ;;  %v1082_v42 = vld [vmem:[%s1382_s1 + $0x148] sm:$0xff]   ;;  %v1086_v46 = vld [vmem:[%s1382_s1 + $0x150] sm:$0xff]  }
   0xe   :  { %951 = vmatprep.subr.bf16.mxu1 %v1056_v14  ;;  %707 = vmatprep.mubr.bf16.mxu1 %v845_v38  ;;  %v1081_v41 = vld [vmem:[%s1382_s1 + $0x180] sm:$0xff]   ;;  %v1083_v43 = vld [vmem:[%s1382_s1 + $0x108] sm:$0xff]   ;;  %v1087_v47 = vld [vmem:[%s1382_s1 + $0x110] sm:$0xff]  }
   0xf   :  { %930 = vmatpush3.bf16.msra.mxu0 %v1055_v13  ;;  %v1084_v44 = vld [vmem:[%s1382_s1 + $0x1c8] sm:$0xff]   ;;  %v1088_v48 = vld [vmem:[%s1382_s1 + $0x1d0] sm:$0xff]   ;;  %v1090_v50 = vld [vmem:[%s1382_s1 + $0x158] sm:$0xff]  }
  0x10   :  { %931 = vmatprep.subr.bf16.mxu0 %v1058_v16  ;;  %v1085_v45 = vld [vmem:[%s1382_s1 + $0x188] sm:$0xff]   ;;  %v1089_v49 = vld [vmem:[%s1382_s1 + $0x190] sm:$0xff]   ;;  %v1091_v51 = vld [vmem:[%s1382_s1 + $0x118] sm:$0xff]  }
  0x11   :  { %952 = vmatpush3.bf16.msra.mxu1 %v1057_v15  ;;  %v1092_v52 = vld [vmem:[%s1382_s1 + $0x1d8] sm:$0xff]   ;;  %v1094_v54 = vld [vmem:[%s1382_s1 + $0x160] sm:$0xff]   ;;  %v1098_v58 = vld [vmem:[%s1382_s1 + $0x168] sm:$0xff]  }
  0x12   :  { %953 = vmatprep.subr.bf16.mxu1 %v1060_v18  ;;  %v1093_v53 = vld [vmem:[%s1382_s1 + $0x198] sm:$0xff]   ;;  %v1095_v55 = vld [vmem:[%s1382_s1 + $0x120] sm:$0xff]   ;;  %v1099_v59 = vld [vmem:[%s1382_s1 + $0x128] sm:$0xff]  }
  0x13   :  { %932 = vmatpush3.bf16.msra.mxu0 %v1059_v17  ;;  %v1096_v56 = vld [vmem:[%s1382_s1 + $0x1e0] sm:$0xff]   ;;  %v1100_v60 = vld [vmem:[%s1382_s1 + $0x1e8] sm:$0xff]   ;;  %v1102_v62 = vld [vmem:[%s1382_s1 + $0x170] sm:$0xff]  }
  0x14   :  { %933 = vmatprep.subr.bf16.mxu0 %v1062_v20  ;;  %v1097_v57 = vld [vmem:[%s1382_s1 + $0x1a0] sm:$0xff]   ;;  %v1101_v61 = vld [vmem:[%s1382_s1 + $0x1a8] sm:$0xff]   ;;  %v1103_v63 = vld [vmem:[%s1382_s1 + $0x130] sm:$0xff]  }
  0x15   :  { %954 = vmatpush3.bf16.msra.mxu1 %v1061_v19  ;;  %v1104_v0 = vld [vmem:[%s1382_s1 + $0x1f0] sm:$0xff]   ;;  %v1106_v2 = vld [vmem:[%s1382_s1 + $0x178] sm:$0xff]   ;;  %v1114_v13 = vld [vmem:[%s1382_s1 + $0x200] sm:$0xff]  }
  0x16   :  { %955 = vmatprep.subr.bf16.mxu1 %v1064_v22  ;;  %v1105_v1 = vld [vmem:[%s1382_s1 + $0x1b0] sm:$0xff]   ;;  %v1107_v3 = vld [vmem:[%s1382_s1 + $0x138] sm:$0xff]   ;;  %v1115_v14 = vld [vmem:[%s1382_s1 + $0x208] sm:$0xff]  }
  0x17   :  { %934 = vmatpush3.bf16.msra.mxu0 %v1063_v21  ;;  %v1108_v4 = vld [vmem:[%s1382_s1 + $0x1f8] sm:$0xff]   ;;  %v17_v5 = vld [vmem:[%s1383_s0 + $0x10] sm:$0xff]  ;;  %v1118_v17 = vld [vmem:[%s1382_s1 + $0x220] sm:$0xff]  }
  0x18   :  { %935 = vmatprep.subr.bf16.mxu0 %v1066_v24  ;;  %v846_v6 = vcombine.low %v17_v5, %v17_v5  ;;  %v847_v7 = vcombine.high %v17_v5, %v17_v5  ;;  %v1111_v8 = vld [vmem:[%s1382_s1 + $0x1b8] sm:$0xff]   ;;  %v1116_v15 = vld [vmem:[%s1382_s1 + $0x210] sm:$0xff]   ;;  %v1119_v18 = vld [vmem:[%s1382_s1 + $0x228] sm:$0xff]  }
  0x19   :  { %956 = vmatpush3.bf16.msra.mxu1 %v1065_v23  ;;  %v18_v10 = vld [vmem:[%s1383_s0 + $0x18] sm:$0xff]  ;;  %v1120_v19 = vld [vmem:[%s1382_s1 + $0x230] sm:$0xff]   ;;  %v1122_v21 = vld [vmem:[%s1383_s0 + $0x20] ss:$0 sps:$4 sm:$0xff]  }
  0x1a   :  { %957 = vmatprep.subr.bf16.mxu1 %v1068_v26  ;;  %v848_v11 = vcombine.low %v18_v10, %v18_v10  ;;  %v849_v12 = vcombine.high %v18_v10, %v18_v10  ;;  %v1117_v16 = vld [vmem:[%s1382_s1 + $0x218] sm:$0xff]   ;;  %v841_v23 = vld [vmem:[%s1384_s2] ss:$0 sm:$0xff] }
  0x1b   :  { %936 = vmatpush3.bf16.msra.mxu0 %v1067_v25  ;;  %v1121_v20 = vld [vmem:[%s1382_s1 + $0x238] sm:$0xff]  }
  0x1c   :  { %937 = vmatprep.subr.bf16.mxu0 %v1070_v28 }
  0x1d   :  { %958 = vmatpush3.bf16.msra.mxu1 %v1069_v27 }
  0x1e   :  { %959 = vmatprep.subr.bf16.mxu1 %v1072_v30 }
  0x1f   :  { %938 = vmatpush3.bf16.msra.mxu0 %v1071_v29 }
  0x20   :  { %967 = vmatprep.subr.bf16.mxu0 %v1076_v35 }
  0x21   :  { %960 = vmatpush3.bf16.msra.mxu1 %v1075_v34 }
  0x22   :  { %668 = vmatmul.mubr.bf16.vlgmr.msra.gmra.mrb[0].mxu0 %v842_v32  ;;  %989 = vmatprep.subr.bf16.mxu1 %v1080_v40 }
  0x23   :  { %968 = vmatpush3.bf16.msra.mxu0 %v1079_v39  ;;  %747 = vmatprep.mubr.bf16.mxu0 %v847_v7 }
  0x24   :  { %708 = vmatmul.mubr.bf16.vlgmr.msra.gmra.mrb[0].mxu1 %v844_v37  ;;  %969 = vmatprep.subr.bf16.mxu0 %v1082_v42 }
  0x25   :  { %990 = vmatpush3.bf16.msra.mxu1 %v1081_v41  ;;  %787 = vmatprep.mubr.bf16.mxu1 %v849_v12 }
  0x26   :  { %991 = vmatprep.subr.bf16.mxu1 %v1084_v44 }
  0x27   :  { %970 = vmatpush3.bf16.msra.mxu0 %v1083_v43 }
  0x28   :  { %971 = vmatprep.subr.bf16.mxu0 %v1086_v46 }
  0x29   :  { %992 = vmatpush3.bf16.msra.mxu1 %v1085_v45 }
  0x2a   :  { %993 = vmatprep.subr.bf16.mxu1 %v1088_v48 }
  0x2b   :  { %972 = vmatpush3.bf16.msra.mxu0 %v1087_v47 }
  0x2c   :  { %973 = vmatprep.subr.bf16.mxu0 %v1090_v50 }
  0x2d   :  { %994 = vmatpush3.bf16.msra.mxu1 %v1089_v49 }
  0x2e   :  { %995 = vmatprep.subr.bf16.mxu1 %v1092_v52 }
  0x2f   :  { %974 = vmatpush3.bf16.msra.mxu0 %v1091_v51 }
  0x30   :  { %975 = vmatprep.subr.bf16.mxu0 %v1094_v54 }
  0x31   :  { %996 = vmatpush3.bf16.msra.mxu1 %v1093_v53 }
  0x32   :  { %997 = vmatprep.subr.bf16.mxu1 %v1096_v56 }
  0x33   :  { %976 = vmatpush3.bf16.msra.mxu0 %v1095_v55 }
  0x34   :  { %977 = vmatprep.subr.bf16.mxu0 %v1098_v58 }
  0x35   :  { %998 = vmatpush3.bf16.msra.mxu1 %v1097_v57 }
  0x36   :  { %999 = vmatprep.subr.bf16.mxu1 %v1100_v60 }
  0x37   :  { %978 = vmatpush3.bf16.msra.mxu0 %v1099_v59 }
  0x38   :  { %979 = vmatprep.subr.bf16.mxu0 %v1102_v62 }
  0x39   :  { %1000 = vmatpush3.bf16.msra.mxu1 %v1101_v61 }
  0x3a   :  { %1001 = vmatprep.subr.bf16.mxu1 %v1104_v0 }
  0x3b   :  { %980 = vmatpush3.bf16.msra.mxu0 %v1103_v63 }
  0x3c   :  { %981 = vmatprep.subr.bf16.mxu0 %v1106_v2 }
  0x3d   :  { %1002 = vmatpush3.bf16.msra.mxu1 %v1105_v1 }
  0x3e   :  { %1003 = vmatprep.subr.bf16.mxu1 %v1108_v4 }
  0x3f   :  { %982 = vmatpush3.bf16.msra.mxu0 %v1107_v3 }
  0x40   :  { %1020 = vmatprep.subr.bf16.mxu0 %v1123_v9 }
  0x41   :  { %1004 = vmatpush3.bf16.msra.mxu1 %v1111_v8 }
  0x42   :  { %748 = vmatmul.mubr.bf16.vlgmr.msra.gmra.mrb[4].mxu0 %v846_v6 }
  0x43   :  { %1021 = vmatpush3.bf16.msra.mxu0 %v1114_v13  ;;  %1036 = vmatprep.mubr.msk.bf16.mxu0 %vm1124_vm0, %v1123_v9 }
  0x44   :  { %788 = vmatmul.mubr.bf16.vlgmr.msra.gmra.mrb[4].mxu1 %v848_v11  ;;  %1022 = vmatprep.subr.bf16.mxu0 %v1123_v9 }
  0x47   :  { %1023 = vmatpush3.bf16.msra.mxu0 %v1115_v14 }
  0x48   :  { %1024 = vmatprep.subr.bf16.mxu0 %v1123_v9 }
  0x4b   :  { %1025 = vmatpush3.bf16.msra.mxu0 %v1116_v15 }
  0x4c   :  { %1026 = vmatprep.subr.bf16.mxu0 %v1123_v9 }
  0x4f   :  { %1027 = vmatpush3.bf16.msra.mxu0 %v1117_v16 }
  0x50   :  { %1028 = vmatprep.subr.bf16.mxu0 %v1123_v9 }
  0x53   :  { %1029 = vmatpush3.bf16.msra.mxu0 %v1118_v17 }
  0x54   :  { %1030 = vmatprep.subr.bf16.mxu0 %v1123_v9 }
  0x57   :  { %1031 = vmatpush3.bf16.msra.mxu0 %v1119_v18 }
  0x58   :  { %1032 = vmatprep.subr.bf16.mxu0 %v1123_v9 }
  0x5b   :  { %1033 = vmatpush3.bf16.msra.mxu0 %v1120_v19 }
  0x5c   :  { %1034 = vmatprep.subr.bf16.mxu0 %v1123_v9 }
  0x5f   :  { %1035 = vmatpush3.bf16.msra.mxu0 %v1121_v20 }
  0x62   :  { %1037 = vmatmul.mubr.bf16.vlgmr.msra.gmra.mrb[8].mxu0 %v1122_v21 }
  0xf5   :  { %v939_v22 = vpop.f32.mrb[0].mxu0 }
  0xf6   :  { %v940_v24 = vpop.f32.mrb[1].mxu0 }
  0xf7   :  { %v941_v25 = vadd.f32 %v940_v24, %v939_v22  ;;  %v942_v26 = vpop.f32.mrb[2].mxu0  ;;  %v961_v27 = vpop.f32.mrb[0].mxu1 }
  0xf8   :  { %v943_v28 = vpop.f32.mrb[3].mxu0  ;;  %v962_v29 = vpop.f32.mrb[1].mxu1 }
  0xf9   :  { %v670_v30 = vadd.f32 %v941_v25, %v841_v23  ;;  %v963_v31 = vadd.f32 %v962_v29, %v961_v27  ;;  %v964_v32 = vpop.f32.mrb[2].mxu1 }
  0xfa   :  { %v965_v33 = vpop.f32.mrb[3].mxu1 }
  0xfb   :  { %v710_v34 = vadd.f32 %v963_v31, %v670_v30 }
 0x115   :  { %v983_v35 = vpop.f32.mrb[4].mxu0 }
 0x116   :  { %v984_v36 = vpop.f32.mrb[5].mxu0 }
 0x117   :  { %v985_v37 = vadd.f32 %v984_v36, %v983_v35  ;;  %v986_v38 = vpop.f32.mrb[6].mxu0  ;;  %v1005_v39 = vpop.f32.mrb[4].mxu1 }
 0x118   :  { %v987_v40 = vpop.f32.mrb[7].mxu0  ;;  %v1006_v41 = vpop.f32.mrb[5].mxu1 }
 0x119   :  { %v750_v42 = vadd.f32 %v985_v37, %v710_v34  ;;  %v1007_v43 = vadd.f32 %v1006_v41, %v1005_v39  ;;  %v1008_v44 = vpop.f32.mrb[6].mxu1 }
 0x11a   :  { %v1009_v45 = vpop.f32.mrb[7].mxu1 }
 0x11b   :  { %v790_v46 = vadd.f32 %v1007_v43, %v750_v42 }
 0x135   :  { %v829_v47 = vpop.f32.mrb[8].mxu0 }
 0x136   :  { %v830_v48 = vadd.f32 %v829_v47, %v790_v46  ;;  %v1038_v49 = vpop.f32.mrb[9].mxu0 }
 0x137   :  { %v832_v50 = vpop.f32.mrb[10].mxu0 }
 0x138   :  { %v835_v51 = vmax.f32 %v830_v48, 0.0  ;;  %v1039_v52 = vpop.f32.mrb[11].mxu0 }
 0x13a   :  { %836 = vst [vmem:[%s1385_s3] sm:$0xff] %v835_v51 }

// kernel: resnet_encoder.39
= control target key start
LH: loop header
LB: loop body
LE: loop exit
PB: predicated region body
PF: predicated region fallthrough
CT: control target
= control target key end

     0   :  { %vm1164_vm0 = vmmov 0   ;;  %s1440_s0 = inlined_call_operand.vmem [shape: bf16[8,1152], index: 0, kind: input, shape index: {}]   ;;  %s1441_s1 = inlined_call_operand.vmem [shape: bf16[1152,128], index: 1, kind: input, shape index: {}]   ;;  %s1442_s2 = inlined_call_operand.vmem [shape: f32[1,128], index: 2, kind: input, shape index: {}]   ;;  %s1443_s3 = inlined_call_operand.vmem [shape: f32[8,128], index: 3, kind: input, shape index: {}]   ;;  %s1444_s4 = inlined_call_operand.hbm [shape: f32[8,128], index: 4, kind: output, shape index: {}]  }
   0x1   :  { %v1058_v0 = vld [vmem:[%s1441_s1 + $0x40] sm:$0xff]   ;;  %v1062_v4 = vld [vmem:[%s1441_s1 + $0x48] sm:$0xff]   ;;  %v1066_v8 = vld [vmem:[%s1441_s1 + $0x50] sm:$0xff]  }
   0x2   :  { %v1059_v1 = vld [vmem:[%s1441_s1] sm:$0xff]   ;;  %938 = vmatprep.subr.bf16.mxu0 %v1058_v0  ;;  %v1063_v5 = vld [vmem:[%s1441_s1 + $0x8] sm:$0xff]   ;;  %v1067_v9 = vld [vmem:[%s1441_s1 + $0x10] sm:$0xff]  }
   0x3   :  { %v1060_v2 = vld [vmem:[%s1441_s1 + $0xc0] sm:$0xff]   ;;  %939 = vmatpush3.bf16.msra.mxu0 %v1059_v1  ;;  %v1064_v6 = vld [vmem:[%s1441_s1 + $0xc8] sm:$0xff]   ;;  %v1068_v10 = vld [vmem:[%s1441_s1 + $0xd0] sm:$0xff]  }
   0x4   :  { %v1061_v3 = vld [vmem:[%s1441_s1 + $0x80] sm:$0xff]   ;;  %960 = vmatprep.subr.bf16.mxu1 %v1060_v2  ;;  %940 = vmatprep.subr.bf16.mxu0 %v1062_v4  ;;  %v1065_v7 = vld [vmem:[%s1441_s1 + $0x88] sm:$0xff]   ;;  %v1069_v11 = vld [vmem:[%s1441_s1 + $0x90] sm:$0xff]  }
   0x5   :  { %961 = vmatpush3.bf16.msra.mxu1 %v1061_v3  ;;  %v1070_v12 = vld [vmem:[%s1441_s1 + $0x58] sm:$0xff]   ;;  %v1074_v16 = vld [vmem:[%s1441_s1 + $0x60] sm:$0xff]   ;;  %v1078_v20 = vld [vmem:[%s1441_s1 + $0x68] sm:$0xff]  }
   0x6   :  { %962 = vmatprep.subr.bf16.mxu1 %v1064_v6  ;;  %v1071_v13 = vld [vmem:[%s1441_s1 + $0x18] sm:$0xff]   ;;  %v1075_v17 = vld [vmem:[%s1441_s1 + $0x20] sm:$0xff]   ;;  %v1079_v21 = vld [vmem:[%s1441_s1 + $0x28] sm:$0xff]  }
   0x7   :  { %941 = vmatpush3.bf16.msra.mxu0 %v1063_v5  ;;  %v1072_v14 = vld [vmem:[%s1441_s1 + $0xd8] sm:$0xff]   ;;  %v1076_v18 = vld [vmem:[%s1441_s1 + $0xe0] sm:$0xff]   ;;  %v1080_v22 = vld [vmem:[%s1441_s1 + $0xe8] sm:$0xff]  }
   0x8   :  { %942 = vmatprep.subr.bf16.mxu0 %v1066_v8  ;;  %v1073_v15 = vld [vmem:[%s1441_s1 + $0x98] sm:$0xff]   ;;  %v1077_v19 = vld [vmem:[%s1441_s1 + $0xa0] sm:$0xff]   ;;  %v1081_v23 = vld [vmem:[%s1441_s1 + $0xa8] sm:$0xff]  }
   0x9   :  { %963 = vmatpush3.bf16.msra.mxu1 %v1065_v7  ;;  %v1082_v24 = vld [vmem:[%s1441_s1 + $0x70] sm:$0xff]   ;;  %v1086_v28 = vld [vmem:[%s1441_s1 + $0x78] sm:$0xff]   ;;  %v19_v31 = vld [vmem:[%s1440_s0] sm:$0xff] }
   0xa   :  { %964 = vmatprep.subr.bf16.mxu1 %v1068_v10  ;;  %v1083_v25 = vld [vmem:[%s1441_s1 + $0x30] sm:$0xff]   ;;  %v1087_v29 = vld [vmem:[%s1441_s1 + $0x38] sm:$0xff]   ;;  %v857_v32 = vcombine.low %v19_v31, %v19_v31  ;;  %v858_v33 = vcombine.high %v19_v31, %v19_v31  ;;  %v1092_v35 = vld [vmem:[%s1441_s1 + $0x140] sm:$0xff]  }
   0xb   :  { %943 = vmatpush3.bf16.msra.mxu0 %v1067_v9  ;;  %v1084_v26 = vld [vmem:[%s1441_s1 + $0xf0] sm:$0xff]   ;;  %v1088_v30 = vld [vmem:[%s1441_s1 + $0xf8] sm:$0xff]   ;;  %v20_v36 = vld [vmem:[%s1440_s0 + $0x8] sm:$0xff]  ;;  %v1163_v9 = vmov 0.0  }
   0xc   :  { %944 = vmatprep.subr.bf16.mxu0 %v1070_v12  ;;  %v1085_v27 = vld [vmem:[%s1441_s1 + $0xb0] sm:$0xff]   ;;  %v1091_v34 = vld [vmem:[%s1441_s1 + $0xb8] sm:$0xff]   ;;  %671 = vmatprep.mubr.bf16.mxu0 %v858_v33  ;;  %v859_v37 = vcombine.low %v20_v36, %v20_v36  ;;  %v860_v38 = vcombine.high %v20_v36, %v20_v36  ;;  %v1095_v39 = vld [vmem:[%s1441_s1 + $0x100] sm:$0xff]  }
   0xd   :  { %965 = vmatpush3.bf16.msra.mxu1 %v1069_v11  ;;  %v1096_v40 = vld [vmem:[%s1441_s1 + $0x1c0] sm:$0xff]   ;;  %v1098_v42 = vld [vmem:[%s1441_s1 + $0x148] sm:$0xff]   ;;  %v1102_v46 = vld [vmem:[%s1441_s1 + $0x150] sm:$0xff]  }
   0xe   :  { %966 = vmatprep.subr.bf16.mxu1 %v1072_v14  ;;  %711 = vmatprep.mubr.bf16.mxu1 %v860_v38  ;;  %v1097_v41 = vld [vmem:[%s1441_s1 + $0x180] sm:$0xff]   ;;  %v1099_v43 = vld [vmem:[%s1441_s1 + $0x108] sm:$0xff]   ;;  %v1103_v47 = vld [vmem:[%s1441_s1 + $0x110] sm:$0xff]  }
   0xf   :  { %945 = vmatpush3.bf16.msra.mxu0 %v1071_v13  ;;  %v1100_v44 = vld [vmem:[%s1441_s1 + $0x1c8] sm:$0xff]   ;;  %v1104_v48 = vld [vmem:[%s1441_s1 + $0x1d0] sm:$0xff]   ;;  %v1106_v50 = vld [vmem:[%s1441_s1 + $0x158] sm:$0xff]  }
  0x10   :  { %946 = vmatprep.subr.bf16.mxu0 %v1074_v16  ;;  %v1101_v45 = vld [vmem:[%s1441_s1 + $0x188] sm:$0xff]   ;;  %v1105_v49 = vld [vmem:[%s1441_s1 + $0x190] sm:$0xff]   ;;  %v1107_v51 = vld [vmem:[%s1441_s1 + $0x118] sm:$0xff]  }
  0x11   :  { %967 = vmatpush3.bf16.msra.mxu1 %v1073_v15  ;;  %v1108_v52 = vld [vmem:[%s1441_s1 + $0x1d8] sm:$0xff]   ;;  %v1110_v54 = vld [vmem:[%s1441_s1 + $0x160] sm:$0xff]   ;;  %v1114_v58 = vld [vmem:[%s1441_s1 + $0x168] sm:$0xff]  }
  0x12   :  { %968 = vmatprep.subr.bf16.mxu1 %v1076_v18  ;;  %v1109_v53 = vld [vmem:[%s1441_s1 + $0x198] sm:$0xff]   ;;  %v1111_v55 = vld [vmem:[%s1441_s1 + $0x120] sm:$0xff]   ;;  %v1115_v59 = vld [vmem:[%s1441_s1 + $0x128] sm:$0xff]  }
  0x13   :  { %947 = vmatpush3.bf16.msra.mxu0 %v1075_v17  ;;  %v1112_v56 = vld [vmem:[%s1441_s1 + $0x1e0] sm:$0xff]   ;;  %v1116_v60 = vld [vmem:[%s1441_s1 + $0x1e8] sm:$0xff]   ;;  %v1118_v62 = vld [vmem:[%s1441_s1 + $0x170] sm:$0xff]  }
  0x14   :  { %948 = vmatprep.subr.bf16.mxu0 %v1078_v20  ;;  %v1113_v57 = vld [vmem:[%s1441_s1 + $0x1a0] sm:$0xff]   ;;  %v1117_v61 = vld [vmem:[%s1441_s1 + $0x1a8] sm:$0xff]   ;;  %v1119_v63 = vld [vmem:[%s1441_s1 + $0x130] sm:$0xff]  }
  0x15   :  { %969 = vmatpush3.bf16.msra.mxu1 %v1077_v19  ;;  %v1120_v0 = vld [vmem:[%s1441_s1 + $0x1f0] sm:$0xff]   ;;  %v1122_v2 = vld [vmem:[%s1441_s1 + $0x178] sm:$0xff]   ;;  %v1130_v13 = vld [vmem:[%s1441_s1 + $0x200] sm:$0xff]  }
  0x16   :  { %970 = vmatprep.subr.bf16.mxu1 %v1080_v22  ;;  %v1121_v1 = vld [vmem:[%s1441_s1 + $0x1b0] sm:$0xff]   ;;  %v1123_v3 = vld [vmem:[%s1441_s1 + $0x138] sm:$0xff]   ;;  %v1131_v14 = vld [vmem:[%s1441_s1 + $0x208] sm:$0xff]  }
  0x17   :  { %949 = vmatpush3.bf16.msra.mxu0 %v1079_v21  ;;  %v1124_v4 = vld [vmem:[%s1441_s1 + $0x1f8] sm:$0xff]   ;;  %v21_v5 = vld [vmem:[%s1440_s0 + $0x10] sm:$0xff] }
  0x18   :  { %950 = vmatprep.subr.bf16.mxu0 %v1082_v24  ;;  %v861_v6 = vcombine.low %v21_v5, %v21_v5  ;;  %v862_v7 = vcombine.high %v21_v5, %v21_v5  ;;  %v1127_v8 = vld [vmem:[%s1441_s1 + $0x1b8] sm:$0xff]   ;;  %v1132_v15 = vld [vmem:[%s1441_s1 + $0x210] sm:$0xff]  }
  0x19   :  { %971 = vmatpush3.bf16.msra.mxu1 %v1081_v23  ;;  %v22_v10 = vld [vmem:[%s1440_s0 + $0x18] sm:$0xff] }
  0x1a   :  { %972 = vmatprep.subr.bf16.mxu1 %v1084_v26  ;;  %v863_v11 = vcombine.low %v22_v10, %v22_v10  ;;  %v864_v12 = vcombine.high %v22_v10, %v22_v10 }
  0x1b   :  { %951 = vmatpush3.bf16.msra.mxu0 %v1083_v25 }
  0x1c   :  { %952 = vmatprep.subr.bf16.mxu0 %v1086_v28 }
  0x1d   :  { %973 = vmatpush3.bf16.msra.mxu1 %v1085_v27 }
  0x1e   :  { %974 = vmatprep.subr.bf16.mxu1 %v1088_v30 }
  0x1f   :  { %953 = vmatpush3.bf16.msra.mxu0 %v1087_v29 }
  0x20   :  { %982 = vmatprep.subr.bf16.mxu0 %v1092_v35 }
  0x21   :  { %975 = vmatpush3.bf16.msra.mxu1 %v1091_v34 }
  0x22   :  { %672 = vmatmul.mubr.bf16.vlgmr.msra.gmra.mrb[0].mxu0 %v857_v32  ;;  %1004 = vmatprep.subr.bf16.mxu1 %v1096_v40 }
  0x23   :  { %983 = vmatpush3.bf16.msra.mxu0 %v1095_v39  ;;  %751 = vmatprep.mubr.bf16.mxu0 %v862_v7 }
  0x24   :  { %712 = vmatmul.mubr.bf16.vlgmr.msra.gmra.mrb[0].mxu1 %v859_v37  ;;  %984 = vmatprep.subr.bf16.mxu0 %v1098_v42 }
  0x25   :  { %1005 = vmatpush3.bf16.msra.mxu1 %v1097_v41  ;;  %791 = vmatprep.mubr.bf16.mxu1 %v864_v12 }
  0x26   :  { %1006 = vmatprep.subr.bf16.mxu1 %v1100_v44 }
  0x27   :  { %985 = vmatpush3.bf16.msra.mxu0 %v1099_v43 }
  0x28   :  { %986 = vmatprep.subr.bf16.mxu0 %v1102_v46 }
  0x29   :  { %1007 = vmatpush3.bf16.msra.mxu1 %v1101_v45 }
  0x2a   :  { %1008 = vmatprep.subr.bf16.mxu1 %v1104_v48 }
  0x2b   :  { %987 = vmatpush3.bf16.msra.mxu0 %v1103_v47 }
  0x2c   :  { %988 = vmatprep.subr.bf16.mxu0 %v1106_v50 }
  0x2d   :  { %1009 = vmatpush3.bf16.msra.mxu1 %v1105_v49 }
  0x2e   :  { %1010 = vmatprep.subr.bf16.mxu1 %v1108_v52 }
  0x2f   :  { %989 = vmatpush3.bf16.msra.mxu0 %v1107_v51 }
  0x30   :  { %990 = vmatprep.subr.bf16.mxu0 %v1110_v54 }
  0x31   :  { %1011 = vmatpush3.bf16.msra.mxu1 %v1109_v53 }
  0x32   :  { %1012 = vmatprep.subr.bf16.mxu1 %v1112_v56 }
  0x33   :  { %991 = vmatpush3.bf16.msra.mxu0 %v1111_v55 }
  0x34   :  { %992 = vmatprep.subr.bf16.mxu0 %v1114_v58 }
  0x35   :  { %1013 = vmatpush3.bf16.msra.mxu1 %v1113_v57 }
  0x36   :  { %1014 = vmatprep.subr.bf16.mxu1 %v1116_v60 }
  0x37   :  { %993 = vmatpush3.bf16.msra.mxu0 %v1115_v59 }
  0x38   :  { %994 = vmatprep.subr.bf16.mxu0 %v1118_v62 }
  0x39   :  { %1015 = vmatpush3.bf16.msra.mxu1 %v1117_v61 }
  0x3a   :  { %1016 = vmatprep.subr.bf16.mxu1 %v1120_v0 }
  0x3b   :  { %995 = vmatpush3.bf16.msra.mxu0 %v1119_v63 }
  0x3c   :  { %996 = vmatprep.subr.bf16.mxu0 %v1122_v2 }
  0x3d   :  { %1017 = vmatpush3.bf16.msra.mxu1 %v1121_v1 }
  0x3e   :  { %1018 = vmatprep.subr.bf16.mxu1 %v1124_v4 }
  0x3f   :  { %997 = vmatpush3.bf16.msra.mxu0 %v1123_v3 }
  0x40   :  { %1035 = vmatprep.subr.bf16.mxu0 %v1163_v9 }
  0x41   :  { %1019 = vmatpush3.bf16.msra.mxu1 %v1127_v8 }
  0x42   :  { %752 = vmatmul.mubr.bf16.vlgmr.msra.gmra.mrb[4].mxu0 %v861_v6 }
  0x43   :  { %1036 = vmatpush3.bf16.msra.mxu0 %v1130_v13  ;;  %1051 = vmatprep.mubr.msk.bf16.mxu0 %vm1164_vm0, %v1163_v9 }
  0x44   :  { %792 = vmatmul.mubr.bf16.vlgmr.msra.gmra.mrb[4].mxu1 %v863_v11  ;;  %1037 = vmatprep.subr.bf16.mxu0 %v1163_v9 }
  0x47   :  { %1038 = vmatpush3.bf16.msra.mxu0 %v1131_v14 }
  0x48   :  { %1039 = vmatprep.subr.bf16.mxu0 %v1163_v9 }
  0x49   :  { %9 = vsyncpa [#allocation3], 0  ;;  %v1133_v16 = vld [vmem:[%s1441_s1 + $0x218] sm:$0xff]   ;;  %v1134_v17 = vld [vmem:[%s1441_s1 + $0x220] sm:$0xff]  }
  0x4a   :  { %v1135_v18 = vld [vmem:[%s1441_s1 + $0x228] sm:$0xff]   ;;  %v1136_v19 = vld [vmem:[%s1441_s1 + $0x230] sm:$0xff]   ;;  %v1137_v20 = vld [vmem:[%s1441_s1 + $0x238] sm:$0xff]  }
  0x4b   :  { %1040 = vmatpush3.bf16.msra.mxu0 %v1132_v15  ;;  %v1138_v21 = vld [vmem:[%s1440_s0 + $0x20] ss:$0 sps:$4 sm:$0xff]  }
  0x4c   :  { %1041 = vmatprep.subr.bf16.mxu0 %v1163_v9  ;;  %v856_v23 = vld [vmem:[%s1442_s2] ss:$0 sm:$0xff]  ;;  %s1165_s2 = smov [#allocation2]  }
  0x4d   :  { %v839_v48 = vld [vmem:[%s1443_s3] sm:$0xff]  ;;  %s848_s15 = sshll.u32 %s1165_s2, 4  ;;  %s849_s15 = int_to_ptr.vmem [resolvable:$true] %s848_s15 }
  0x4e   :  { %s1139_s16 = scalar_lea.vmem %s849_s15, 128  ;;  %p1144_p1 = scmp.lt.s32.totalorder %s849_s15, %s849_s15 }
  0x4f   :  { %1042 = vmatpush3.bf16.msra.mxu0 %v1133_v16  ;;  %p1140_p0 = scmp.ne.s32.totalorder %s849_s15, %s1139_s16  ;;  %p1145_p2 = scmp.lt.s32.totalorder %s1139_s16, %s1139_s16 }
  0x50   :  { %1043 = vmatprep.subr.bf16.mxu0 %v1163_v9 }
  0x51   :  { %p1146_p3 = por %p1145_p2, %p1144_p1 }
  0x53   :  { %1044 = vmatpush3.bf16.msra.mxu0 %v1134_v17  ;;  %p1147_p4 = pnand %p1146_p3, %p1140_p0 }
  0x54   :  { %1045 = vmatprep.subr.bf16.mxu0 %v1163_v9 }
  0x57   :  { %1046 = vmatpush3.bf16.msra.mxu0 %v1135_v18 }
  0x58   :  { %1047 = vmatprep.subr.bf16.mxu0 %v1163_v9 }
  0x5b   :  { %1048 = vmatpush3.bf16.msra.mxu0 %v1136_v19 }
  0x5c   :  { %1049 = vmatprep.subr.bf16.mxu0 %v1163_v9 }
  0x5f   :  { %1050 = vmatpush3.bf16.msra.mxu0 %v1137_v20 }
  0x62   :  { %1052 = vmatmul.mubr.bf16.vlgmr.msra.gmra.mrb[8].mxu0 %v1138_v21 }
  0xf5   :  { %v954_v22 = vpop.f32.mrb[0].mxu0 }
  0xf6   :  { %v955_v24 = vpop.f32.mrb[1].mxu0 }
  0xf7   :  { %v956_v25 = vadd.f32 %v955_v24, %v954_v22  ;;  %v957_v26 = vpop.f32.mrb[2].mxu0  ;;  %v976_v27 = vpop.f32.mrb[0].mxu1 }
  0xf8   :  { %v958_v28 = vpop.f32.mrb[3].mxu0  ;;  %v977_v29 = vpop.f32.mrb[1].mxu1 }
  0xf9   :  { %v674_v30 = vadd.f32 %v956_v25, %v856_v23  ;;  %v978_v31 = vadd.f32 %v977_v29, %v976_v27  ;;  %v979_v32 = vpop.f32.mrb[2].mxu1 }
  0xfa   :  { %v980_v33 = vpop.f32.mrb[3].mxu1 }
  0xfb   :  { %v714_v34 = vadd.f32 %v978_v31, %v674_v30 }
 0x115   :  { %v998_v35 = vpop.f32.mrb[4].mxu0 }
 0x116   :  { %v999_v36 = vpop.f32.mrb[5].mxu0 }
 0x117   :  { %v1000_v37 = vadd.f32 %v999_v36, %v998_v35  ;;  %v1001_v38 = vpop.f32.mrb[6].mxu0  ;;  %v1020_v39 = vpop.f32.mrb[4].mxu1 }
 0x118   :  { %v1002_v40 = vpop.f32.mrb[7].mxu0  ;;  %v1021_v41 = vpop.f32.mrb[5].mxu1 }
 0x119   :  { %v754_v42 = vadd.f32 %v1000_v37, %v714_v34  ;;  %v1022_v43 = vadd.f32 %v1021_v41, %v1020_v39  ;;  %v1023_v44 = vpop.f32.mrb[6].mxu1 }
 0x11a   :  { %v1024_v45 = vpop.f32.mrb[7].mxu1 }
 0x11b   :  { %v794_v46 = vadd.f32 %v1022_v43, %v754_v42 }
 0x135   :  { %v833_v47 = vpop.f32.mrb[8].mxu0 }
 0x136   :  { %v834_v49 = vadd.f32 %v833_v47, %v794_v46  ;;  %v1053_v50 = vpop.f32.mrb[9].mxu0 }
 0x137   :  { %v836_v51 = vpop.f32.mrb[10].mxu0 }
 0x138   :  { %v1054_v52 = vpop.f32.mrb[11].mxu0  ;;  %v840_v53 = vadd.f32 %v839_v48, %v834_v49 }
 0x13a   :  { %841 = vst [vmem:[#allocation2] sm:$0xff] %v840_v53 }
 0x13b   :  { %1150 = shalt.err (!%p1147_p4)
}
 0x13c   :  { %s1151_s3 = scalar_lea.hbm %s1444_s4, 128 }
 0x13d   :  { %p1152_p5 = scmp.ne.s32.totalorder %s1444_s4, %s1151_s3  ;;  %p1155_p6 = scmp.lt.u32.totalorder %s1151_s3, %s1444_s4 }
 0x13f   :  { %p1157_p7 = pnand %p1155_p6, %p1152_p5 }
 0x141   :  { %1160 = shalt.err (!%p1157_p7)
}
 0x142   :  { %851 = dma.vmem_to_hbm [thread:$0]  %s849_s15, 128, %s1444_s4, [#allocation3]  }
 0x143   :  { %1161 = dma.done.wait [#allocation3], 128  }
 0x144   :  { %1162 = vsyncadd [#allocation3], 4294967168 }
 0x145   :  { %855 = vsyncpa [#allocation3], 1 }

</bundles_post_ra>
